<compile_context>
chip_gen: v7x
topology: tpu7x:2x2x1
jax: 0.10.0
libtpu: 0.0.40
codegen_flags: <defaults>
</compile_context>

<pallas_src>
import functools

import jax
import jax.numpy as jnp
from jax import lax
from jax.experimental import pallas as pl
from jax.experimental.pallas import tpu as pltpu


def _time_chunk(T, target=32):
    """Largest divisor of T that is <= target (timesteps per grid step)."""
    tc = min(T, target)
    while T % tc:
        tc -= 1
    return tc


# -----------------------------------------------------------------------------
# Encoder kernel: grid over time-chunks, hidden state carried in VMEM scratch.
# Per step only the recurrent h @ W_hh matmuls remain (input proj. pre-hoisted).
# -----------------------------------------------------------------------------
def encoder_kernel(gr_ref, gz_ref, gn_ref, whr_ref, whz_ref, whn_ref, bhn_ref,
                   hs_ref, h_scr):
    c = pl.program_id(0)

    @pl.when(c == 0)
    def _():
        h_scr[...] = jnp.zeros_like(h_scr)

    whr, whz, whn = whr_ref[...], whz_ref[...], whn_ref[...]
    bhn = bhn_ref[...]
    tc = gr_ref.shape[0]

    def step(i, h):
        h_r = jnp.dot(h, whr, preferred_element_type=jnp.float32)
        h_z = jnp.dot(h, whz, preferred_element_type=jnp.float32)
        h_n = jnp.dot(h, whn, preferred_element_type=jnp.float32) + bhn
        r = jax.nn.sigmoid(gr_ref[i] + h_r)
        z = jax.nn.sigmoid(gz_ref[i] + h_z)
        n = jnp.tanh(gn_ref[i] + r * h_n)
        h_new = (1.0 - z) * n + z * h
        hs_ref[i] = h_new.astype(hs_ref.dtype)
        return h_new

    h_last = lax.fori_loop(0, tc, step, h_scr[...], unroll=True)
    h_scr[...] = h_last


def run_encoder(x, p, time_chunk=32):
    T, B, IN = x.shape
    H = p["enc_whh_t"].shape[0]
    tc = _time_chunk(T, time_chunk)

    # Hoisted input-to-hidden projection: one (T*B, IN) x (IN, 3H) GEMM.
    gi = (x.reshape(T * B, IN) @ p["enc_wih_t"] + p["enc_bih"]).reshape(T, B, 3 * H)
    bhh = p["enc_bhh"]
    gr = gi[:, :, 0:H] + bhh[:, 0:H]          # reset gate (both biases folded in)
    gz = gi[:, :, H:2 * H] + bhh[:, H:2 * H]  # update gate
    gn = gi[:, :, 2 * H:3 * H]                # candidate (b_hn stays with h@W_hn)
    bhn = bhh[:, 2 * H:3 * H]

    whh = p["enc_whh_t"]
    whr, whz, whn = whh[:, 0:H], whh[:, H:2 * H], whh[:, 2 * H:3 * H]

    hs = pl.pallas_call(
        encoder_kernel,
        out_shape=jax.ShapeDtypeStruct((T, B, H), jnp.float32),
        grid_spec=pltpu.PrefetchScalarGridSpec(
            num_scalar_prefetch=0,
            grid=(T // tc,),
            in_specs=[
                pl.BlockSpec((tc, B, H), lambda c: (c, 0, 0)),   # gr
                pl.BlockSpec((tc, B, H), lambda c: (c, 0, 0)),   # gz
                pl.BlockSpec((tc, B, H), lambda c: (c, 0, 0)),   # gn
                pl.BlockSpec((H, H), lambda c: (0, 0)),          # W_hr^T
                pl.BlockSpec((H, H), lambda c: (0, 0)),          # W_hz^T
                pl.BlockSpec((H, H), lambda c: (0, 0)),          # W_hn^T
                pl.BlockSpec((1, H), lambda c: (0, 0)),          # b_hn
            ],
            out_specs=pl.BlockSpec((tc, B, H), lambda c: (c, 0, 0)),
            scratch_shapes=[pltpu.VMEM((B, H), jnp.float32)],
        ),
        compiler_params=pltpu.CompilerParams(dimension_semantics=("arbitrary",)),
    )(gr, gz, gn, whr, whz, whn, bhn)
    return hs


# -----------------------------------------------------------------------------
# Decoder kernel: GRU recurrence + dot attention over (B, S, A) annotations,
# emits comb = tanh(W_c_ctx@ctx + W_c_h@h + b_c); output projection is hoisted.
# -----------------------------------------------------------------------------
def decoder_kernel(gr_ref, gz_ref, gn_ref, ann_ref, h0_ref,
                   whr_ref, whz_ref, whn_ref, bhn_ref,
                   wcc_ref, wch_ref, bc_ref, comb_ref, h_scr):
    c = pl.program_id(0)

    @pl.when(c == 0)
    def _():
        h_scr[...] = h0_ref[...]

    ann = ann_ref[...]                          # (B, S, A), VMEM-resident (hoisted)
    whr, whz, whn = whr_ref[...], whz_ref[...], whn_ref[...]
    bhn = bhn_ref[...]
    wcc, wch, bc = wcc_ref[...], wch_ref[...], bc_ref[...]
    tc = gr_ref.shape[0]

    def step(i, h):
        # GRU recurrence (input projection pre-hoisted outside the kernel).
        h_r = jnp.dot(h, whr, preferred_element_type=jnp.float32)
        h_z = jnp.dot(h, whz, preferred_element_type=jnp.float32)
        h_n = jnp.dot(h, whn, preferred_element_type=jnp.float32) + bhn
        r = jax.nn.sigmoid(gr_ref[i] + h_r)
        z = jax.nn.sigmoid(gz_ref[i] + h_z)
        n = jnp.tanh(gn_ref[i] + r * h_n)
        h_new = (1.0 - z) * n + z * h

        # Dot (Luong) attention, batch-major: softmax axis (S) is lane-dense.
        scores = jnp.sum(h_new[:, None, :] * ann, axis=-1)        # (B, S)
        m = jnp.max(scores, axis=-1, keepdims=True)
        e = jnp.exp(scores - m)
        denom = jnp.sum(e, axis=-1, keepdims=True)
        attn = e * pl.reciprocal(denom, approx=True)              # EUP divide
        ctx = jnp.sum(attn[:, :, None] * ann, axis=1)             # (B, A)

        # tanh(W_c [ctx; h]) with W_c split -> no in-kernel concatenation.
        comb = jnp.tanh(jnp.dot(ctx, wcc, preferred_element_type=jnp.float32)
                        + jnp.dot(h_new, wch, preferred_element_type=jnp.float32)
                        + bc)
        comb_ref[i] = comb.astype(comb_ref.dtype)
        return h_new

    h_last = lax.fori_loop(0, tc, step, h_scr[...], unroll=True)
    h_scr[...] = h_last


def run_decoder(y, ann_tbh, p, time_chunk=32):
    Td, B, OUT = y.shape
    H = p["dec_whh_t"].shape[0]
    S, _, A = ann_tbh.shape
    tc = _time_chunk(Td, time_chunk)

    # Hoisted decoder-input projection (teacher forcing -> all inputs known).
    gi = (y.reshape(Td * B, OUT) @ p["dec_wih_t"] + p["dec_bih"]).reshape(Td, B, 3 * H)
    bhh = p["dec_bhh"]
    gr = gi[:, :, 0:H] + bhh[:, 0:H]
    gz = gi[:, :, H:2 * H] + bhh[:, H:2 * H]
    gn = gi[:, :, 2 * H:3 * H]
    bhn = bhh[:, 2 * H:3 * H]

    whh = p["dec_whh_t"]
    whr, whz, whn = whh[:, 0:H], whh[:, H:2 * H], whh[:, 2 * H:3 * H]

    # Split W_c so the kernel never concatenates [context; h] along lanes.
    wc_ctx = p["wc_t"][0:A, :]
    wc_h = p["wc_t"][A:A + H, :]

    # Batch-major annotations: one-off relayout outside the recurrence.
    ann_bsa = jnp.transpose(ann_tbh, (1, 0, 2))   # (B, S, A)
    h0 = ann_tbh[S - 1]                           # encoder final hidden (B, H)
    # TODO(synk): h0 could instead be read from the VMEM-resident annotations at
    # t==0 (valid because bidirectional=False => A == H) to skip this HBM slice.

    comb = pl.pallas_call(
        decoder_kernel,
        out_shape=jax.ShapeDtypeStruct((Td, B, H), jnp.float32),
        grid_spec=pltpu.PrefetchScalarGridSpec(
            num_scalar_prefetch=0,
            grid=(Td // tc,),
            in_specs=[
                pl.BlockSpec((tc, B, H), lambda c: (c, 0, 0)),   # gr
                pl.BlockSpec((tc, B, H), lambda c: (c, 0, 0)),   # gz
                pl.BlockSpec((tc, B, H), lambda c: (c, 0, 0)),   # gn
                pl.BlockSpec((B, S, A), lambda c: (0, 0, 0)),    # annotations
                pl.BlockSpec((B, H), lambda c: (0, 0)),          # h0
                pl.BlockSpec((H, H), lambda c: (0, 0)),          # W_hr^T
                pl.BlockSpec((H, H), lambda c: (0, 0)),          # W_hz^T
                pl.BlockSpec((H, H), lambda c: (0, 0)),          # W_hn^T
                pl.BlockSpec((1, H), lambda c: (0, 0)),          # b_hn
                pl.BlockSpec((A, H), lambda c: (0, 0)),          # W_c (ctx part)
                pl.BlockSpec((H, H), lambda c: (0, 0)),          # W_c (h part)
                pl.BlockSpec((1, H), lambda c: (0, 0)),          # b_c
            ],
            out_specs=pl.BlockSpec((tc, B, H), lambda c: (c, 0, 0)),
            scratch_shapes=[pltpu.VMEM((B, H), jnp.float32)],
        ),
        compiler_params=pltpu.CompilerParams(dimension_semantics=("arbitrary",)),
    )(gr, gz, gn, ann_bsa, h0, whr, whz, whn, bhn, wc_ctx, wc_h, p["bc"])

    # Hoisted output projection: one (Td*B, H) x (H, OUT) GEMM, lane-dense writeback.
    logits = comb.reshape(Td * B, H) @ p["wout_t"] + p["bout"]
    return logits.reshape(Td, B, OUT)


# -----------------------------------------------------------------------------
# Module-level glue (plain JAX).
# -----------------------------------------------------------------------------
def remove4D(encoder_inputs):
    inp0 = encoder_inputs[:, :, 0, :]
    inp1 = encoder_inputs[:, :, 1, :]
    return jnp.concatenate([inp0, inp1], axis=2)


def recurrent_seq2seq_forward(encoder_inputs, decoder_inputs, epoch, params):
    del epoch  # TODO(synk): scheduled sampling / input_feeding not implemented.
    enc_x = remove4D(encoder_inputs)                 # (T_enc, B, 2F)
    annotations = run_encoder(enc_x, params)         # (T_enc, B, H)
    logits = run_decoder(decoder_inputs, annotations, params)
    return logits


# -----------------------------------------------------------------------------
# Parameter init (PyTorch-style uniform(-1/sqrt(H), 1/sqrt(H))), f32.
# (bf16 MXU operands would be the next step on v6e/v7x; kept f32 here.)
# -----------------------------------------------------------------------------
def init_params(key, input_dim, hidden_dim, output_dim, annotation_dim):
    stdv = 1.0 / jnp.sqrt(jnp.float32(hidden_dim))
    ks = jax.random.split(key, 12)
    u = lambda k, shape: jax.random.uniform(
        k, shape, dtype=jnp.float32, minval=-stdv, maxval=stdv)
    H, A = hidden_dim, annotation_dim
    return {
        # encoder GRU (weights stored pre-transposed for x @ W^T)
        "enc_wih_t": u(ks[0], (input_dim, 3 * H)),
        "enc_whh_t": u(ks[1], (H, 3 * H)),
        "enc_bih":   u(ks[2], (1, 3 * H)),
        "enc_bhh":   u(ks[3], (1, 3 * H)),
        # decoder GRU
        "dec_wih_t": u(ks[4], (output_dim, 3 * H)),
        "dec_whh_t": u(ks[5], (H, 3 * H)),
        "dec_bih":   u(ks[6], (1, 3 * H)),
        "dec_bhh":   u(ks[7], (1, 3 * H)),
        # attention combine: tanh(W_c [context; h])
        "wc_t": u(ks[8], (H + A, H)),
        "bc":   u(ks[9], (1, H)),
        # output projection
        "wout_t": u(ks[10], (H, output_dim)),
        "bout":   u(ks[11], (1, output_dim)),
    }


# -----------------------------------------------------------------------------
# Pure-JAX reference (lax.scan) for correctness check.
# -----------------------------------------------------------------------------
def _gru_cell_ref(x, h, wih_t, whh_t, bih, bhh):
    H = h.shape[-1]
    gi = x @ wih_t + bih
    gh = h @ whh_t + bhh
    i_r, i_z, i_n = gi[:, 0:H], gi[:, H:2 * H], gi[:, 2 * H:3 * H]
    h_r, h_z, h_n = gh[:, 0:H], gh[:, H:2 * H], gh[:, 2 * H:3 * H]
    r = jax.nn.sigmoid(i_r + h_r)
    z = jax.nn.sigmoid(i_z + h_z)
    n = jnp.tanh(i_n + r * h_n)
    return (1.0 - z) * n + z * h


def ref_forward(encoder_inputs, decoder_inputs, p):
    x = remove4D(encoder_inputs)
    B = x.shape[1]
    H = p["enc_whh_t"].shape[0]

    def enc_step(h, xt):
        h2 = _gru_cell_ref(xt, h, p["enc_wih_t"], p["enc_whh_t"],
                           p["enc_bih"], p["enc_bhh"])
        return h2, h2

    h_last, ann = jax.lax.scan(enc_step, jnp.zeros((B, H), jnp.float32), x)

    def dec_step(h, yt):
        h2 = _gru_cell_ref(yt, h, p["dec_wih_t"], p["dec_whh_t"],
                           p["dec_bih"], p["dec_bhh"])
        scores = jnp.sum(h2[None, :, :] * ann, axis=-1)
        attn = jax.nn.softmax(scores, axis=0)
        ctx = jnp.sum(attn[:, :, None] * ann, axis=0)
        comb = jnp.tanh(jnp.concatenate([ctx, h2], -1) @ p["wc_t"] + p["bc"])
        logit = comb @ p["wout_t"] + p["bout"]
        return h2, logit

    _, logits = jax.lax.scan(dec_step, h_last, decoder_inputs)
    return logits


# -----------------------------------------------------------------------------
if __name__ == "__main__":
    # Small shapes: T_enc=8, T_dec=8, B=2, F=4 -> input_dim=8, hidden=32, output=4.
    # (For production, pad HIDDEN/OUTPUT toward multiples of 128 for lane density.)
    T_ENC, T_DEC, B, F = 8, 8, 2, 4
    INPUT_DIM = 2 * F
    HIDDEN = 32
    OUTPUT_DIM = 4
    ANNOT_DIM = HIDDEN  # bidirectional=False

    root = jax.random.PRNGKey(0)
    k_enc, k_dec, k_par = jax.random.split(root, 3)

    encoder_inputs = jax.random.normal(k_enc, (T_ENC, B, 2, F), dtype=jnp.float32)
    decoder_inputs = jax.random.normal(k_dec, (T_DEC, B, OUTPUT_DIM), dtype=jnp.float32)
    params = init_params(k_par, INPUT_DIM, HIDDEN, OUTPUT_DIM, ANNOT_DIM)

    fwd = jax.jit(functools.partial(recurrent_seq2seq_forward, epoch=0, params=params))
    logits = jax.block_until_ready(fwd(encoder_inputs, decoder_inputs))

    ref = jax.block_until_ready(ref_forward(encoder_inputs, decoder_inputs, params))
    assert logits.shape == (T_DEC, B, OUTPUT_DIM), logits.shape
    # 2e-3 tolerance: attention uses the approximate (EUP) reciprocal in-kernel.
    assert jnp.allclose(logits, ref, atol=2e-3, rtol=2e-3), (
        float(jnp.max(jnp.abs(logits - ref))))

    print("KERNEL_OK")
</pallas_src>

<mosaic_0001>
module attributes {stable_mosaic.version = 11 : i64} {
  func.func @encoder_kernel(%arg0: i32, %arg1: memref<8x2x32xf32, #tpu.memory_space<vmem>>, %arg2: memref<8x2x32xf32, #tpu.memory_space<vmem>>, %arg3: memref<8x2x32xf32, #tpu.memory_space<vmem>>, %arg4: memref<32x32xf32, #tpu.memory_space<vmem>>, %arg5: memref<32x32xf32, #tpu.memory_space<vmem>>, %arg6: memref<32x32xf32, #tpu.memory_space<vmem>>, %arg7: memref<1x32xf32, #tpu.memory_space<vmem>>, %arg8: memref<8x2x32xf32, #tpu.memory_space<vmem>>, %arg9: memref<2x32xf32, #tpu.memory_space<vmem>>) attributes {dimension_semantics = [#tpu.dimension_semantics<arbitrary>], iteration_bounds = array<i64: 1>, scalar_prefetch = 0 : i64, scratch_operands = 1 : i64, tpu.core_type = #tpu.core_type<tc>, window_params = [{transform_indices = @transform_0, window_bounds = array<i64: 8, 2, 32>}, {transform_indices = @transform_1, window_bounds = array<i64: 8, 2, 32>}, {transform_indices = @transform_2, window_bounds = array<i64: 8, 2, 32>}, {pipeline_mode = #tpu.pipeline_mode<synchronous>, transform_indices = @transform_3, window_bounds = array<i64: 32, 32>}, {pipeline_mode = #tpu.pipeline_mode<synchronous>, transform_indices = @transform_4, window_bounds = array<i64: 32, 32>}, {pipeline_mode = #tpu.pipeline_mode<synchronous>, transform_indices = @transform_5, window_bounds = array<i64: 32, 32>}, {pipeline_mode = #tpu.pipeline_mode<synchronous>, transform_indices = @transform_6, window_bounds = array<i64: 1, 32>}, {transform_indices = @transform_7, window_bounds = array<i64: 8, 2, 32>}]} {
    %c0_i32 = arith.constant 0 : i32
    %0 = arith.cmpi eq, %arg0, %c0_i32 : i32
    %1 = arith.extui %0 : i1 to i32
    %c0_i32_0 = arith.constant 0 : i32
    %2 = arith.cmpi ne, %1, %c0_i32_0 : i32
    scf.if %2 {
      %cst_124 = arith.constant 0.000000e+00 : f32
      %313 = vector.broadcast %cst_124 : f32 to vector<2x32xf32>
      %c0_125 = arith.constant 0 : index
      %c0_126 = arith.constant 0 : index
      %314 = vector.load %arg9[%c0_125, %c0_126] : memref<2x32xf32, #tpu.memory_space<vmem>>, vector<2x32xf32>
      tpu.vector_store %arg9[%c0_125, %c0_126], %313 {strides = array<i32>} : memref<2x32xf32, #tpu.memory_space<vmem>>, vector<2x32xf32>,
    } else {
    }
    %c0 = arith.constant 0 : index
    %c0_1 = arith.constant 0 : index
    %3 = vector.load %arg4[%c0, %c0_1] : memref<32x32xf32, #tpu.memory_space<vmem>>, vector<32x32xf32>
    %c0_2 = arith.constant 0 : index
    %c0_3 = arith.constant 0 : index
    %4 = vector.load %arg5[%c0_2, %c0_3] : memref<32x32xf32, #tpu.memory_space<vmem>>, vector<32x32xf32>
    %c0_4 = arith.constant 0 : index
    %c0_5 = arith.constant 0 : index
    %5 = vector.load %arg6[%c0_4, %c0_5] : memref<32x32xf32, #tpu.memory_space<vmem>>, vector<32x32xf32>
    %c0_6 = arith.constant 0 : index
    %c0_7 = arith.constant 0 : index
    %6 = vector.load %arg7[%c0_6, %c0_7] : memref<1x32xf32, #tpu.memory_space<vmem>>, vector<1x32xf32>
    %c0_8 = arith.constant 0 : index
    %c0_9 = arith.constant 0 : index
    %7 = vector.load %arg9[%c0_8, %c0_9] : memref<2x32xf32, #tpu.memory_space<vmem>>, vector<2x32xf32>
    %c0_i32_10 = arith.constant 0 : i32
    %cst = arith.constant dense<0.000000e+00> : vector<2x32xf32>
    %8 = tpu.matmul %7, %3, %cst {dimension_numbers = #tpu.dot_dimension_numbers<[1], [0], [0], [1], [0, 0, 1, 1], [], []>} : vector<2x32xf32>, vector<32x32xf32>, vector<2x32xf32> -> vector<2x32xf32>
    %cst_11 = arith.constant dense<0.000000e+00> : vector<2x32xf32>
    %9 = tpu.matmul %7, %4, %cst_11 {dimension_numbers = #tpu.dot_dimension_numbers<[1], [0], [0], [1], [0, 0, 1, 1], [], []>} : vector<2x32xf32>, vector<32x32xf32>, vector<2x32xf32> -> vector<2x32xf32>
    %cst_12 = arith.constant dense<0.000000e+00> : vector<2x32xf32>
    %10 = tpu.matmul %7, %5, %cst_12 {dimension_numbers = #tpu.dot_dimension_numbers<[1], [0], [0], [1], [0, 0, 1, 1], [], []>} : vector<2x32xf32>, vector<32x32xf32>, vector<2x32xf32> -> vector<2x32xf32>
    %11 = vector.broadcast %6 : vector<1x32xf32> to vector<2x32xf32>
    %12 = arith.addf %10, %11 : vector<2x32xf32>
    %13 = arith.index_cast %c0_i32_10 : i32 to index
    %c0_13 = arith.constant 0 : index
    %c0_14 = arith.constant 0 : index
    %14 = vector.load %arg1[%13, %c0_13, %c0_14] : memref<8x2x32xf32, #tpu.memory_space<vmem>>, vector<1x2x32xf32>
    %15 = vector.shape_cast %14 : vector<1x2x32xf32> to vector<2x32xf32>
    %16 = arith.addf %15, %8 : vector<2x32xf32>
    %17 = arith.negf %16 : vector<2x32xf32>
    %18 = math.exp %17 : vector<2x32xf32>
    %cst_15 = arith.constant 1.000000e+00 : f32
    %19 = vector.broadcast %cst_15 : f32 to vector<2x32xf32>
    %20 = arith.addf %19, %18 : vector<2x32xf32>
    %21 = arith.divf %19, %20 : vector<2x32xf32>
    %22 = arith.index_cast %c0_i32_10 : i32 to index
    %c0_16 = arith.constant 0 : index
    %c0_17 = arith.constant 0 : index
    %23 = vector.load %arg2[%22, %c0_16, %c0_17] : memref<8x2x32xf32, #tpu.memory_space<vmem>>, vector<1x2x32xf32>
    %24 = vector.shape_cast %23 : vector<1x2x32xf32> to vector<2x32xf32>
    %25 = arith.addf %24, %9 : vector<2x32xf32>
    %26 = arith.negf %25 : vector<2x32xf32>
    %27 = math.exp %26 : vector<2x32xf32>
    %cst_18 = arith.constant 1.000000e+00 : f32
    %28 = vector.broadcast %cst_18 : f32 to vector<2x32xf32>
    %29 = arith.addf %28, %27 : vector<2x32xf32>
    %30 = arith.divf %28, %29 : vector<2x32xf32>
    %31 = arith.index_cast %c0_i32_10 : i32 to index
    %c0_19 = arith.constant 0 : index
    %c0_20 = arith.constant 0 : index
    %32 = vector.load %arg3[%31, %c0_19, %c0_20] : memref<8x2x32xf32, #tpu.memory_space<vmem>>, vector<1x2x32xf32>
    %33 = vector.shape_cast %32 : vector<1x2x32xf32> to vector<2x32xf32>
    %34 = arith.mulf %21, %12 : vector<2x32xf32>
    %35 = arith.addf %33, %34 : vector<2x32xf32>
    %36 = math.tanh %35 : vector<2x32xf32>
    %cst_21 = arith.constant 1.000000e+00 : f32
    %37 = vector.broadcast %cst_21 : f32 to vector<2x32xf32>
    %38 = arith.subf %37, %30 : vector<2x32xf32>
    %39 = arith.mulf %38, %36 : vector<2x32xf32>
    %40 = arith.mulf %30, %7 : vector<2x32xf32>
    %41 = arith.addf %39, %40 : vector<2x32xf32>
    %42 = arith.index_cast %c0_i32_10 : i32 to index
    %c0_22 = arith.constant 0 : index
    %c0_23 = arith.constant 0 : index
    %43 = vector.load %arg8[%42, %c0_22, %c0_23] : memref<8x2x32xf32, #tpu.memory_space<vmem>>, vector<1x2x32xf32>
    %44 = vector.shape_cast %43 : vector<1x2x32xf32> to vector<2x32xf32>
    %45 = vector.shape_cast %41 : vector<2x32xf32> to vector<1x2x32xf32>
    tpu.vector_store %arg8[%42, %c0_22, %c0_23], %45 {strides = array<i32>} : memref<8x2x32xf32, #tpu.memory_space<vmem>>, vector<1x2x32xf32>,
    %c1_i32 = arith.constant 1 : i32
    %cst_24 = arith.constant dense<0.000000e+00> : vector<2x32xf32>
    %46 = tpu.matmul %41, %3, %cst_24 {dimension_numbers = #tpu.dot_dimension_numbers<[1], [0], [0], [1], [0, 0, 1, 1], [], []>} : vector<2x32xf32>, vector<32x32xf32>, vector<2x32xf32> -> vector<2x32xf32>
    %cst_25 = arith.constant dense<0.000000e+00> : vector<2x32xf32>
    %47 = tpu.matmul %41, %4, %cst_25 {dimension_numbers = #tpu.dot_dimension_numbers<[1], [0], [0], [1], [0, 0, 1, 1], [], []>} : vector<2x32xf32>, vector<32x32xf32>, vector<2x32xf32> -> vector<2x32xf32>
    %cst_26 = arith.constant dense<0.000000e+00> : vector<2x32xf32>
    %48 = tpu.matmul %41, %5, %cst_26 {dimension_numbers = #tpu.dot_dimension_numbers<[1], [0], [0], [1], [0, 0, 1, 1], [], []>} : vector<2x32xf32>, vector<32x32xf32>, vector<2x32xf32> -> vector<2x32xf32>
    %49 = vector.broadcast %6 : vector<1x32xf32> to vector<2x32xf32>
    %50 = arith.addf %48, %49 : vector<2x32xf32>
    %51 = arith.index_cast %c1_i32 : i32 to index
    %c0_27 = arith.constant 0 : index
    %c0_28 = arith.constant 0 : index
    %52 = vector.load %arg1[%51, %c0_27, %c0_28] : memref<8x2x32xf32, #tpu.memory_space<vmem>>, vector<1x2x32xf32>
    %53 = vector.shape_cast %52 : vector<1x2x32xf32> to vector<2x32xf32>
    %54 = arith.addf %53, %46 : vector<2x32xf32>
    %55 = arith.negf %54 : vector<2x32xf32>
    %56 = math.exp %55 : vector<2x32xf32>
    %cst_29 = arith.constant 1.000000e+00 : f32
    %57 = vector.broadcast %cst_29 : f32 to vector<2x32xf32>
    %58 = arith.addf %57, %56 : vector<2x32xf32>
    %59 = arith.divf %57, %58 : vector<2x32xf32>
    %60 = arith.index_cast %c1_i32 : i32 to index
    %c0_30 = arith.constant 0 : index
    %c0_31 = arith.constant 0 : index
    %61 = vector.load %arg2[%60, %c0_30, %c0_31] : memref<8x2x32xf32, #tpu.memory_space<vmem>>, vector<1x2x32xf32>
    %62 = vector.shape_cast %61 : vector<1x2x32xf32> to vector<2x32xf32>
    %63 = arith.addf %62, %47 : vector<2x32xf32>
    %64 = arith.negf %63 : vector<2x32xf32>
    %65 = math.exp %64 : vector<2x32xf32>
    %cst_32 = arith.constant 1.000000e+00 : f32
    %66 = vector.broadcast %cst_32 : f32 to vector<2x32xf32>
    %67 = arith.addf %66, %65 : vector<2x32xf32>
    %68 = arith.divf %66, %67 : vector<2x32xf32>
    %69 = arith.index_cast %c1_i32 : i32 to index
    %c0_33 = arith.constant 0 : index
    %c0_34 = arith.constant 0 : index
    %70 = vector.load %arg3[%69, %c0_33, %c0_34] : memref<8x2x32xf32, #tpu.memory_space<vmem>>, vector<1x2x32xf32>
    %71 = vector.shape_cast %70 : vector<1x2x32xf32> to vector<2x32xf32>
    %72 = arith.mulf %59, %50 : vector<2x32xf32>
    %73 = arith.addf %71, %72 : vector<2x32xf32>
    %74 = math.tanh %73 : vector<2x32xf32>
    %cst_35 = arith.constant 1.000000e+00 : f32
    %75 = vector.broadcast %cst_35 : f32 to vector<2x32xf32>
    %76 = arith.subf %75, %68 : vector<2x32xf32>
    %77 = arith.mulf %76, %74 : vector<2x32xf32>
    %78 = arith.mulf %68, %41 : vector<2x32xf32>
    %79 = arith.addf %77, %78 : vector<2x32xf32>
    %80 = arith.index_cast %c1_i32 : i32 to index
    %c0_36 = arith.constant 0 : index
    %c0_37 = arith.constant 0 : index
    %81 = vector.load %arg8[%80, %c0_36, %c0_37] : memref<8x2x32xf32, #tpu.memory_space<vmem>>, vector<1x2x32xf32>
    %82 = vector.shape_cast %81 : vector<1x2x32xf32> to vector<2x32xf32>
    %83 = vector.shape_cast %79 : vector<2x32xf32> to vector<1x2x32xf32>
    tpu.vector_store %arg8[%80, %c0_36, %c0_37], %83 {strides = array<i32>} : memref<8x2x32xf32, #tpu.memory_space<vmem>>, vector<1x2x32xf32>,
    %c2_i32 = arith.constant 2 : i32
    %cst_38 = arith.constant dense<0.000000e+00> : vector<2x32xf32>
    %84 = tpu.matmul %79, %3, %cst_38 {dimension_numbers = #tpu.dot_dimension_numbers<[1], [0], [0], [1], [0, 0, 1, 1], [], []>} : vector<2x32xf32>, vector<32x32xf32>, vector<2x32xf32> -> vector<2x32xf32>
    %cst_39 = arith.constant dense<0.000000e+00> : vector<2x32xf32>
    %85 = tpu.matmul %79, %4, %cst_39 {dimension_numbers = #tpu.dot_dimension_numbers<[1], [0], [0], [1], [0, 0, 1, 1], [], []>} : vector<2x32xf32>, vector<32x32xf32>, vector<2x32xf32> -> vector<2x32xf32>
    %cst_40 = arith.constant dense<0.000000e+00> : vector<2x32xf32>
    %86 = tpu.matmul %79, %5, %cst_40 {dimension_numbers = #tpu.dot_dimension_numbers<[1], [0], [0], [1], [0, 0, 1, 1], [], []>} : vector<2x32xf32>, vector<32x32xf32>, vector<2x32xf32> -> vector<2x32xf32>
    %87 = vector.broadcast %6 : vector<1x32xf32> to vector<2x32xf32>
    %88 = arith.addf %86, %87 : vector<2x32xf32>
    %89 = arith.index_cast %c2_i32 : i32 to index
    %c0_41 = arith.constant 0 : index
    %c0_42 = arith.constant 0 : index
    %90 = vector.load %arg1[%89, %c0_41, %c0_42] : memref<8x2x32xf32, #tpu.memory_space<vmem>>, vector<1x2x32xf32>
    %91 = vector.shape_cast %90 : vector<1x2x32xf32> to vector<2x32xf32>
    %92 = arith.addf %91, %84 : vector<2x32xf32>
    %93 = arith.negf %92 : vector<2x32xf32>
    %94 = math.exp %93 : vector<2x32xf32>
    %cst_43 = arith.constant 1.000000e+00 : f32
    %95 = vector.broadcast %cst_43 : f32 to vector<2x32xf32>
    %96 = arith.addf %95, %94 : vector<2x32xf32>
    %97 = arith.divf %95, %96 : vector<2x32xf32>
    %98 = arith.index_cast %c2_i32 : i32 to index
    %c0_44 = arith.constant 0 : index
    %c0_45 = arith.constant 0 : index
    %99 = vector.load %arg2[%98, %c0_44, %c0_45] : memref<8x2x32xf32, #tpu.memory_space<vmem>>, vector<1x2x32xf32>
    %100 = vector.shape_cast %99 : vector<1x2x32xf32> to vector<2x32xf32>
    %101 = arith.addf %100, %85 : vector<2x32xf32>
    %102 = arith.negf %101 : vector<2x32xf32>
    %103 = math.exp %102 : vector<2x32xf32>
    %cst_46 = arith.constant 1.000000e+00 : f32
    %104 = vector.broadcast %cst_46 : f32 to vector<2x32xf32>
    %105 = arith.addf %104, %103 : vector<2x32xf32>
    %106 = arith.divf %104, %105 : vector<2x32xf32>
    %107 = arith.index_cast %c2_i32 : i32 to index
    %c0_47 = arith.constant 0 : index
    %c0_48 = arith.constant 0 : index
    %108 = vector.load %arg3[%107, %c0_47, %c0_48] : memref<8x2x32xf32, #tpu.memory_space<vmem>>, vector<1x2x32xf32>
    %109 = vector.shape_cast %108 : vector<1x2x32xf32> to vector<2x32xf32>
    %110 = arith.mulf %97, %88 : vector<2x32xf32>
    %111 = arith.addf %109, %110 : vector<2x32xf32>
    %112 = math.tanh %111 : vector<2x32xf32>
    %cst_49 = arith.constant 1.000000e+00 : f32
    %113 = vector.broadcast %cst_49 : f32 to vector<2x32xf32>
    %114 = arith.subf %113, %106 : vector<2x32xf32>
    %115 = arith.mulf %114, %112 : vector<2x32xf32>
    %116 = arith.mulf %106, %79 : vector<2x32xf32>
    %117 = arith.addf %115, %116 : vector<2x32xf32>
    %118 = arith.index_cast %c2_i32 : i32 to index
    %c0_50 = arith.constant 0 : index
    %c0_51 = arith.constant 0 : index
    %119 = vector.load %arg8[%118, %c0_50, %c0_51] : memref<8x2x32xf32, #tpu.memory_space<vmem>>, vector<1x2x32xf32>
    %120 = vector.shape_cast %119 : vector<1x2x32xf32> to vector<2x32xf32>
    %121 = vector.shape_cast %117 : vector<2x32xf32> to vector<1x2x32xf32>
    tpu.vector_store %arg8[%118, %c0_50, %c0_51], %121 {strides = array<i32>} : memref<8x2x32xf32, #tpu.memory_space<vmem>>, vector<1x2x32xf32>,
    %c3_i32 = arith.constant 3 : i32
    %cst_52 = arith.constant dense<0.000000e+00> : vector<2x32xf32>
    %122 = tpu.matmul %117, %3, %cst_52 {dimension_numbers = #tpu.dot_dimension_numbers<[1], [0], [0], [1], [0, 0, 1, 1], [], []>} : vector<2x32xf32>, vector<32x32xf32>, vector<2x32xf32> -> vector<2x32xf32>
    %cst_53 = arith.constant dense<0.000000e+00> : vector<2x32xf32>
    %123 = tpu.matmul %117, %4, %cst_53 {dimension_numbers = #tpu.dot_dimension_numbers<[1], [0], [0], [1], [0, 0, 1, 1], [], []>} : vector<2x32xf32>, vector<32x32xf32>, vector<2x32xf32> -> vector<2x32xf32>
    %cst_54 = arith.constant dense<0.000000e+00> : vector<2x32xf32>
    %124 = tpu.matmul %117, %5, %cst_54 {dimension_numbers = #tpu.dot_dimension_numbers<[1], [0], [0], [1], [0, 0, 1, 1], [], []>} : vector<2x32xf32>, vector<32x32xf32>, vector<2x32xf32> -> vector<2x32xf32>
    %125 = vector.broadcast %6 : vector<1x32xf32> to vector<2x32xf32>
    %126 = arith.addf %124, %125 : vector<2x32xf32>
    %127 = arith.index_cast %c3_i32 : i32 to index
    %c0_55 = arith.constant 0 : index
    %c0_56 = arith.constant 0 : index
    %128 = vector.load %arg1[%127, %c0_55, %c0_56] : memref<8x2x32xf32, #tpu.memory_space<vmem>>, vector<1x2x32xf32>
    %129 = vector.shape_cast %128 : vector<1x2x32xf32> to vector<2x32xf32>
    %130 = arith.addf %129, %122 : vector<2x32xf32>
    %131 = arith.negf %130 : vector<2x32xf32>
    %132 = math.exp %131 : vector<2x32xf32>
    %cst_57 = arith.constant 1.000000e+00 : f32
    %133 = vector.broadcast %cst_57 : f32 to vector<2x32xf32>
    %134 = arith.addf %133, %132 : vector<2x32xf32>
    %135 = arith.divf %133, %134 : vector<2x32xf32>
    %136 = arith.index_cast %c3_i32 : i32 to index
    %c0_58 = arith.constant 0 : index
    %c0_59 = arith.constant 0 : index
    %137 = vector.load %arg2[%136, %c0_58, %c0_59] : memref<8x2x32xf32, #tpu.memory_space<vmem>>, vector<1x2x32xf32>
    %138 = vector.shape_cast %137 : vector<1x2x32xf32> to vector<2x32xf32>
    %139 = arith.addf %138, %123 : vector<2x32xf32>
    %140 = arith.negf %139 : vector<2x32xf32>
    %141 = math.exp %140 : vector<2x32xf32>
    %cst_60 = arith.constant 1.000000e+00 : f32
    %142 = vector.broadcast %cst_60 : f32 to vector<2x32xf32>
    %143 = arith.addf %142, %141 : vector<2x32xf32>
    %144 = arith.divf %142, %143 : vector<2x32xf32>
    %145 = arith.index_cast %c3_i32 : i32 to index
    %c0_61 = arith.constant 0 : index
    %c0_62 = arith.constant 0 : index
    %146 = vector.load %arg3[%145, %c0_61, %c0_62] : memref<8x2x32xf32, #tpu.memory_space<vmem>>, vector<1x2x32xf32>
    %147 = vector.shape_cast %146 : vector<1x2x32xf32> to vector<2x32xf32>
    %148 = arith.mulf %135, %126 : vector<2x32xf32>
    %149 = arith.addf %147, %148 : vector<2x32xf32>
    %150 = math.tanh %149 : vector<2x32xf32>
    %cst_63 = arith.constant 1.000000e+00 : f32
    %151 = vector.broadcast %cst_63 : f32 to vector<2x32xf32>
    %152 = arith.subf %151, %144 : vector<2x32xf32>
    %153 = arith.mulf %152, %150 : vector<2x32xf32>
    %154 = arith.mulf %144, %117 : vector<2x32xf32>
    %155 = arith.addf %153, %154 : vector<2x32xf32>
    %156 = arith.index_cast %c3_i32 : i32 to index
    %c0_64 = arith.constant 0 : index
    %c0_65 = arith.constant 0 : index
    %157 = vector.load %arg8[%156, %c0_64, %c0_65] : memref<8x2x32xf32, #tpu.memory_space<vmem>>, vector<1x2x32xf32>
    %158 = vector.shape_cast %157 : vector<1x2x32xf32> to vector<2x32xf32>
    %159 = vector.shape_cast %155 : vector<2x32xf32> to vector<1x2x32xf32>
    tpu.vector_store %arg8[%156, %c0_64, %c0_65], %159 {strides = array<i32>} : memref<8x2x32xf32, #tpu.memory_space<vmem>>, vector<1x2x32xf32>,
    %c4_i32 = arith.constant 4 : i32
    %cst_66 = arith.constant dense<0.000000e+00> : vector<2x32xf32>
    %160 = tpu.matmul %155, %3, %cst_66 {dimension_numbers = #tpu.dot_dimension_numbers<[1], [0], [0], [1], [0, 0, 1, 1], [], []>} : vector<2x32xf32>, vector<32x32xf32>, vector<2x32xf32> -> vector<2x32xf32>
    %cst_67 = arith.constant dense<0.000000e+00> : vector<2x32xf32>
    %161 = tpu.matmul %155, %4, %cst_67 {dimension_numbers = #tpu.dot_dimension_numbers<[1], [0], [0], [1], [0, 0, 1, 1], [], []>} : vector<2x32xf32>, vector<32x32xf32>, vector<2x32xf32> -> vector<2x32xf32>
    %cst_68 = arith.constant dense<0.000000e+00> : vector<2x32xf32>
    %162 = tpu.matmul %155, %5, %cst_68 {dimension_numbers = #tpu.dot_dimension_numbers<[1], [0], [0], [1], [0, 0, 1, 1], [], []>} : vector<2x32xf32>, vector<32x32xf32>, vector<2x32xf32> -> vector<2x32xf32>
    %163 = vector.broadcast %6 : vector<1x32xf32> to vector<2x32xf32>
    %164 = arith.addf %162, %163 : vector<2x32xf32>
    %165 = arith.index_cast %c4_i32 : i32 to index
    %c0_69 = arith.constant 0 : index
    %c0_70 = arith.constant 0 : index
    %166 = vector.load %arg1[%165, %c0_69, %c0_70] : memref<8x2x32xf32, #tpu.memory_space<vmem>>, vector<1x2x32xf32>
    %167 = vector.shape_cast %166 : vector<1x2x32xf32> to vector<2x32xf32>
    %168 = arith.addf %167, %160 : vector<2x32xf32>
    %169 = arith.negf %168 : vector<2x32xf32>
    %170 = math.exp %169 : vector<2x32xf32>
    %cst_71 = arith.constant 1.000000e+00 : f32
    %171 = vector.broadcast %cst_71 : f32 to vector<2x32xf32>
    %172 = arith.addf %171, %170 : vector<2x32xf32>
    %173 = arith.divf %171, %172 : vector<2x32xf32>
    %174 = arith.index_cast %c4_i32 : i32 to index
    %c0_72 = arith.constant 0 : index
    %c0_73 = arith.constant 0 : index
    %175 = vector.load %arg2[%174, %c0_72, %c0_73] : memref<8x2x32xf32, #tpu.memory_space<vmem>>, vector<1x2x32xf32>
    %176 = vector.shape_cast %175 : vector<1x2x32xf32> to vector<2x32xf32>
    %177 = arith.addf %176, %161 : vector<2x32xf32>
    %178 = arith.negf %177 : vector<2x32xf32>
    %179 = math.exp %178 : vector<2x32xf32>
    %cst_74 = arith.constant 1.000000e+00 : f32
    %180 = vector.broadcast %cst_74 : f32 to vector<2x32xf32>
    %181 = arith.addf %180, %179 : vector<2x32xf32>
    %182 = arith.divf %180, %181 : vector<2x32xf32>
    %183 = arith.index_cast %c4_i32 : i32 to index
    %c0_75 = arith.constant 0 : index
    %c0_76 = arith.constant 0 : index
    %184 = vector.load %arg3[%183, %c0_75, %c0_76] : memref<8x2x32xf32, #tpu.memory_space<vmem>>, vector<1x2x32xf32>
    %185 = vector.shape_cast %184 : vector<1x2x32xf32> to vector<2x32xf32>
    %186 = arith.mulf %173, %164 : vector<2x32xf32>
    %187 = arith.addf %185, %186 : vector<2x32xf32>
    %188 = math.tanh %187 : vector<2x32xf32>
    %cst_77 = arith.constant 1.000000e+00 : f32
    %189 = vector.broadcast %cst_77 : f32 to vector<2x32xf32>
    %190 = arith.subf %189, %182 : vector<2x32xf32>
    %191 = arith.mulf %190, %188 : vector<2x32xf32>
    %192 = arith.mulf %182, %155 : vector<2x32xf32>
    %193 = arith.addf %191, %192 : vector<2x32xf32>
    %194 = arith.index_cast %c4_i32 : i32 to index
    %c0_78 = arith.constant 0 : index
    %c0_79 = arith.constant 0 : index
    %195 = vector.load %arg8[%194, %c0_78, %c0_79] : memref<8x2x32xf32, #tpu.memory_space<vmem>>, vector<1x2x32xf32>
    %196 = vector.shape_cast %195 : vector<1x2x32xf32> to vector<2x32xf32>
    %197 = vector.shape_cast %193 : vector<2x32xf32> to vector<1x2x32xf32>
    tpu.vector_store %arg8[%194, %c0_78, %c0_79], %197 {strides = array<i32>} : memref<8x2x32xf32, #tpu.memory_space<vmem>>, vector<1x2x32xf32>,
    %c5_i32 = arith.constant 5 : i32
    %cst_80 = arith.constant dense<0.000000e+00> : vector<2x32xf32>
    %198 = tpu.matmul %193, %3, %cst_80 {dimension_numbers = #tpu.dot_dimension_numbers<[1], [0], [0], [1], [0, 0, 1, 1], [], []>} : vector<2x32xf32>, vector<32x32xf32>, vector<2x32xf32> -> vector<2x32xf32>
    %cst_81 = arith.constant dense<0.000000e+00> : vector<2x32xf32>
    %199 = tpu.matmul %193, %4, %cst_81 {dimension_numbers = #tpu.dot_dimension_numbers<[1], [0], [0], [1], [0, 0, 1, 1], [], []>} : vector<2x32xf32>, vector<32x32xf32>, vector<2x32xf32> -> vector<2x32xf32>
    %cst_82 = arith.constant dense<0.000000e+00> : vector<2x32xf32>
    %200 = tpu.matmul %193, %5, %cst_82 {dimension_numbers = #tpu.dot_dimension_numbers<[1], [0], [0], [1], [0, 0, 1, 1], [], []>} : vector<2x32xf32>, vector<32x32xf32>, vector<2x32xf32> -> vector<2x32xf32>
    %201 = vector.broadcast %6 : vector<1x32xf32> to vector<2x32xf32>
    %202 = arith.addf %200, %201 : vector<2x32xf32>
    %203 = arith.index_cast %c5_i32 : i32 to index
    %c0_83 = arith.constant 0 : index
    %c0_84 = arith.constant 0 : index
    %204 = vector.load %arg1[%203, %c0_83, %c0_84] : memref<8x2x32xf32, #tpu.memory_space<vmem>>, vector<1x2x32xf32>
    %205 = vector.shape_cast %204 : vector<1x2x32xf32> to vector<2x32xf32>
    %206 = arith.addf %205, %198 : vector<2x32xf32>
    %207 = arith.negf %206 : vector<2x32xf32>
    %208 = math.exp %207 : vector<2x32xf32>
    %cst_85 = arith.constant 1.000000e+00 : f32
    %209 = vector.broadcast %cst_85 : f32 to vector<2x32xf32>
    %210 = arith.addf %209, %208 : vector<2x32xf32>
    %211 = arith.divf %209, %210 : vector<2x32xf32>
    %212 = arith.index_cast %c5_i32 : i32 to index
    %c0_86 = arith.constant 0 : index
    %c0_87 = arith.constant 0 : index
    %213 = vector.load %arg2[%212, %c0_86, %c0_87] : memref<8x2x32xf32, #tpu.memory_space<vmem>>, vector<1x2x32xf32>
    %214 = vector.shape_cast %213 : vector<1x2x32xf32> to vector<2x32xf32>
    %215 = arith.addf %214, %199 : vector<2x32xf32>
    %216 = arith.negf %215 : vector<2x32xf32>
    %217 = math.exp %216 : vector<2x32xf32>
    %cst_88 = arith.constant 1.000000e+00 : f32
    %218 = vector.broadcast %cst_88 : f32 to vector<2x32xf32>
    %219 = arith.addf %218, %217 : vector<2x32xf32>
    %220 = arith.divf %218, %219 : vector<2x32xf32>
    %221 = arith.index_cast %c5_i32 : i32 to index
    %c0_89 = arith.constant 0 : index
    %c0_90 = arith.constant 0 : index
    %222 = vector.load %arg3[%221, %c0_89, %c0_90] : memref<8x2x32xf32, #tpu.memory_space<vmem>>, vector<1x2x32xf32>
    %223 = vector.shape_cast %222 : vector<1x2x32xf32> to vector<2x32xf32>
    %224 = arith.mulf %211, %202 : vector<2x32xf32>
    %225 = arith.addf %223, %224 : vector<2x32xf32>
    %226 = math.tanh %225 : vector<2x32xf32>
    %cst_91 = arith.constant 1.000000e+00 : f32
    %227 = vector.broadcast %cst_91 : f32 to vector<2x32xf32>
    %228 = arith.subf %227, %220 : vector<2x32xf32>
    %229 = arith.mulf %228, %226 : vector<2x32xf32>
    %230 = arith.mulf %220, %193 : vector<2x32xf32>
    %231 = arith.addf %229, %230 : vector<2x32xf32>
    %232 = arith.index_cast %c5_i32 : i32 to index
    %c0_92 = arith.constant 0 : index
    %c0_93 = arith.constant 0 : index
    %233 = vector.load %arg8[%232, %c0_92, %c0_93] : memref<8x2x32xf32, #tpu.memory_space<vmem>>, vector<1x2x32xf32>
    %234 = vector.shape_cast %233 : vector<1x2x32xf32> to vector<2x32xf32>
    %235 = vector.shape_cast %231 : vector<2x32xf32> to vector<1x2x32xf32>
    tpu.vector_store %arg8[%232, %c0_92, %c0_93], %235 {strides = array<i32>} : memref<8x2x32xf32, #tpu.memory_space<vmem>>, vector<1x2x32xf32>,
    %c6_i32 = arith.constant 6 : i32
    %cst_94 = arith.constant dense<0.000000e+00> : vector<2x32xf32>
    %236 = tpu.matmul %231, %3, %cst_94 {dimension_numbers = #tpu.dot_dimension_numbers<[1], [0], [0], [1], [0, 0, 1, 1], [], []>} : vector<2x32xf32>, vector<32x32xf32>, vector<2x32xf32> -> vector<2x32xf32>
    %cst_95 = arith.constant dense<0.000000e+00> : vector<2x32xf32>
    %237 = tpu.matmul %231, %4, %cst_95 {dimension_numbers = #tpu.dot_dimension_numbers<[1], [0], [0], [1], [0, 0, 1, 1], [], []>} : vector<2x32xf32>, vector<32x32xf32>, vector<2x32xf32> -> vector<2x32xf32>
    %cst_96 = arith.constant dense<0.000000e+00> : vector<2x32xf32>
    %238 = tpu.matmul %231, %5, %cst_96 {dimension_numbers = #tpu.dot_dimension_numbers<[1], [0], [0], [1], [0, 0, 1, 1], [], []>} : vector<2x32xf32>, vector<32x32xf32>, vector<2x32xf32> -> vector<2x32xf32>
    %239 = vector.broadcast %6 : vector<1x32xf32> to vector<2x32xf32>
    %240 = arith.addf %238, %239 : vector<2x32xf32>
    %241 = arith.index_cast %c6_i32 : i32 to index
    %c0_97 = arith.constant 0 : index
    %c0_98 = arith.constant 0 : index
    %242 = vector.load %arg1[%241, %c0_97, %c0_98] : memref<8x2x32xf32, #tpu.memory_space<vmem>>, vector<1x2x32xf32>
    %243 = vector.shape_cast %242 : vector<1x2x32xf32> to vector<2x32xf32>
    %244 = arith.addf %243, %236 : vector<2x32xf32>
    %245 = arith.negf %244 : vector<2x32xf32>
    %246 = math.exp %245 : vector<2x32xf32>
    %cst_99 = arith.constant 1.000000e+00 : f32
    %247 = vector.broadcast %cst_99 : f32 to vector<2x32xf32>
    %248 = arith.addf %247, %246 : vector<2x32xf32>
    %249 = arith.divf %247, %248 : vector<2x32xf32>
    %250 = arith.index_cast %c6_i32 : i32 to index
    %c0_100 = arith.constant 0 : index
    %c0_101 = arith.constant 0 : index
    %251 = vector.load %arg2[%250, %c0_100, %c0_101] : memref<8x2x32xf32, #tpu.memory_space<vmem>>, vector<1x2x32xf32>
    %252 = vector.shape_cast %251 : vector<1x2x32xf32> to vector<2x32xf32>
    %253 = arith.addf %252, %237 : vector<2x32xf32>
    %254 = arith.negf %253 : vector<2x32xf32>
    %255 = math.exp %254 : vector<2x32xf32>
    %cst_102 = arith.constant 1.000000e+00 : f32
    %256 = vector.broadcast %cst_102 : f32 to vector<2x32xf32>
    %257 = arith.addf %256, %255 : vector<2x32xf32>
    %258 = arith.divf %256, %257 : vector<2x32xf32>
    %259 = arith.index_cast %c6_i32 : i32 to index
    %c0_103 = arith.constant 0 : index
    %c0_104 = arith.constant 0 : index
    %260 = vector.load %arg3[%259, %c0_103, %c0_104] : memref<8x2x32xf32, #tpu.memory_space<vmem>>, vector<1x2x32xf32>
    %261 = vector.shape_cast %260 : vector<1x2x32xf32> to vector<2x32xf32>
    %262 = arith.mulf %249, %240 : vector<2x32xf32>
    %263 = arith.addf %261, %262 : vector<2x32xf32>
    %264 = math.tanh %263 : vector<2x32xf32>
    %cst_105 = arith.constant 1.000000e+00 : f32
    %265 = vector.broadcast %cst_105 : f32 to vector<2x32xf32>
    %266 = arith.subf %265, %258 : vector<2x32xf32>
    %267 = arith.mulf %266, %264 : vector<2x32xf32>
    %268 = arith.mulf %258, %231 : vector<2x32xf32>
    %269 = arith.addf %267, %268 : vector<2x32xf32>
    %270 = arith.index_cast %c6_i32 : i32 to index
    %c0_106 = arith.constant 0 : index
    %c0_107 = arith.constant 0 : index
    %271 = vector.load %arg8[%270, %c0_106, %c0_107] : memref<8x2x32xf32, #tpu.memory_space<vmem>>, vector<1x2x32xf32>
    %272 = vector.shape_cast %271 : vector<1x2x32xf32> to vector<2x32xf32>
    %273 = vector.shape_cast %269 : vector<2x32xf32> to vector<1x2x32xf32>
    tpu.vector_store %arg8[%270, %c0_106, %c0_107], %273 {strides = array<i32>} : memref<8x2x32xf32, #tpu.memory_space<vmem>>, vector<1x2x32xf32>,
    %c7_i32 = arith.constant 7 : i32
    %cst_108 = arith.constant dense<0.000000e+00> : vector<2x32xf32>
    %274 = tpu.matmul %269, %3, %cst_108 {dimension_numbers = #tpu.dot_dimension_numbers<[1], [0], [0], [1], [0, 0, 1, 1], [], []>} : vector<2x32xf32>, vector<32x32xf32>, vector<2x32xf32> -> vector<2x32xf32>
    %cst_109 = arith.constant dense<0.000000e+00> : vector<2x32xf32>
    %275 = tpu.matmul %269, %4, %cst_109 {dimension_numbers = #tpu.dot_dimension_numbers<[1], [0], [0], [1], [0, 0, 1, 1], [], []>} : vector<2x32xf32>, vector<32x32xf32>, vector<2x32xf32> -> vector<2x32xf32>
    %cst_110 = arith.constant dense<0.000000e+00> : vector<2x32xf32>
    %276 = tpu.matmul %269, %5, %cst_110 {dimension_numbers = #tpu.dot_dimension_numbers<[1], [0], [0], [1], [0, 0, 1, 1], [], []>} : vector<2x32xf32>, vector<32x32xf32>, vector<2x32xf32> -> vector<2x32xf32>
    %277 = vector.broadcast %6 : vector<1x32xf32> to vector<2x32xf32>
    %278 = arith.addf %276, %277 : vector<2x32xf32>
    %279 = arith.index_cast %c7_i32 : i32 to index
    %c0_111 = arith.constant 0 : index
    %c0_112 = arith.constant 0 : index
    %280 = vector.load %arg1[%279, %c0_111, %c0_112] : memref<8x2x32xf32, #tpu.memory_space<vmem>>, vector<1x2x32xf32>
    %281 = vector.shape_cast %280 : vector<1x2x32xf32> to vector<2x32xf32>
    %282 = arith.addf %281, %274 : vector<2x32xf32>
    %283 = arith.negf %282 : vector<2x32xf32>
    %284 = math.exp %283 : vector<2x32xf32>
    %cst_113 = arith.constant 1.000000e+00 : f32
    %285 = vector.broadcast %cst_113 : f32 to vector<2x32xf32>
    %286 = arith.addf %285, %284 : vector<2x32xf32>
    %287 = arith.divf %285, %286 : vector<2x32xf32>
    %288 = arith.index_cast %c7_i32 : i32 to index
    %c0_114 = arith.constant 0 : index
    %c0_115 = arith.constant 0 : index
    %289 = vector.load %arg2[%288, %c0_114, %c0_115] : memref<8x2x32xf32, #tpu.memory_space<vmem>>, vector<1x2x32xf32>
    %290 = vector.shape_cast %289 : vector<1x2x32xf32> to vector<2x32xf32>
    %291 = arith.addf %290, %275 : vector<2x32xf32>
    %292 = arith.negf %291 : vector<2x32xf32>
    %293 = math.exp %292 : vector<2x32xf32>
    %cst_116 = arith.constant 1.000000e+00 : f32
    %294 = vector.broadcast %cst_116 : f32 to vector<2x32xf32>
    %295 = arith.addf %294, %293 : vector<2x32xf32>
    %296 = arith.divf %294, %295 : vector<2x32xf32>
    %297 = arith.index_cast %c7_i32 : i32 to index
    %c0_117 = arith.constant 0 : index
    %c0_118 = arith.constant 0 : index
    %298 = vector.load %arg3[%297, %c0_117, %c0_118] : memref<8x2x32xf32, #tpu.memory_space<vmem>>, vector<1x2x32xf32>
    %299 = vector.shape_cast %298 : vector<1x2x32xf32> to vector<2x32xf32>
    %300 = arith.mulf %287, %278 : vector<2x32xf32>
    %301 = arith.addf %299, %300 : vector<2x32xf32>
    %302 = math.tanh %301 : vector<2x32xf32>
    %cst_119 = arith.constant 1.000000e+00 : f32
    %303 = vector.broadcast %cst_119 : f32 to vector<2x32xf32>
    %304 = arith.subf %303, %296 : vector<2x32xf32>
    %305 = arith.mulf %304, %302 : vector<2x32xf32>
    %306 = arith.mulf %296, %269 : vector<2x32xf32>
    %307 = arith.addf %305, %306 : vector<2x32xf32>
    %308 = arith.index_cast %c7_i32 : i32 to index
    %c0_120 = arith.constant 0 : index
    %c0_121 = arith.constant 0 : index
    %309 = vector.load %arg8[%308, %c0_120, %c0_121] : memref<8x2x32xf32, #tpu.memory_space<vmem>>, vector<1x2x32xf32>
    %310 = vector.shape_cast %309 : vector<1x2x32xf32> to vector<2x32xf32>
    %311 = vector.shape_cast %307 : vector<2x32xf32> to vector<1x2x32xf32>
    tpu.vector_store %arg8[%308, %c0_120, %c0_121], %311 {strides = array<i32>} : memref<8x2x32xf32, #tpu.memory_space<vmem>>, vector<1x2x32xf32>,
    %c8_i32 = arith.constant 8 : i32
    %c0_122 = arith.constant 0 : index
    %c0_123 = arith.constant 0 : index
    %312 = vector.load %arg9[%c0_122, %c0_123] : memref<2x32xf32, #tpu.memory_space<vmem>>, vector<2x32xf32>
    tpu.vector_store %arg9[%c0_122, %c0_123], %307 {strides = array<i32>} : memref<2x32xf32, #tpu.memory_space<vmem>>, vector<2x32xf32>,
    return
  }
  func.func @transform_0(%arg0: i32) -> (i32, i32, i32) {
    %c0_i32 = arith.constant 0 : i32
    %c0_i32_0 = arith.constant 0 : i32
    %c0_i32_1 = arith.constant 0 : i32
    return %arg0, %c0_i32, %c0_i32_0 : i32, i32, i32
  }
  func.func @transform_1(%arg0: i32) -> (i32, i32, i32) {
    %c0_i32 = arith.constant 0 : i32
    %c0_i32_0 = arith.constant 0 : i32
    %c0_i32_1 = arith.constant 0 : i32
    return %arg0, %c0_i32, %c0_i32_0 : i32, i32, i32
  }
  func.func @transform_2(%arg0: i32) -> (i32, i32, i32) {
    %c0_i32 = arith.constant 0 : i32
    %c0_i32_0 = arith.constant 0 : i32
    %c0_i32_1 = arith.constant 0 : i32
    return %arg0, %c0_i32, %c0_i32_0 : i32, i32, i32
  }
  func.func @transform_3(%arg0: i32) -> (i32, i32) {
    %c0_i32 = arith.constant 0 : i32
    %c0_i32_0 = arith.constant 0 : i32
    %c0_i32_1 = arith.constant 0 : i32
    return %c0_i32, %c0_i32_0 : i32, i32
  }
  func.func @transform_4(%arg0: i32) -> (i32, i32) {
    %c0_i32 = arith.constant 0 : i32
    %c0_i32_0 = arith.constant 0 : i32
    %c0_i32_1 = arith.constant 0 : i32
    return %c0_i32, %c0_i32_0 : i32, i32
  }
  func.func @transform_5(%arg0: i32) -> (i32, i32) {
    %c0_i32 = arith.constant 0 : i32
    %c0_i32_0 = arith.constant 0 : i32
    %c0_i32_1 = arith.constant 0 : i32
    return %c0_i32, %c0_i32_0 : i32, i32
  }
  func.func @transform_6(%arg0: i32) -> (i32, i32) {
    %c0_i32 = arith.constant 0 : i32
    %c0_i32_0 = arith.constant 0 : i32
    %c0_i32_1 = arith.constant 0 : i32
    return %c0_i32, %c0_i32_0 : i32, i32
  }
  func.func @transform_7(%arg0: i32) -> (i32, i32, i32) {
    %c0_i32 = arith.constant 0 : i32
    %c0_i32_0 = arith.constant 0 : i32
    %c0_i32_1 = arith.constant 0 : i32
    return %arg0, %c0_i32, %c0_i32_0 : i32, i32, i32
  }
}

module attributes {stable_mosaic.version = 11 : i64} {
  func.func @decoder_kernel(%arg0: i32, %arg1: memref<8x2x32xf32, #tpu.memory_space<vmem>>, %arg2: memref<8x2x32xf32, #tpu.memory_space<vmem>>, %arg3: memref<8x2x32xf32, #tpu.memory_space<vmem>>, %arg4: memref<2x8x32xf32, #tpu.memory_space<vmem>>, %arg5: memref<2x32xf32, #tpu.memory_space<vmem>>, %arg6: memref<32x32xf32, #tpu.memory_space<vmem>>, %arg7: memref<32x32xf32, #tpu.memory_space<vmem>>, %arg8: memref<32x32xf32, #tpu.memory_space<vmem>>, %arg9: memref<1x32xf32, #tpu.memory_space<vmem>>, %arg10: memref<32x32xf32, #tpu.memory_space<vmem>>, %arg11: memref<32x32xf32, #tpu.memory_space<vmem>>, %arg12: memref<1x32xf32, #tpu.memory_space<vmem>>, %arg13: memref<8x2x32xf32, #tpu.memory_space<vmem>>, %arg14: memref<2x32xf32, #tpu.memory_space<vmem>>) attributes {dimension_semantics = [#tpu.dimension_semantics<arbitrary>], iteration_bounds = array<i64: 1>, scalar_prefetch = 0 : i64, scratch_operands = 1 : i64, tpu.core_type = #tpu.core_type<tc>, window_params = [{transform_indices = @transform_0, window_bounds = array<i64: 8, 2, 32>}, {transform_indices = @transform_1, window_bounds = array<i64: 8, 2, 32>}, {transform_indices = @transform_2, window_bounds = array<i64: 8, 2, 32>}, {pipeline_mode = #tpu.pipeline_mode<synchronous>, transform_indices = @transform_3, window_bounds = array<i64: 2, 8, 32>}, {pipeline_mode = #tpu.pipeline_mode<synchronous>, transform_indices = @transform_4, window_bounds = array<i64: 2, 32>}, {pipeline_mode = #tpu.pipeline_mode<synchronous>, transform_indices = @transform_5, window_bounds = array<i64: 32, 32>}, {pipeline_mode = #tpu.pipeline_mode<synchronous>, transform_indices = @transform_6, window_bounds = array<i64: 32, 32>}, {pipeline_mode = #tpu.pipeline_mode<synchronous>, transform_indices = @transform_7, window_bounds = array<i64: 32, 32>}, {pipeline_mode = #tpu.pipeline_mode<synchronous>, transform_indices = @transform_8, window_bounds = array<i64: 1, 32>}, {pipeline_mode = #tpu.pipeline_mode<synchronous>, transform_indices = @transform_9, window_bounds = array<i64: 32, 32>}, {pipeline_mode = #tpu.pipeline_mode<synchronous>, transform_indices = @transform_10, window_bounds = array<i64: 32, 32>}, {pipeline_mode = #tpu.pipeline_mode<synchronous>, transform_indices = @transform_11, window_bounds = array<i64: 1, 32>}, {transform_indices = @transform_12, window_bounds = array<i64: 8, 2, 32>}]} {
    %c0_i32 = arith.constant 0 : i32
    %0 = arith.cmpi eq, %arg0, %c0_i32 : i32
    %1 = arith.extui %0 : i1 to i32
    %c0_i32_0 = arith.constant 0 : i32
    %2 = arith.cmpi ne, %1, %c0_i32_0 : i32
    scf.if %2 {
      %c0_181 = arith.constant 0 : index
      %c0_182 = arith.constant 0 : index
      %509 = vector.load %arg5[%c0_181, %c0_182] : memref<2x32xf32, #tpu.memory_space<vmem>>, vector<2x32xf32>
      %c0_183 = arith.constant 0 : index
      %c0_184 = arith.constant 0 : index
      %510 = vector.load %arg14[%c0_183, %c0_184] : memref<2x32xf32, #tpu.memory_space<vmem>>, vector<2x32xf32>
      tpu.vector_store %arg14[%c0_183, %c0_184], %509 {strides = array<i32>} : memref<2x32xf32, #tpu.memory_space<vmem>>, vector<2x32xf32>,
    } else {
    }
    %c0 = arith.constant 0 : index
    %c0_1 = arith.constant 0 : index
    %c0_2 = arith.constant 0 : index
    %3 = vector.load %arg4[%c0, %c0_1, %c0_2] : memref<2x8x32xf32, #tpu.memory_space<vmem>>, vector<2x8x32xf32>
    %c0_3 = arith.constant 0 : index
    %c0_4 = arith.constant 0 : index
    %4 = vector.load %arg6[%c0_3, %c0_4] : memref<32x32xf32, #tpu.memory_space<vmem>>, vector<32x32xf32>
    %c0_5 = arith.constant 0 : index
    %c0_6 = arith.constant 0 : index
    %5 = vector.load %arg7[%c0_5, %c0_6] : memref<32x32xf32, #tpu.memory_space<vmem>>, vector<32x32xf32>
    %c0_7 = arith.constant 0 : index
    %c0_8 = arith.constant 0 : index
    %6 = vector.load %arg8[%c0_7, %c0_8] : memref<32x32xf32, #tpu.memory_space<vmem>>, vector<32x32xf32>
    %c0_9 = arith.constant 0 : index
    %c0_10 = arith.constant 0 : index
    %7 = vector.load %arg9[%c0_9, %c0_10] : memref<1x32xf32, #tpu.memory_space<vmem>>, vector<1x32xf32>
    %c0_11 = arith.constant 0 : index
    %c0_12 = arith.constant 0 : index
    %8 = vector.load %arg10[%c0_11, %c0_12] : memref<32x32xf32, #tpu.memory_space<vmem>>, vector<32x32xf32>
    %c0_13 = arith.constant 0 : index
    %c0_14 = arith.constant 0 : index
    %9 = vector.load %arg11[%c0_13, %c0_14] : memref<32x32xf32, #tpu.memory_space<vmem>>, vector<32x32xf32>
    %c0_15 = arith.constant 0 : index
    %c0_16 = arith.constant 0 : index
    %10 = vector.load %arg12[%c0_15, %c0_16] : memref<1x32xf32, #tpu.memory_space<vmem>>, vector<1x32xf32>
    %c0_17 = arith.constant 0 : index
    %c0_18 = arith.constant 0 : index
    %11 = vector.load %arg14[%c0_17, %c0_18] : memref<2x32xf32, #tpu.memory_space<vmem>>, vector<2x32xf32>
    %c0_i32_19 = arith.constant 0 : i32
    %cst = arith.constant dense<0.000000e+00> : vector<2x32xf32>
    %12 = tpu.matmul %11, %4, %cst {dimension_numbers = #tpu.dot_dimension_numbers<[1], [0], [0], [1], [0, 0, 1, 1], [], []>} : vector<2x32xf32>, vector<32x32xf32>, vector<2x32xf32> -> vector<2x32xf32>
    %cst_20 = arith.constant dense<0.000000e+00> : vector<2x32xf32>
    %13 = tpu.matmul %11, %5, %cst_20 {dimension_numbers = #tpu.dot_dimension_numbers<[1], [0], [0], [1], [0, 0, 1, 1], [], []>} : vector<2x32xf32>, vector<32x32xf32>, vector<2x32xf32> -> vector<2x32xf32>
    %cst_21 = arith.constant dense<0.000000e+00> : vector<2x32xf32>
    %14 = tpu.matmul %11, %6, %cst_21 {dimension_numbers = #tpu.dot_dimension_numbers<[1], [0], [0], [1], [0, 0, 1, 1], [], []>} : vector<2x32xf32>, vector<32x32xf32>, vector<2x32xf32> -> vector<2x32xf32>
    %15 = vector.broadcast %7 : vector<1x32xf32> to vector<2x32xf32>
    %16 = arith.addf %14, %15 : vector<2x32xf32>
    %17 = arith.index_cast %c0_i32_19 : i32 to index
    %c0_22 = arith.constant 0 : index
    %c0_23 = arith.constant 0 : index
    %18 = vector.load %arg1[%17, %c0_22, %c0_23] : memref<8x2x32xf32, #tpu.memory_space<vmem>>, vector<1x2x32xf32>
    %19 = vector.shape_cast %18 : vector<1x2x32xf32> to vector<2x32xf32>
    %20 = arith.addf %19, %12 : vector<2x32xf32>
    %21 = arith.negf %20 : vector<2x32xf32>
    %22 = math.exp %21 : vector<2x32xf32>
    %cst_24 = arith.constant 1.000000e+00 : f32
    %23 = vector.broadcast %cst_24 : f32 to vector<2x32xf32>
    %24 = arith.addf %23, %22 : vector<2x32xf32>
    %25 = arith.divf %23, %24 : vector<2x32xf32>
    %26 = arith.index_cast %c0_i32_19 : i32 to index
    %c0_25 = arith.constant 0 : index
    %c0_26 = arith.constant 0 : index
    %27 = vector.load %arg2[%26, %c0_25, %c0_26] : memref<8x2x32xf32, #tpu.memory_space<vmem>>, vector<1x2x32xf32>
    %28 = vector.shape_cast %27 : vector<1x2x32xf32> to vector<2x32xf32>
    %29 = arith.addf %28, %13 : vector<2x32xf32>
    %30 = arith.negf %29 : vector<2x32xf32>
    %31 = math.exp %30 : vector<2x32xf32>
    %cst_27 = arith.constant 1.000000e+00 : f32
    %32 = vector.broadcast %cst_27 : f32 to vector<2x32xf32>
    %33 = arith.addf %32, %31 : vector<2x32xf32>
    %34 = arith.divf %32, %33 : vector<2x32xf32>
    %35 = arith.index_cast %c0_i32_19 : i32 to index
    %c0_28 = arith.constant 0 : index
    %c0_29 = arith.constant 0 : index
    %36 = vector.load %arg3[%35, %c0_28, %c0_29] : memref<8x2x32xf32, #tpu.memory_space<vmem>>, vector<1x2x32xf32>
    %37 = vector.shape_cast %36 : vector<1x2x32xf32> to vector<2x32xf32>
    %38 = arith.mulf %25, %16 : vector<2x32xf32>
    %39 = arith.addf %37, %38 : vector<2x32xf32>
    %40 = math.tanh %39 : vector<2x32xf32>
    %cst_30 = arith.constant 1.000000e+00 : f32
    %41 = vector.broadcast %cst_30 : f32 to vector<2x32xf32>
    %42 = arith.subf %41, %34 : vector<2x32xf32>
    %43 = arith.mulf %42, %40 : vector<2x32xf32>
    %44 = arith.mulf %34, %11 : vector<2x32xf32>
    %45 = arith.addf %43, %44 : vector<2x32xf32>
    %46 = vector.shape_cast %45 : vector<2x32xf32> to vector<2x1x32xf32>
    %47 = vector.broadcast %46 : vector<2x1x32xf32> to vector<2x8x32xf32>
    %48 = arith.mulf %47, %3 : vector<2x8x32xf32>
    %cst_31 = arith.constant dense<0.000000e+00> : vector<2x8xf32>
    %49 = vector.multi_reduction <add>, %48, %cst_31 [2] : vector<2x8x32xf32> to vector<2x8xf32>
    %cst_32 = arith.constant dense<0xFF800000> : vector<2xf32>
    %50 = vector.multi_reduction <maximumf>, %49, %cst_32 [1] : vector<2x8xf32> to vector<2xf32>
    %51 = vector.shape_cast %50 : vector<2xf32> to vector<2x1xf32>
    %52 = vector.broadcast %51 : vector<2x1xf32> to vector<2x8xf32>
    %53 = arith.subf %49, %52 : vector<2x8xf32>
    %54 = math.exp %53 : vector<2x8xf32>
    %cst_33 = arith.constant dense<0.000000e+00> : vector<2xf32>
    %55 = vector.multi_reduction <add>, %54, %cst_33 [1] : vector<2x8xf32> to vector<2xf32>
    %56 = vector.shape_cast %55 : vector<2xf32> to vector<2x1xf32>
    %57 = tpu.reciprocal %56 {approx = true} : vector<2x1xf32> -> vector<2x1xf32>
    %58 = vector.broadcast %57 : vector<2x1xf32> to vector<2x8xf32>
    %59 = arith.mulf %54, %58 : vector<2x8xf32>
    %60 = vector.shape_cast %59 : vector<2x8xf32> to vector<2x8x1xf32>
    %61 = vector.broadcast %60 : vector<2x8x1xf32> to vector<2x8x32xf32>
    %62 = arith.mulf %61, %3 : vector<2x8x32xf32>
    %cst_34 = arith.constant dense<0.000000e+00> : vector<2x32xf32>
    %63 = vector.multi_reduction <add>, %62, %cst_34 [1] : vector<2x8x32xf32> to vector<2x32xf32>
    %cst_35 = arith.constant dense<0.000000e+00> : vector<2x32xf32>
    %64 = tpu.matmul %63, %8, %cst_35 {dimension_numbers = #tpu.dot_dimension_numbers<[1], [0], [0], [1], [0, 0, 1, 1], [], []>} : vector<2x32xf32>, vector<32x32xf32>, vector<2x32xf32> -> vector<2x32xf32>
    %cst_36 = arith.constant dense<0.000000e+00> : vector<2x32xf32>
    %65 = tpu.matmul %45, %9, %cst_36 {dimension_numbers = #tpu.dot_dimension_numbers<[1], [0], [0], [1], [0, 0, 1, 1], [], []>} : vector<2x32xf32>, vector<32x32xf32>, vector<2x32xf32> -> vector<2x32xf32>
    %66 = arith.addf %64, %65 : vector<2x32xf32>
    %67 = vector.broadcast %10 : vector<1x32xf32> to vector<2x32xf32>
    %68 = arith.addf %66, %67 : vector<2x32xf32>
    %69 = math.tanh %68 : vector<2x32xf32>
    %70 = arith.index_cast %c0_i32_19 : i32 to index
    %c0_37 = arith.constant 0 : index
    %c0_38 = arith.constant 0 : index
    %71 = vector.load %arg13[%70, %c0_37, %c0_38] : memref<8x2x32xf32, #tpu.memory_space<vmem>>, vector<1x2x32xf32>
    %72 = vector.shape_cast %71 : vector<1x2x32xf32> to vector<2x32xf32>
    %73 = vector.shape_cast %69 : vector<2x32xf32> to vector<1x2x32xf32>
    tpu.vector_store %arg13[%70, %c0_37, %c0_38], %73 {strides = array<i32>} : memref<8x2x32xf32, #tpu.memory_space<vmem>>, vector<1x2x32xf32>,
    %c1_i32 = arith.constant 1 : i32
    %cst_39 = arith.constant dense<0.000000e+00> : vector<2x32xf32>
    %74 = tpu.matmul %45, %4, %cst_39 {dimension_numbers = #tpu.dot_dimension_numbers<[1], [0], [0], [1], [0, 0, 1, 1], [], []>} : vector<2x32xf32>, vector<32x32xf32>, vector<2x32xf32> -> vector<2x32xf32>
    %cst_40 = arith.constant dense<0.000000e+00> : vector<2x32xf32>
    %75 = tpu.matmul %45, %5, %cst_40 {dimension_numbers = #tpu.dot_dimension_numbers<[1], [0], [0], [1], [0, 0, 1, 1], [], []>} : vector<2x32xf32>, vector<32x32xf32>, vector<2x32xf32> -> vector<2x32xf32>
    %cst_41 = arith.constant dense<0.000000e+00> : vector<2x32xf32>
    %76 = tpu.matmul %45, %6, %cst_41 {dimension_numbers = #tpu.dot_dimension_numbers<[1], [0], [0], [1], [0, 0, 1, 1], [], []>} : vector<2x32xf32>, vector<32x32xf32>, vector<2x32xf32> -> vector<2x32xf32>
    %77 = vector.broadcast %7 : vector<1x32xf32> to vector<2x32xf32>
    %78 = arith.addf %76, %77 : vector<2x32xf32>
    %79 = arith.index_cast %c1_i32 : i32 to index
    %c0_42 = arith.constant 0 : index
    %c0_43 = arith.constant 0 : index
    %80 = vector.load %arg1[%79, %c0_42, %c0_43] : memref<8x2x32xf32, #tpu.memory_space<vmem>>, vector<1x2x32xf32>
    %81 = vector.shape_cast %80 : vector<1x2x32xf32> to vector<2x32xf32>
    %82 = arith.addf %81, %74 : vector<2x32xf32>
    %83 = arith.negf %82 : vector<2x32xf32>
    %84 = math.exp %83 : vector<2x32xf32>
    %cst_44 = arith.constant 1.000000e+00 : f32
    %85 = vector.broadcast %cst_44 : f32 to vector<2x32xf32>
    %86 = arith.addf %85, %84 : vector<2x32xf32>
    %87 = arith.divf %85, %86 : vector<2x32xf32>
    %88 = arith.index_cast %c1_i32 : i32 to index
    %c0_45 = arith.constant 0 : index
    %c0_46 = arith.constant 0 : index
    %89 = vector.load %arg2[%88, %c0_45, %c0_46] : memref<8x2x32xf32, #tpu.memory_space<vmem>>, vector<1x2x32xf32>
    %90 = vector.shape_cast %89 : vector<1x2x32xf32> to vector<2x32xf32>
    %91 = arith.addf %90, %75 : vector<2x32xf32>
    %92 = arith.negf %91 : vector<2x32xf32>
    %93 = math.exp %92 : vector<2x32xf32>
    %cst_47 = arith.constant 1.000000e+00 : f32
    %94 = vector.broadcast %cst_47 : f32 to vector<2x32xf32>
    %95 = arith.addf %94, %93 : vector<2x32xf32>
    %96 = arith.divf %94, %95 : vector<2x32xf32>
    %97 = arith.index_cast %c1_i32 : i32 to index
    %c0_48 = arith.constant 0 : index
    %c0_49 = arith.constant 0 : index
    %98 = vector.load %arg3[%97, %c0_48, %c0_49] : memref<8x2x32xf32, #tpu.memory_space<vmem>>, vector<1x2x32xf32>
    %99 = vector.shape_cast %98 : vector<1x2x32xf32> to vector<2x32xf32>
    %100 = arith.mulf %87, %78 : vector<2x32xf32>
    %101 = arith.addf %99, %100 : vector<2x32xf32>
    %102 = math.tanh %101 : vector<2x32xf32>
    %cst_50 = arith.constant 1.000000e+00 : f32
    %103 = vector.broadcast %cst_50 : f32 to vector<2x32xf32>
    %104 = arith.subf %103, %96 : vector<2x32xf32>
    %105 = arith.mulf %104, %102 : vector<2x32xf32>
    %106 = arith.mulf %96, %45 : vector<2x32xf32>
    %107 = arith.addf %105, %106 : vector<2x32xf32>
    %108 = vector.shape_cast %107 : vector<2x32xf32> to vector<2x1x32xf32>
    %109 = vector.broadcast %108 : vector<2x1x32xf32> to vector<2x8x32xf32>
    %110 = arith.mulf %109, %3 : vector<2x8x32xf32>
    %cst_51 = arith.constant dense<0.000000e+00> : vector<2x8xf32>
    %111 = vector.multi_reduction <add>, %110, %cst_51 [2] : vector<2x8x32xf32> to vector<2x8xf32>
    %cst_52 = arith.constant dense<0xFF800000> : vector<2xf32>
    %112 = vector.multi_reduction <maximumf>, %111, %cst_52 [1] : vector<2x8xf32> to vector<2xf32>
    %113 = vector.shape_cast %112 : vector<2xf32> to vector<2x1xf32>
    %114 = vector.broadcast %113 : vector<2x1xf32> to vector<2x8xf32>
    %115 = arith.subf %111, %114 : vector<2x8xf32>
    %116 = math.exp %115 : vector<2x8xf32>
    %cst_53 = arith.constant dense<0.000000e+00> : vector<2xf32>
    %117 = vector.multi_reduction <add>, %116, %cst_53 [1] : vector<2x8xf32> to vector<2xf32>
    %118 = vector.shape_cast %117 : vector<2xf32> to vector<2x1xf32>
    %119 = tpu.reciprocal %118 {approx = true} : vector<2x1xf32> -> vector<2x1xf32>
    %120 = vector.broadcast %119 : vector<2x1xf32> to vector<2x8xf32>
    %121 = arith.mulf %116, %120 : vector<2x8xf32>
    %122 = vector.shape_cast %121 : vector<2x8xf32> to vector<2x8x1xf32>
    %123 = vector.broadcast %122 : vector<2x8x1xf32> to vector<2x8x32xf32>
    %124 = arith.mulf %123, %3 : vector<2x8x32xf32>
    %cst_54 = arith.constant dense<0.000000e+00> : vector<2x32xf32>
    %125 = vector.multi_reduction <add>, %124, %cst_54 [1] : vector<2x8x32xf32> to vector<2x32xf32>
    %cst_55 = arith.constant dense<0.000000e+00> : vector<2x32xf32>
    %126 = tpu.matmul %125, %8, %cst_55 {dimension_numbers = #tpu.dot_dimension_numbers<[1], [0], [0], [1], [0, 0, 1, 1], [], []>} : vector<2x32xf32>, vector<32x32xf32>, vector<2x32xf32> -> vector<2x32xf32>
    %cst_56 = arith.constant dense<0.000000e+00> : vector<2x32xf32>
    %127 = tpu.matmul %107, %9, %cst_56 {dimension_numbers = #tpu.dot_dimension_numbers<[1], [0], [0], [1], [0, 0, 1, 1], [], []>} : vector<2x32xf32>, vector<32x32xf32>, vector<2x32xf32> -> vector<2x32xf32>
    %128 = arith.addf %126, %127 : vector<2x32xf32>
    %129 = vector.broadcast %10 : vector<1x32xf32> to vector<2x32xf32>
    %130 = arith.addf %128, %129 : vector<2x32xf32>
    %131 = math.tanh %130 : vector<2x32xf32>
    %132 = arith.index_cast %c1_i32 : i32 to index
    %c0_57 = arith.constant 0 : index
    %c0_58 = arith.constant 0 : index
    %133 = vector.load %arg13[%132, %c0_57, %c0_58] : memref<8x2x32xf32, #tpu.memory_space<vmem>>, vector<1x2x32xf32>
    %134 = vector.shape_cast %133 : vector<1x2x32xf32> to vector<2x32xf32>
    %135 = vector.shape_cast %131 : vector<2x32xf32> to vector<1x2x32xf32>
    tpu.vector_store %arg13[%132, %c0_57, %c0_58], %135 {strides = array<i32>} : memref<8x2x32xf32, #tpu.memory_space<vmem>>, vector<1x2x32xf32>,
    %c2_i32 = arith.constant 2 : i32
    %cst_59 = arith.constant dense<0.000000e+00> : vector<2x32xf32>
    %136 = tpu.matmul %107, %4, %cst_59 {dimension_numbers = #tpu.dot_dimension_numbers<[1], [0], [0], [1], [0, 0, 1, 1], [], []>} : vector<2x32xf32>, vector<32x32xf32>, vector<2x32xf32> -> vector<2x32xf32>
    %cst_60 = arith.constant dense<0.000000e+00> : vector<2x32xf32>
    %137 = tpu.matmul %107, %5, %cst_60 {dimension_numbers = #tpu.dot_dimension_numbers<[1], [0], [0], [1], [0, 0, 1, 1], [], []>} : vector<2x32xf32>, vector<32x32xf32>, vector<2x32xf32> -> vector<2x32xf32>
    %cst_61 = arith.constant dense<0.000000e+00> : vector<2x32xf32>
    %138 = tpu.matmul %107, %6, %cst_61 {dimension_numbers = #tpu.dot_dimension_numbers<[1], [0], [0], [1], [0, 0, 1, 1], [], []>} : vector<2x32xf32>, vector<32x32xf32>, vector<2x32xf32> -> vector<2x32xf32>
    %139 = vector.broadcast %7 : vector<1x32xf32> to vector<2x32xf32>
    %140 = arith.addf %138, %139 : vector<2x32xf32>
    %141 = arith.index_cast %c2_i32 : i32 to index
    %c0_62 = arith.constant 0 : index
    %c0_63 = arith.constant 0 : index
    %142 = vector.load %arg1[%141, %c0_62, %c0_63] : memref<8x2x32xf32, #tpu.memory_space<vmem>>, vector<1x2x32xf32>
    %143 = vector.shape_cast %142 : vector<1x2x32xf32> to vector<2x32xf32>
    %144 = arith.addf %143, %136 : vector<2x32xf32>
    %145 = arith.negf %144 : vector<2x32xf32>
    %146 = math.exp %145 : vector<2x32xf32>
    %cst_64 = arith.constant 1.000000e+00 : f32
    %147 = vector.broadcast %cst_64 : f32 to vector<2x32xf32>
    %148 = arith.addf %147, %146 : vector<2x32xf32>
    %149 = arith.divf %147, %148 : vector<2x32xf32>
    %150 = arith.index_cast %c2_i32 : i32 to index
    %c0_65 = arith.constant 0 : index
    %c0_66 = arith.constant 0 : index
    %151 = vector.load %arg2[%150, %c0_65, %c0_66] : memref<8x2x32xf32, #tpu.memory_space<vmem>>, vector<1x2x32xf32>
    %152 = vector.shape_cast %151 : vector<1x2x32xf32> to vector<2x32xf32>
    %153 = arith.addf %152, %137 : vector<2x32xf32>
    %154 = arith.negf %153 : vector<2x32xf32>
    %155 = math.exp %154 : vector<2x32xf32>
    %cst_67 = arith.constant 1.000000e+00 : f32
    %156 = vector.broadcast %cst_67 : f32 to vector<2x32xf32>
    %157 = arith.addf %156, %155 : vector<2x32xf32>
    %158 = arith.divf %156, %157 : vector<2x32xf32>
    %159 = arith.index_cast %c2_i32 : i32 to index
    %c0_68 = arith.constant 0 : index
    %c0_69 = arith.constant 0 : index
    %160 = vector.load %arg3[%159, %c0_68, %c0_69] : memref<8x2x32xf32, #tpu.memory_space<vmem>>, vector<1x2x32xf32>
    %161 = vector.shape_cast %160 : vector<1x2x32xf32> to vector<2x32xf32>
    %162 = arith.mulf %149, %140 : vector<2x32xf32>
    %163 = arith.addf %161, %162 : vector<2x32xf32>
    %164 = math.tanh %163 : vector<2x32xf32>
    %cst_70 = arith.constant 1.000000e+00 : f32
    %165 = vector.broadcast %cst_70 : f32 to vector<2x32xf32>
    %166 = arith.subf %165, %158 : vector<2x32xf32>
    %167 = arith.mulf %166, %164 : vector<2x32xf32>
    %168 = arith.mulf %158, %107 : vector<2x32xf32>
    %169 = arith.addf %167, %168 : vector<2x32xf32>
    %170 = vector.shape_cast %169 : vector<2x32xf32> to vector<2x1x32xf32>
    %171 = vector.broadcast %170 : vector<2x1x32xf32> to vector<2x8x32xf32>
    %172 = arith.mulf %171, %3 : vector<2x8x32xf32>
    %cst_71 = arith.constant dense<0.000000e+00> : vector<2x8xf32>
    %173 = vector.multi_reduction <add>, %172, %cst_71 [2] : vector<2x8x32xf32> to vector<2x8xf32>
    %cst_72 = arith.constant dense<0xFF800000> : vector<2xf32>
    %174 = vector.multi_reduction <maximumf>, %173, %cst_72 [1] : vector<2x8xf32> to vector<2xf32>
    %175 = vector.shape_cast %174 : vector<2xf32> to vector<2x1xf32>
    %176 = vector.broadcast %175 : vector<2x1xf32> to vector<2x8xf32>
    %177 = arith.subf %173, %176 : vector<2x8xf32>
    %178 = math.exp %177 : vector<2x8xf32>
    %cst_73 = arith.constant dense<0.000000e+00> : vector<2xf32>
    %179 = vector.multi_reduction <add>, %178, %cst_73 [1] : vector<2x8xf32> to vector<2xf32>
    %180 = vector.shape_cast %179 : vector<2xf32> to vector<2x1xf32>
    %181 = tpu.reciprocal %180 {approx = true} : vector<2x1xf32> -> vector<2x1xf32>
    %182 = vector.broadcast %181 : vector<2x1xf32> to vector<2x8xf32>
    %183 = arith.mulf %178, %182 : vector<2x8xf32>
    %184 = vector.shape_cast %183 : vector<2x8xf32> to vector<2x8x1xf32>
    %185 = vector.broadcast %184 : vector<2x8x1xf32> to vector<2x8x32xf32>
    %186 = arith.mulf %185, %3 : vector<2x8x32xf32>
    %cst_74 = arith.constant dense<0.000000e+00> : vector<2x32xf32>
    %187 = vector.multi_reduction <add>, %186, %cst_74 [1] : vector<2x8x32xf32> to vector<2x32xf32>
    %cst_75 = arith.constant dense<0.000000e+00> : vector<2x32xf32>
    %188 = tpu.matmul %187, %8, %cst_75 {dimension_numbers = #tpu.dot_dimension_numbers<[1], [0], [0], [1], [0, 0, 1, 1], [], []>} : vector<2x32xf32>, vector<32x32xf32>, vector<2x32xf32> -> vector<2x32xf32>
    %cst_76 = arith.constant dense<0.000000e+00> : vector<2x32xf32>
    %189 = tpu.matmul %169, %9, %cst_76 {dimension_numbers = #tpu.dot_dimension_numbers<[1], [0], [0], [1], [0, 0, 1, 1], [], []>} : vector<2x32xf32>, vector<32x32xf32>, vector<2x32xf32> -> vector<2x32xf32>
    %190 = arith.addf %188, %189 : vector<2x32xf32>
    %191 = vector.broadcast %10 : vector<1x32xf32> to vector<2x32xf32>
    %192 = arith.addf %190, %191 : vector<2x32xf32>
    %193 = math.tanh %192 : vector<2x32xf32>
    %194 = arith.index_cast %c2_i32 : i32 to index
    %c0_77 = arith.constant 0 : index
    %c0_78 = arith.constant 0 : index
    %195 = vector.load %arg13[%194, %c0_77, %c0_78] : memref<8x2x32xf32, #tpu.memory_space<vmem>>, vector<1x2x32xf32>
    %196 = vector.shape_cast %195 : vector<1x2x32xf32> to vector<2x32xf32>
    %197 = vector.shape_cast %193 : vector<2x32xf32> to vector<1x2x32xf32>
    tpu.vector_store %arg13[%194, %c0_77, %c0_78], %197 {strides = array<i32>} : memref<8x2x32xf32, #tpu.memory_space<vmem>>, vector<1x2x32xf32>,
    %c3_i32 = arith.constant 3 : i32
    %cst_79 = arith.constant dense<0.000000e+00> : vector<2x32xf32>
    %198 = tpu.matmul %169, %4, %cst_79 {dimension_numbers = #tpu.dot_dimension_numbers<[1], [0], [0], [1], [0, 0, 1, 1], [], []>} : vector<2x32xf32>, vector<32x32xf32>, vector<2x32xf32> -> vector<2x32xf32>
    %cst_80 = arith.constant dense<0.000000e+00> : vector<2x32xf32>
    %199 = tpu.matmul %169, %5, %cst_80 {dimension_numbers = #tpu.dot_dimension_numbers<[1], [0], [0], [1], [0, 0, 1, 1], [], []>} : vector<2x32xf32>, vector<32x32xf32>, vector<2x32xf32> -> vector<2x32xf32>
    %cst_81 = arith.constant dense<0.000000e+00> : vector<2x32xf32>
    %200 = tpu.matmul %169, %6, %cst_81 {dimension_numbers = #tpu.dot_dimension_numbers<[1], [0], [0], [1], [0, 0, 1, 1], [], []>} : vector<2x32xf32>, vector<32x32xf32>, vector<2x32xf32> -> vector<2x32xf32>
    %201 = vector.broadcast %7 : vector<1x32xf32> to vector<2x32xf32>
    %202 = arith.addf %200, %201 : vector<2x32xf32>
    %203 = arith.index_cast %c3_i32 : i32 to index
    %c0_82 = arith.constant 0 : index
    %c0_83 = arith.constant 0 : index
    %204 = vector.load %arg1[%203, %c0_82, %c0_83] : memref<8x2x32xf32, #tpu.memory_space<vmem>>, vector<1x2x32xf32>
    %205 = vector.shape_cast %204 : vector<1x2x32xf32> to vector<2x32xf32>
    %206 = arith.addf %205, %198 : vector<2x32xf32>
    %207 = arith.negf %206 : vector<2x32xf32>
    %208 = math.exp %207 : vector<2x32xf32>
    %cst_84 = arith.constant 1.000000e+00 : f32
    %209 = vector.broadcast %cst_84 : f32 to vector<2x32xf32>
    %210 = arith.addf %209, %208 : vector<2x32xf32>
    %211 = arith.divf %209, %210 : vector<2x32xf32>
    %212 = arith.index_cast %c3_i32 : i32 to index
    %c0_85 = arith.constant 0 : index
    %c0_86 = arith.constant 0 : index
    %213 = vector.load %arg2[%212, %c0_85, %c0_86] : memref<8x2x32xf32, #tpu.memory_space<vmem>>, vector<1x2x32xf32>
    %214 = vector.shape_cast %213 : vector<1x2x32xf32> to vector<2x32xf32>
    %215 = arith.addf %214, %199 : vector<2x32xf32>
    %216 = arith.negf %215 : vector<2x32xf32>
    %217 = math.exp %216 : vector<2x32xf32>
    %cst_87 = arith.constant 1.000000e+00 : f32
    %218 = vector.broadcast %cst_87 : f32 to vector<2x32xf32>
    %219 = arith.addf %218, %217 : vector<2x32xf32>
    %220 = arith.divf %218, %219 : vector<2x32xf32>
    %221 = arith.index_cast %c3_i32 : i32 to index
    %c0_88 = arith.constant 0 : index
    %c0_89 = arith.constant 0 : index
    %222 = vector.load %arg3[%221, %c0_88, %c0_89] : memref<8x2x32xf32, #tpu.memory_space<vmem>>, vector<1x2x32xf32>
    %223 = vector.shape_cast %222 : vector<1x2x32xf32> to vector<2x32xf32>
    %224 = arith.mulf %211, %202 : vector<2x32xf32>
    %225 = arith.addf %223, %224 : vector<2x32xf32>
    %226 = math.tanh %225 : vector<2x32xf32>
    %cst_90 = arith.constant 1.000000e+00 : f32
    %227 = vector.broadcast %cst_90 : f32 to vector<2x32xf32>
    %228 = arith.subf %227, %220 : vector<2x32xf32>
    %229 = arith.mulf %228, %226 : vector<2x32xf32>
    %230 = arith.mulf %220, %169 : vector<2x32xf32>
    %231 = arith.addf %229, %230 : vector<2x32xf32>
    %232 = vector.shape_cast %231 : vector<2x32xf32> to vector<2x1x32xf32>
    %233 = vector.broadcast %232 : vector<2x1x32xf32> to vector<2x8x32xf32>
    %234 = arith.mulf %233, %3 : vector<2x8x32xf32>
    %cst_91 = arith.constant dense<0.000000e+00> : vector<2x8xf32>
    %235 = vector.multi_reduction <add>, %234, %cst_91 [2] : vector<2x8x32xf32> to vector<2x8xf32>
    %cst_92 = arith.constant dense<0xFF800000> : vector<2xf32>
    %236 = vector.multi_reduction <maximumf>, %235, %cst_92 [1] : vector<2x8xf32> to vector<2xf32>
    %237 = vector.shape_cast %236 : vector<2xf32> to vector<2x1xf32>
    %238 = vector.broadcast %237 : vector<2x1xf32> to vector<2x8xf32>
    %239 = arith.subf %235, %238 : vector<2x8xf32>
    %240 = math.exp %239 : vector<2x8xf32>
    %cst_93 = arith.constant dense<0.000000e+00> : vector<2xf32>
    %241 = vector.multi_reduction <add>, %240, %cst_93 [1] : vector<2x8xf32> to vector<2xf32>
    %242 = vector.shape_cast %241 : vector<2xf32> to vector<2x1xf32>
    %243 = tpu.reciprocal %242 {approx = true} : vector<2x1xf32> -> vector<2x1xf32>
    %244 = vector.broadcast %243 : vector<2x1xf32> to vector<2x8xf32>
    %245 = arith.mulf %240, %244 : vector<2x8xf32>
    %246 = vector.shape_cast %245 : vector<2x8xf32> to vector<2x8x1xf32>
    %247 = vector.broadcast %246 : vector<2x8x1xf32> to vector<2x8x32xf32>
    %248 = arith.mulf %247, %3 : vector<2x8x32xf32>
    %cst_94 = arith.constant dense<0.000000e+00> : vector<2x32xf32>
    %249 = vector.multi_reduction <add>, %248, %cst_94 [1] : vector<2x8x32xf32> to vector<2x32xf32>
    %cst_95 = arith.constant dense<0.000000e+00> : vector<2x32xf32>
    %250 = tpu.matmul %249, %8, %cst_95 {dimension_numbers = #tpu.dot_dimension_numbers<[1], [0], [0], [1], [0, 0, 1, 1], [], []>} : vector<2x32xf32>, vector<32x32xf32>, vector<2x32xf32> -> vector<2x32xf32>
    %cst_96 = arith.constant dense<0.000000e+00> : vector<2x32xf32>
    %251 = tpu.matmul %231, %9, %cst_96 {dimension_numbers = #tpu.dot_dimension_numbers<[1], [0], [0], [1], [0, 0, 1, 1], [], []>} : vector<2x32xf32>, vector<32x32xf32>, vector<2x32xf32> -> vector<2x32xf32>
    %252 = arith.addf %250, %251 : vector<2x32xf32>
    %253 = vector.broadcast %10 : vector<1x32xf32> to vector<2x32xf32>
    %254 = arith.addf %252, %253 : vector<2x32xf32>
    %255 = math.tanh %254 : vector<2x32xf32>
    %256 = arith.index_cast %c3_i32 : i32 to index
    %c0_97 = arith.constant 0 : index
    %c0_98 = arith.constant 0 : index
    %257 = vector.load %arg13[%256, %c0_97, %c0_98] : memref<8x2x32xf32, #tpu.memory_space<vmem>>, vector<1x2x32xf32>
    %258 = vector.shape_cast %257 : vector<1x2x32xf32> to vector<2x32xf32>
    %259 = vector.shape_cast %255 : vector<2x32xf32> to vector<1x2x32xf32>
    tpu.vector_store %arg13[%256, %c0_97, %c0_98], %259 {strides = array<i32>} : memref<8x2x32xf32, #tpu.memory_space<vmem>>, vector<1x2x32xf32>,
    %c4_i32 = arith.constant 4 : i32
    %cst_99 = arith.constant dense<0.000000e+00> : vector<2x32xf32>
    %260 = tpu.matmul %231, %4, %cst_99 {dimension_numbers = #tpu.dot_dimension_numbers<[1], [0], [0], [1], [0, 0, 1, 1], [], []>} : vector<2x32xf32>, vector<32x32xf32>, vector<2x32xf32> -> vector<2x32xf32>
    %cst_100 = arith.constant dense<0.000000e+00> : vector<2x32xf32>
    %261 = tpu.matmul %231, %5, %cst_100 {dimension_numbers = #tpu.dot_dimension_numbers<[1], [0], [0], [1], [0, 0, 1, 1], [], []>} : vector<2x32xf32>, vector<32x32xf32>, vector<2x32xf32> -> vector<2x32xf32>
    %cst_101 = arith.constant dense<0.000000e+00> : vector<2x32xf32>
    %262 = tpu.matmul %231, %6, %cst_101 {dimension_numbers = #tpu.dot_dimension_numbers<[1], [0], [0], [1], [0, 0, 1, 1], [], []>} : vector<2x32xf32>, vector<32x32xf32>, vector<2x32xf32> -> vector<2x32xf32>
    %263 = vector.broadcast %7 : vector<1x32xf32> to vector<2x32xf32>
    %264 = arith.addf %262, %263 : vector<2x32xf32>
    %265 = arith.index_cast %c4_i32 : i32 to index
    %c0_102 = arith.constant 0 : index
    %c0_103 = arith.constant 0 : index
    %266 = vector.load %arg1[%265, %c0_102, %c0_103] : memref<8x2x32xf32, #tpu.memory_space<vmem>>, vector<1x2x32xf32>
    %267 = vector.shape_cast %266 : vector<1x2x32xf32> to vector<2x32xf32>
    %268 = arith.addf %267, %260 : vector<2x32xf32>
    %269 = arith.negf %268 : vector<2x32xf32>
    %270 = math.exp %269 : vector<2x32xf32>
    %cst_104 = arith.constant 1.000000e+00 : f32
    %271 = vector.broadcast %cst_104 : f32 to vector<2x32xf32>
    %272 = arith.addf %271, %270 : vector<2x32xf32>
    %273 = arith.divf %271, %272 : vector<2x32xf32>
    %274 = arith.index_cast %c4_i32 : i32 to index
    %c0_105 = arith.constant 0 : index
    %c0_106 = arith.constant 0 : index
    %275 = vector.load %arg2[%274, %c0_105, %c0_106] : memref<8x2x32xf32, #tpu.memory_space<vmem>>, vector<1x2x32xf32>
    %276 = vector.shape_cast %275 : vector<1x2x32xf32> to vector<2x32xf32>
    %277 = arith.addf %276, %261 : vector<2x32xf32>
    %278 = arith.negf %277 : vector<2x32xf32>
    %279 = math.exp %278 : vector<2x32xf32>
    %cst_107 = arith.constant 1.000000e+00 : f32
    %280 = vector.broadcast %cst_107 : f32 to vector<2x32xf32>
    %281 = arith.addf %280, %279 : vector<2x32xf32>
    %282 = arith.divf %280, %281 : vector<2x32xf32>
    %283 = arith.index_cast %c4_i32 : i32 to index
    %c0_108 = arith.constant 0 : index
    %c0_109 = arith.constant 0 : index
    %284 = vector.load %arg3[%283, %c0_108, %c0_109] : memref<8x2x32xf32, #tpu.memory_space<vmem>>, vector<1x2x32xf32>
    %285 = vector.shape_cast %284 : vector<1x2x32xf32> to vector<2x32xf32>
    %286 = arith.mulf %273, %264 : vector<2x32xf32>
    %287 = arith.addf %285, %286 : vector<2x32xf32>
    %288 = math.tanh %287 : vector<2x32xf32>
    %cst_110 = arith.constant 1.000000e+00 : f32
    %289 = vector.broadcast %cst_110 : f32 to vector<2x32xf32>
    %290 = arith.subf %289, %282 : vector<2x32xf32>
    %291 = arith.mulf %290, %288 : vector<2x32xf32>
    %292 = arith.mulf %282, %231 : vector<2x32xf32>
    %293 = arith.addf %291, %292 : vector<2x32xf32>
    %294 = vector.shape_cast %293 : vector<2x32xf32> to vector<2x1x32xf32>
    %295 = vector.broadcast %294 : vector<2x1x32xf32> to vector<2x8x32xf32>
    %296 = arith.mulf %295, %3 : vector<2x8x32xf32>
    %cst_111 = arith.constant dense<0.000000e+00> : vector<2x8xf32>
    %297 = vector.multi_reduction <add>, %296, %cst_111 [2] : vector<2x8x32xf32> to vector<2x8xf32>
    %cst_112 = arith.constant dense<0xFF800000> : vector<2xf32>
    %298 = vector.multi_reduction <maximumf>, %297, %cst_112 [1] : vector<2x8xf32> to vector<2xf32>
    %299 = vector.shape_cast %298 : vector<2xf32> to vector<2x1xf32>
    %300 = vector.broadcast %299 : vector<2x1xf32> to vector<2x8xf32>
    %301 = arith.subf %297, %300 : vector<2x8xf32>
    %302 = math.exp %301 : vector<2x8xf32>
    %cst_113 = arith.constant dense<0.000000e+00> : vector<2xf32>
    %303 = vector.multi_reduction <add>, %302, %cst_113 [1] : vector<2x8xf32> to vector<2xf32>
    %304 = vector.shape_cast %303 : vector<2xf32> to vector<2x1xf32>
    %305 = tpu.reciprocal %304 {approx = true} : vector<2x1xf32> -> vector<2x1xf32>
    %306 = vector.broadcast %305 : vector<2x1xf32> to vector<2x8xf32>
    %307 = arith.mulf %302, %306 : vector<2x8xf32>
    %308 = vector.shape_cast %307 : vector<2x8xf32> to vector<2x8x1xf32>
    %309 = vector.broadcast %308 : vector<2x8x1xf32> to vector<2x8x32xf32>
    %310 = arith.mulf %309, %3 : vector<2x8x32xf32>
    %cst_114 = arith.constant dense<0.000000e+00> : vector<2x32xf32>
    %311 = vector.multi_reduction <add>, %310, %cst_114 [1] : vector<2x8x32xf32> to vector<2x32xf32>
    %cst_115 = arith.constant dense<0.000000e+00> : vector<2x32xf32>
    %312 = tpu.matmul %311, %8, %cst_115 {dimension_numbers = #tpu.dot_dimension_numbers<[1], [0], [0], [1], [0, 0, 1, 1], [], []>} : vector<2x32xf32>, vector<32x32xf32>, vector<2x32xf32> -> vector<2x32xf32>
    %cst_116 = arith.constant dense<0.000000e+00> : vector<2x32xf32>
    %313 = tpu.matmul %293, %9, %cst_116 {dimension_numbers = #tpu.dot_dimension_numbers<[1], [0], [0], [1], [0, 0, 1, 1], [], []>} : vector<2x32xf32>, vector<32x32xf32>, vector<2x32xf32> -> vector<2x32xf32>
    %314 = arith.addf %312, %313 : vector<2x32xf32>
    %315 = vector.broadcast %10 : vector<1x32xf32> to vector<2x32xf32>
    %316 = arith.addf %314, %315 : vector<2x32xf32>
    %317 = math.tanh %316 : vector<2x32xf32>
    %318 = arith.index_cast %c4_i32 : i32 to index
    %c0_117 = arith.constant 0 : index
    %c0_118 = arith.constant 0 : index
    %319 = vector.load %arg13[%318, %c0_117, %c0_118] : memref<8x2x32xf32, #tpu.memory_space<vmem>>, vector<1x2x32xf32>
    %320 = vector.shape_cast %319 : vector<1x2x32xf32> to vector<2x32xf32>
    %321 = vector.shape_cast %317 : vector<2x32xf32> to vector<1x2x32xf32>
    tpu.vector_store %arg13[%318, %c0_117, %c0_118], %321 {strides = array<i32>} : memref<8x2x32xf32, #tpu.memory_space<vmem>>, vector<1x2x32xf32>,
    %c5_i32 = arith.constant 5 : i32
    %cst_119 = arith.constant dense<0.000000e+00> : vector<2x32xf32>
    %322 = tpu.matmul %293, %4, %cst_119 {dimension_numbers = #tpu.dot_dimension_numbers<[1], [0], [0], [1], [0, 0, 1, 1], [], []>} : vector<2x32xf32>, vector<32x32xf32>, vector<2x32xf32> -> vector<2x32xf32>
    %cst_120 = arith.constant dense<0.000000e+00> : vector<2x32xf32>
    %323 = tpu.matmul %293, %5, %cst_120 {dimension_numbers = #tpu.dot_dimension_numbers<[1], [0], [0], [1], [0, 0, 1, 1], [], []>} : vector<2x32xf32>, vector<32x32xf32>, vector<2x32xf32> -> vector<2x32xf32>
    %cst_121 = arith.constant dense<0.000000e+00> : vector<2x32xf32>
    %324 = tpu.matmul %293, %6, %cst_121 {dimension_numbers = #tpu.dot_dimension_numbers<[1], [0], [0], [1], [0, 0, 1, 1], [], []>} : vector<2x32xf32>, vector<32x32xf32>, vector<2x32xf32> -> vector<2x32xf32>
    %325 = vector.broadcast %7 : vector<1x32xf32> to vector<2x32xf32>
    %326 = arith.addf %324, %325 : vector<2x32xf32>
    %327 = arith.index_cast %c5_i32 : i32 to index
    %c0_122 = arith.constant 0 : index
    %c0_123 = arith.constant 0 : index
    %328 = vector.load %arg1[%327, %c0_122, %c0_123] : memref<8x2x32xf32, #tpu.memory_space<vmem>>, vector<1x2x32xf32>
    %329 = vector.shape_cast %328 : vector<1x2x32xf32> to vector<2x32xf32>
    %330 = arith.addf %329, %322 : vector<2x32xf32>
    %331 = arith.negf %330 : vector<2x32xf32>
    %332 = math.exp %331 : vector<2x32xf32>
    %cst_124 = arith.constant 1.000000e+00 : f32
    %333 = vector.broadcast %cst_124 : f32 to vector<2x32xf32>
    %334 = arith.addf %333, %332 : vector<2x32xf32>
    %335 = arith.divf %333, %334 : vector<2x32xf32>
    %336 = arith.index_cast %c5_i32 : i32 to index
    %c0_125 = arith.constant 0 : index
    %c0_126 = arith.constant 0 : index
    %337 = vector.load %arg2[%336, %c0_125, %c0_126] : memref<8x2x32xf32, #tpu.memory_space<vmem>>, vector<1x2x32xf32>
    %338 = vector.shape_cast %337 : vector<1x2x32xf32> to vector<2x32xf32>
    %339 = arith.addf %338, %323 : vector<2x32xf32>
    %340 = arith.negf %339 : vector<2x32xf32>
    %341 = math.exp %340 : vector<2x32xf32>
    %cst_127 = arith.constant 1.000000e+00 : f32
    %342 = vector.broadcast %cst_127 : f32 to vector<2x32xf32>
    %343 = arith.addf %342, %341 : vector<2x32xf32>
    %344 = arith.divf %342, %343 : vector<2x32xf32>
    %345 = arith.index_cast %c5_i32 : i32 to index
    %c0_128 = arith.constant 0 : index
    %c0_129 = arith.constant 0 : index
    %346 = vector.load %arg3[%345, %c0_128, %c0_129] : memref<8x2x32xf32, #tpu.memory_space<vmem>>, vector<1x2x32xf32>
    %347 = vector.shape_cast %346 : vector<1x2x32xf32> to vector<2x32xf32>
    %348 = arith.mulf %335, %326 : vector<2x32xf32>
    %349 = arith.addf %347, %348 : vector<2x32xf32>
    %350 = math.tanh %349 : vector<2x32xf32>
    %cst_130 = arith.constant 1.000000e+00 : f32
    %351 = vector.broadcast %cst_130 : f32 to vector<2x32xf32>
    %352 = arith.subf %351, %344 : vector<2x32xf32>
    %353 = arith.mulf %352, %350 : vector<2x32xf32>
    %354 = arith.mulf %344, %293 : vector<2x32xf32>
    %355 = arith.addf %353, %354 : vector<2x32xf32>
    %356 = vector.shape_cast %355 : vector<2x32xf32> to vector<2x1x32xf32>
    %357 = vector.broadcast %356 : vector<2x1x32xf32> to vector<2x8x32xf32>
    %358 = arith.mulf %357, %3 : vector<2x8x32xf32>
    %cst_131 = arith.constant dense<0.000000e+00> : vector<2x8xf32>
    %359 = vector.multi_reduction <add>, %358, %cst_131 [2] : vector<2x8x32xf32> to vector<2x8xf32>
    %cst_132 = arith.constant dense<0xFF800000> : vector<2xf32>
    %360 = vector.multi_reduction <maximumf>, %359, %cst_132 [1] : vector<2x8xf32> to vector<2xf32>
    %361 = vector.shape_cast %360 : vector<2xf32> to vector<2x1xf32>
    %362 = vector.broadcast %361 : vector<2x1xf32> to vector<2x8xf32>
    %363 = arith.subf %359, %362 : vector<2x8xf32>
    %364 = math.exp %363 : vector<2x8xf32>
    %cst_133 = arith.constant dense<0.000000e+00> : vector<2xf32>
    %365 = vector.multi_reduction <add>, %364, %cst_133 [1] : vector<2x8xf32> to vector<2xf32>
    %366 = vector.shape_cast %365 : vector<2xf32> to vector<2x1xf32>
    %367 = tpu.reciprocal %366 {approx = true} : vector<2x1xf32> -> vector<2x1xf32>
    %368 = vector.broadcast %367 : vector<2x1xf32> to vector<2x8xf32>
    %369 = arith.mulf %364, %368 : vector<2x8xf32>
    %370 = vector.shape_cast %369 : vector<2x8xf32> to vector<2x8x1xf32>
    %371 = vector.broadcast %370 : vector<2x8x1xf32> to vector<2x8x32xf32>
    %372 = arith.mulf %371, %3 : vector<2x8x32xf32>
    %cst_134 = arith.constant dense<0.000000e+00> : vector<2x32xf32>
    %373 = vector.multi_reduction <add>, %372, %cst_134 [1] : vector<2x8x32xf32> to vector<2x32xf32>
    %cst_135 = arith.constant dense<0.000000e+00> : vector<2x32xf32>
    %374 = tpu.matmul %373, %8, %cst_135 {dimension_numbers = #tpu.dot_dimension_numbers<[1], [0], [0], [1], [0, 0, 1, 1], [], []>} : vector<2x32xf32>, vector<32x32xf32>, vector<2x32xf32> -> vector<2x32xf32>
    %cst_136 = arith.constant dense<0.000000e+00> : vector<2x32xf32>
    %375 = tpu.matmul %355, %9, %cst_136 {dimension_numbers = #tpu.dot_dimension_numbers<[1], [0], [0], [1], [0, 0, 1, 1], [], []>} : vector<2x32xf32>, vector<32x32xf32>, vector<2x32xf32> -> vector<2x32xf32>
    %376 = arith.addf %374, %375 : vector<2x32xf32>
    %377 = vector.broadcast %10 : vector<1x32xf32> to vector<2x32xf32>
    %378 = arith.addf %376, %377 : vector<2x32xf32>
    %379 = math.tanh %378 : vector<2x32xf32>
    %380 = arith.index_cast %c5_i32 : i32 to index
    %c0_137 = arith.constant 0 : index
    %c0_138 = arith.constant 0 : index
    %381 = vector.load %arg13[%380, %c0_137, %c0_138] : memref<8x2x32xf32, #tpu.memory_space<vmem>>, vector<1x2x32xf32>
    %382 = vector.shape_cast %381 : vector<1x2x32xf32> to vector<2x32xf32>
    %383 = vector.shape_cast %379 : vector<2x32xf32> to vector<1x2x32xf32>
    tpu.vector_store %arg13[%380, %c0_137, %c0_138], %383 {strides = array<i32>} : memref<8x2x32xf32, #tpu.memory_space<vmem>>, vector<1x2x32xf32>,
    %c6_i32 = arith.constant 6 : i32
    %cst_139 = arith.constant dense<0.000000e+00> : vector<2x32xf32>
    %384 = tpu.matmul %355, %4, %cst_139 {dimension_numbers = #tpu.dot_dimension_numbers<[1], [0], [0], [1], [0, 0, 1, 1], [], []>} : vector<2x32xf32>, vector<32x32xf32>, vector<2x32xf32> -> vector<2x32xf32>
    %cst_140 = arith.constant dense<0.000000e+00> : vector<2x32xf32>
    %385 = tpu.matmul %355, %5, %cst_140 {dimension_numbers = #tpu.dot_dimension_numbers<[1], [0], [0], [1], [0, 0, 1, 1], [], []>} : vector<2x32xf32>, vector<32x32xf32>, vector<2x32xf32> -> vector<2x32xf32>
    %cst_141 = arith.constant dense<0.000000e+00> : vector<2x32xf32>
    %386 = tpu.matmul %355, %6, %cst_141 {dimension_numbers = #tpu.dot_dimension_numbers<[1], [0], [0], [1], [0, 0, 1, 1], [], []>} : vector<2x32xf32>, vector<32x32xf32>, vector<2x32xf32> -> vector<2x32xf32>
    %387 = vector.broadcast %7 : vector<1x32xf32> to vector<2x32xf32>
    %388 = arith.addf %386, %387 : vector<2x32xf32>
    %389 = arith.index_cast %c6_i32 : i32 to index
    %c0_142 = arith.constant 0 : index
    %c0_143 = arith.constant 0 : index
    %390 = vector.load %arg1[%389, %c0_142, %c0_143] : memref<8x2x32xf32, #tpu.memory_space<vmem>>, vector<1x2x32xf32>
    %391 = vector.shape_cast %390 : vector<1x2x32xf32> to vector<2x32xf32>
    %392 = arith.addf %391, %384 : vector<2x32xf32>
    %393 = arith.negf %392 : vector<2x32xf32>
    %394 = math.exp %393 : vector<2x32xf32>
    %cst_144 = arith.constant 1.000000e+00 : f32
    %395 = vector.broadcast %cst_144 : f32 to vector<2x32xf32>
    %396 = arith.addf %395, %394 : vector<2x32xf32>
    %397 = arith.divf %395, %396 : vector<2x32xf32>
    %398 = arith.index_cast %c6_i32 : i32 to index
    %c0_145 = arith.constant 0 : index
    %c0_146 = arith.constant 0 : index
    %399 = vector.load %arg2[%398, %c0_145, %c0_146] : memref<8x2x32xf32, #tpu.memory_space<vmem>>, vector<1x2x32xf32>
    %400 = vector.shape_cast %399 : vector<1x2x32xf32> to vector<2x32xf32>
    %401 = arith.addf %400, %385 : vector<2x32xf32>
    %402 = arith.negf %401 : vector<2x32xf32>
    %403 = math.exp %402 : vector<2x32xf32>
    %cst_147 = arith.constant 1.000000e+00 : f32
    %404 = vector.broadcast %cst_147 : f32 to vector<2x32xf32>
    %405 = arith.addf %404, %403 : vector<2x32xf32>
    %406 = arith.divf %404, %405 : vector<2x32xf32>
    %407 = arith.index_cast %c6_i32 : i32 to index
    %c0_148 = arith.constant 0 : index
    %c0_149 = arith.constant 0 : index
    %408 = vector.load %arg3[%407, %c0_148, %c0_149] : memref<8x2x32xf32, #tpu.memory_space<vmem>>, vector<1x2x32xf32>
    %409 = vector.shape_cast %408 : vector<1x2x32xf32> to vector<2x32xf32>
    %410 = arith.mulf %397, %388 : vector<2x32xf32>
    %411 = arith.addf %409, %410 : vector<2x32xf32>
    %412 = math.tanh %411 : vector<2x32xf32>
    %cst_150 = arith.constant 1.000000e+00 : f32
    %413 = vector.broadcast %cst_150 : f32 to vector<2x32xf32>
    %414 = arith.subf %413, %406 : vector<2x32xf32>
    %415 = arith.mulf %414, %412 : vector<2x32xf32>
    %416 = arith.mulf %406, %355 : vector<2x32xf32>
    %417 = arith.addf %415, %416 : vector<2x32xf32>
    %418 = vector.shape_cast %417 : vector<2x32xf32> to vector<2x1x32xf32>
    %419 = vector.broadcast %418 : vector<2x1x32xf32> to vector<2x8x32xf32>
    %420 = arith.mulf %419, %3 : vector<2x8x32xf32>
    %cst_151 = arith.constant dense<0.000000e+00> : vector<2x8xf32>
    %421 = vector.multi_reduction <add>, %420, %cst_151 [2] : vector<2x8x32xf32> to vector<2x8xf32>
    %cst_152 = arith.constant dense<0xFF800000> : vector<2xf32>
    %422 = vector.multi_reduction <maximumf>, %421, %cst_152 [1] : vector<2x8xf32> to vector<2xf32>
    %423 = vector.shape_cast %422 : vector<2xf32> to vector<2x1xf32>
    %424 = vector.broadcast %423 : vector<2x1xf32> to vector<2x8xf32>
    %425 = arith.subf %421, %424 : vector<2x8xf32>
    %426 = math.exp %425 : vector<2x8xf32>
    %cst_153 = arith.constant dense<0.000000e+00> : vector<2xf32>
    %427 = vector.multi_reduction <add>, %426, %cst_153 [1] : vector<2x8xf32> to vector<2xf32>
    %428 = vector.shape_cast %427 : vector<2xf32> to vector<2x1xf32>
    %429 = tpu.reciprocal %428 {approx = true} : vector<2x1xf32> -> vector<2x1xf32>
    %430 = vector.broadcast %429 : vector<2x1xf32> to vector<2x8xf32>
    %431 = arith.mulf %426, %430 : vector<2x8xf32>
    %432 = vector.shape_cast %431 : vector<2x8xf32> to vector<2x8x1xf32>
    %433 = vector.broadcast %432 : vector<2x8x1xf32> to vector<2x8x32xf32>
    %434 = arith.mulf %433, %3 : vector<2x8x32xf32>
    %cst_154 = arith.constant dense<0.000000e+00> : vector<2x32xf32>
    %435 = vector.multi_reduction <add>, %434, %cst_154 [1] : vector<2x8x32xf32> to vector<2x32xf32>
    %cst_155 = arith.constant dense<0.000000e+00> : vector<2x32xf32>
    %436 = tpu.matmul %435, %8, %cst_155 {dimension_numbers = #tpu.dot_dimension_numbers<[1], [0], [0], [1], [0, 0, 1, 1], [], []>} : vector<2x32xf32>, vector<32x32xf32>, vector<2x32xf32> -> vector<2x32xf32>
    %cst_156 = arith.constant dense<0.000000e+00> : vector<2x32xf32>
    %437 = tpu.matmul %417, %9, %cst_156 {dimension_numbers = #tpu.dot_dimension_numbers<[1], [0], [0], [1], [0, 0, 1, 1], [], []>} : vector<2x32xf32>, vector<32x32xf32>, vector<2x32xf32> -> vector<2x32xf32>
    %438 = arith.addf %436, %437 : vector<2x32xf32>
    %439 = vector.broadcast %10 : vector<1x32xf32> to vector<2x32xf32>
    %440 = arith.addf %438, %439 : vector<2x32xf32>
    %441 = math.tanh %440 : vector<2x32xf32>
    %442 = arith.index_cast %c6_i32 : i32 to index
    %c0_157 = arith.constant 0 : index
    %c0_158 = arith.constant 0 : index
    %443 = vector.load %arg13[%442, %c0_157, %c0_158] : memref<8x2x32xf32, #tpu.memory_space<vmem>>, vector<1x2x32xf32>
    %444 = vector.shape_cast %443 : vector<1x2x32xf32> to vector<2x32xf32>
    %445 = vector.shape_cast %441 : vector<2x32xf32> to vector<1x2x32xf32>
    tpu.vector_store %arg13[%442, %c0_157, %c0_158], %445 {strides = array<i32>} : memref<8x2x32xf32, #tpu.memory_space<vmem>>, vector<1x2x32xf32>,
    %c7_i32 = arith.constant 7 : i32
    %cst_159 = arith.constant dense<0.000000e+00> : vector<2x32xf32>
    %446 = tpu.matmul %417, %4, %cst_159 {dimension_numbers = #tpu.dot_dimension_numbers<[1], [0], [0], [1], [0, 0, 1, 1], [], []>} : vector<2x32xf32>, vector<32x32xf32>, vector<2x32xf32> -> vector<2x32xf32>
    %cst_160 = arith.constant dense<0.000000e+00> : vector<2x32xf32>
    %447 = tpu.matmul %417, %5, %cst_160 {dimension_numbers = #tpu.dot_dimension_numbers<[1], [0], [0], [1], [0, 0, 1, 1], [], []>} : vector<2x32xf32>, vector<32x32xf32>, vector<2x32xf32> -> vector<2x32xf32>
    %cst_161 = arith.constant dense<0.000000e+00> : vector<2x32xf32>
    %448 = tpu.matmul %417, %6, %cst_161 {dimension_numbers = #tpu.dot_dimension_numbers<[1], [0], [0], [1], [0, 0, 1, 1], [], []>} : vector<2x32xf32>, vector<32x32xf32>, vector<2x32xf32> -> vector<2x32xf32>
    %449 = vector.broadcast %7 : vector<1x32xf32> to vector<2x32xf32>
    %450 = arith.addf %448, %449 : vector<2x32xf32>
    %451 = arith.index_cast %c7_i32 : i32 to index
    %c0_162 = arith.constant 0 : index
    %c0_163 = arith.constant 0 : index
    %452 = vector.load %arg1[%451, %c0_162, %c0_163] : memref<8x2x32xf32, #tpu.memory_space<vmem>>, vector<1x2x32xf32>
    %453 = vector.shape_cast %452 : vector<1x2x32xf32> to vector<2x32xf32>
    %454 = arith.addf %453, %446 : vector<2x32xf32>
    %455 = arith.negf %454 : vector<2x32xf32>
    %456 = math.exp %455 : vector<2x32xf32>
    %cst_164 = arith.constant 1.000000e+00 : f32
    %457 = vector.broadcast %cst_164 : f32 to vector<2x32xf32>
    %458 = arith.addf %457, %456 : vector<2x32xf32>
    %459 = arith.divf %457, %458 : vector<2x32xf32>
    %460 = arith.index_cast %c7_i32 : i32 to index
    %c0_165 = arith.constant 0 : index
    %c0_166 = arith.constant 0 : index
    %461 = vector.load %arg2[%460, %c0_165, %c0_166] : memref<8x2x32xf32, #tpu.memory_space<vmem>>, vector<1x2x32xf32>
    %462 = vector.shape_cast %461 : vector<1x2x32xf32> to vector<2x32xf32>
    %463 = arith.addf %462, %447 : vector<2x32xf32>
    %464 = arith.negf %463 : vector<2x32xf32>
    %465 = math.exp %464 : vector<2x32xf32>
    %cst_167 = arith.constant 1.000000e+00 : f32
    %466 = vector.broadcast %cst_167 : f32 to vector<2x32xf32>
    %467 = arith.addf %466, %465 : vector<2x32xf32>
    %468 = arith.divf %466, %467 : vector<2x32xf32>
    %469 = arith.index_cast %c7_i32 : i32 to index
    %c0_168 = arith.constant 0 : index
    %c0_169 = arith.constant 0 : index
    %470 = vector.load %arg3[%469, %c0_168, %c0_169] : memref<8x2x32xf32, #tpu.memory_space<vmem>>, vector<1x2x32xf32>
    %471 = vector.shape_cast %470 : vector<1x2x32xf32> to vector<2x32xf32>
    %472 = arith.mulf %459, %450 : vector<2x32xf32>
    %473 = arith.addf %471, %472 : vector<2x32xf32>
    %474 = math.tanh %473 : vector<2x32xf32>
    %cst_170 = arith.constant 1.000000e+00 : f32
    %475 = vector.broadcast %cst_170 : f32 to vector<2x32xf32>
    %476 = arith.subf %475, %468 : vector<2x32xf32>
    %477 = arith.mulf %476, %474 : vector<2x32xf32>
    %478 = arith.mulf %468, %417 : vector<2x32xf32>
    %479 = arith.addf %477, %478 : vector<2x32xf32>
    %480 = vector.shape_cast %479 : vector<2x32xf32> to vector<2x1x32xf32>
    %481 = vector.broadcast %480 : vector<2x1x32xf32> to vector<2x8x32xf32>
    %482 = arith.mulf %481, %3 : vector<2x8x32xf32>
    %cst_171 = arith.constant dense<0.000000e+00> : vector<2x8xf32>
    %483 = vector.multi_reduction <add>, %482, %cst_171 [2] : vector<2x8x32xf32> to vector<2x8xf32>
    %cst_172 = arith.constant dense<0xFF800000> : vector<2xf32>
    %484 = vector.multi_reduction <maximumf>, %483, %cst_172 [1] : vector<2x8xf32> to vector<2xf32>
    %485 = vector.shape_cast %484 : vector<2xf32> to vector<2x1xf32>
    %486 = vector.broadcast %485 : vector<2x1xf32> to vector<2x8xf32>
    %487 = arith.subf %483, %486 : vector<2x8xf32>
    %488 = math.exp %487 : vector<2x8xf32>
    %cst_173 = arith.constant dense<0.000000e+00> : vector<2xf32>
    %489 = vector.multi_reduction <add>, %488, %cst_173 [1] : vector<2x8xf32> to vector<2xf32>
    %490 = vector.shape_cast %489 : vector<2xf32> to vector<2x1xf32>
    %491 = tpu.reciprocal %490 {approx = true} : vector<2x1xf32> -> vector<2x1xf32>
    %492 = vector.broadcast %491 : vector<2x1xf32> to vector<2x8xf32>
    %493 = arith.mulf %488, %492 : vector<2x8xf32>
    %494 = vector.shape_cast %493 : vector<2x8xf32> to vector<2x8x1xf32>
    %495 = vector.broadcast %494 : vector<2x8x1xf32> to vector<2x8x32xf32>
    %496 = arith.mulf %495, %3 : vector<2x8x32xf32>
    %cst_174 = arith.constant dense<0.000000e+00> : vector<2x32xf32>
    %497 = vector.multi_reduction <add>, %496, %cst_174 [1] : vector<2x8x32xf32> to vector<2x32xf32>
    %cst_175 = arith.constant dense<0.000000e+00> : vector<2x32xf32>
    %498 = tpu.matmul %497, %8, %cst_175 {dimension_numbers = #tpu.dot_dimension_numbers<[1], [0], [0], [1], [0, 0, 1, 1], [], []>} : vector<2x32xf32>, vector<32x32xf32>, vector<2x32xf32> -> vector<2x32xf32>
    %cst_176 = arith.constant dense<0.000000e+00> : vector<2x32xf32>
    %499 = tpu.matmul %479, %9, %cst_176 {dimension_numbers = #tpu.dot_dimension_numbers<[1], [0], [0], [1], [0, 0, 1, 1], [], []>} : vector<2x32xf32>, vector<32x32xf32>, vector<2x32xf32> -> vector<2x32xf32>
    %500 = arith.addf %498, %499 : vector<2x32xf32>
    %501 = vector.broadcast %10 : vector<1x32xf32> to vector<2x32xf32>
    %502 = arith.addf %500, %501 : vector<2x32xf32>
    %503 = math.tanh %502 : vector<2x32xf32>
    %504 = arith.index_cast %c7_i32 : i32 to index
    %c0_177 = arith.constant 0 : index
    %c0_178 = arith.constant 0 : index
    %505 = vector.load %arg13[%504, %c0_177, %c0_178] : memref<8x2x32xf32, #tpu.memory_space<vmem>>, vector<1x2x32xf32>
    %506 = vector.shape_cast %505 : vector<1x2x32xf32> to vector<2x32xf32>
    %507 = vector.shape_cast %503 : vector<2x32xf32> to vector<1x2x32xf32>
    tpu.vector_store %arg13[%504, %c0_177, %c0_178], %507 {strides = array<i32>} : memref<8x2x32xf32, #tpu.memory_space<vmem>>, vector<1x2x32xf32>,
    %c8_i32 = arith.constant 8 : i32
    %c0_179 = arith.constant 0 : index
    %c0_180 = arith.constant 0 : index
    %508 = vector.load %arg14[%c0_179, %c0_180] : memref<2x32xf32, #tpu.memory_space<vmem>>, vector<2x32xf32>
    tpu.vector_store %arg14[%c0_179, %c0_180], %479 {strides = array<i32>} : memref<2x32xf32, #tpu.memory_space<vmem>>, vector<2x32xf32>,
    return
  }
  func.func @transform_0(%arg0: i32) -> (i32, i32, i32) {
    %c0_i32 = arith.constant 0 : i32
    %c0_i32_0 = arith.constant 0 : i32
    %c0_i32_1 = arith.constant 0 : i32
    return %arg0, %c0_i32, %c0_i32_0 : i32, i32, i32
  }
  func.func @transform_1(%arg0: i32) -> (i32, i32, i32) {
    %c0_i32 = arith.constant 0 : i32
    %c0_i32_0 = arith.constant 0 : i32
    %c0_i32_1 = arith.constant 0 : i32
    return %arg0, %c0_i32, %c0_i32_0 : i32, i32, i32
  }
  func.func @transform_2(%arg0: i32) -> (i32, i32, i32) {
    %c0_i32 = arith.constant 0 : i32
    %c0_i32_0 = arith.constant 0 : i32
    %c0_i32_1 = arith.constant 0 : i32
    return %arg0, %c0_i32, %c0_i32_0 : i32, i32, i32
  }
  func.func @transform_3(%arg0: i32) -> (i32, i32, i32) {
    %c0_i32 = arith.constant 0 : i32
    %c0_i32_0 = arith.constant 0 : i32
    %c0_i32_1 = arith.constant 0 : i32
    %c0_i32_2 = arith.constant 0 : i32
    return %c0_i32, %c0_i32_0, %c0_i32_1 : i32, i32, i32
  }
  func.func @transform_4(%arg0: i32) -> (i32, i32) {
    %c0_i32 = arith.constant 0 : i32
    %c0_i32_0 = arith.constant 0 : i32
    %c0_i32_1 = arith.constant 0 : i32
    return %c0_i32, %c0_i32_0 : i32, i32
  }
  func.func @transform_5(%arg0: i32) -> (i32, i32) {
    %c0_i32 = arith.constant 0 : i32
    %c0_i32_0 = arith.constant 0 : i32
    %c0_i32_1 = arith.constant 0 : i32
    return %c0_i32, %c0_i32_0 : i32, i32
  }
  func.func @transform_6(%arg0: i32) -> (i32, i32) {
    %c0_i32 = arith.constant 0 : i32
    %c0_i32_0 = arith.constant 0 : i32
    %c0_i32_1 = arith.constant 0 : i32
    return %c0_i32, %c0_i32_0 : i32, i32
  }
  func.func @transform_7(%arg0: i32) -> (i32, i32) {
    %c0_i32 = arith.constant 0 : i32
    %c0_i32_0 = arith.constant 0 : i32
    %c0_i32_1 = arith.constant 0 : i32
    return %c0_i32, %c0_i32_0 : i32, i32
  }
  func.func @transform_8(%arg0: i32) -> (i32, i32) {
    %c0_i32 = arith.constant 0 : i32
    %c0_i32_0 = arith.constant 0 : i32
    %c0_i32_1 = arith.constant 0 : i32
    return %c0_i32, %c0_i32_0 : i32, i32
  }
  func.func @transform_9(%arg0: i32) -> (i32, i32) {
    %c0_i32 = arith.constant 0 : i32
    %c0_i32_0 = arith.constant 0 : i32
    %c0_i32_1 = arith.constant 0 : i32
    return %c0_i32, %c0_i32_0 : i32, i32
  }
  func.func @transform_10(%arg0: i32) -> (i32, i32) {
    %c0_i32 = arith.constant 0 : i32
    %c0_i32_0 = arith.constant 0 : i32
    %c0_i32_1 = arith.constant 0 : i32
    return %c0_i32, %c0_i32_0 : i32, i32
  }
  func.func @transform_11(%arg0: i32) -> (i32, i32) {
    %c0_i32 = arith.constant 0 : i32
    %c0_i32_0 = arith.constant 0 : i32
    %c0_i32_1 = arith.constant 0 : i32
    return %c0_i32, %c0_i32_0 : i32, i32
  }
  func.func @transform_12(%arg0: i32) -> (i32, i32, i32) {
    %c0_i32 = arith.constant 0 : i32
    %c0_i32_0 = arith.constant 0 : i32
    %c0_i32_1 = arith.constant 0 : i32
    return %arg0, %c0_i32, %c0_i32_0 : i32, i32, i32
  }
}

</mosaic_0001>

<bundles_post_ra>
// kernel: recurrent_seq2seq_forward.2
= control target key start
LH: loop header
LB: loop body
LE: loop exit
PB: predicated region body
PF: predicated region fallthrough
CT: control target
= control target key end

     0   :  { %vm30_vm0 = vcmask 254976   ;;  %v2671_v0 = vmov 0.0|0.0   ;;  %vm2672_vm1 = vmmov 0   ;;  %v2673_v4 = vmov 0.0   ;;  %s3050_s3 = inlined_call_operand.vmem [shape: f32[32,32], index: 3, kind: input, shape index: {}]   ;;  %s3051_s4 = inlined_call_operand.vmem [shape: f32[32,32], index: 4, kind: input, shape index: {}]   ;;  %s3052_s5 = inlined_call_operand.vmem [shape: f32[32,32], index: 5, kind: input, shape index: {}]   ;;  %s3053_s0 = inlined_call_operand.vmem [shape: f32[8,2,32], index: 0, kind: input, shape index: {}]   ;;  %s3054_s1 = inlined_call_operand.vmem [shape: f32[8,2,32], index: 1, kind: input, shape index: {}]   ;;  %s3055_s6 = inlined_call_operand.vmem [shape: f32[1,32], index: 6, kind: input, shape index: {}]   ;;  %s3056_s2 = inlined_call_operand.vmem [shape: f32[8,2,32], index: 2, kind: input, shape index: {}]   ;;  %s3057_s7 = inlined_call_operand.vmem [shape: f32[8,2,32], index: 7, kind: output, shape index: {}]  }
   0x1   :  { %2444 = vmatprep.subr.bf16.mxu0 %v2671_v0  ;;  %v32_v1 = vld [vmem:[%s3050_s3] sm:$0xff]  ;;  %v33_v2 = vld [vmem:[%s3050_s3 + $0x8] sm:$0xff]  ;;  %v34_v3 = vld [vmem:[%s3050_s3 + $0x10] sm:$0xff]  ;;  %2188 = vmatprep.mubr.msk.f32.mxu0 %vm2672_vm1, %v2673_v4  ;;  %31 = vst.msk [vmem:[#allocation2] sm:$0x3] %vm30_vm0, %v2673_v4  ;;  %vm46_vm2 = vcmask 261120  }
   0x2   :  { %v2728_v5 = vpack.c.bf16 %v33_v2, %v32_v1  ;;  %v35_v6 = vld [vmem:[%s3050_s3 + $0x18] sm:$0xff]  ;;  %2450 = vmatprep.subr.bf16.mxu1 %v2671_v0  ;;  %v36_v7 = vld [vmem:[%s3051_s4] sm:$0xff]  ;;  %v37_v8 = vld [vmem:[%s3051_s4 + $0x8] sm:$0xff]  ;;  %2199 = vmatprep.mubr.msk.f32.mxu1 %vm2672_vm1, %v2673_v4 }
   0x3   :  { %v2742_v9 = vpack.c.bf16 %v37_v8, %v36_v7  ;;  %v38_v10 = vld [vmem:[%s3051_s4 + $0x10] sm:$0xff]  ;;  %v39_v11 = vld [vmem:[%s3051_s4 + $0x18] sm:$0xff]  ;;  %v2751_v12 = vpack.c.bf16 %v35_v6, %v34_v3  ;;  %v40_v14 = vld [vmem:[%s3052_s5] sm:$0xff] }
   0x4   :  { %2446 = vmatpush3.bf16.msra.mxu0 %v2728_v5  ;;  %v2755_v13 = vpack.c.bf16 %v39_v11, %v38_v10  ;;  %v41_v15 = vld [vmem:[%s3052_s5 + $0x8] sm:$0xff]  ;;  %v42_v18 = vld [vmem:[%s3052_s5 + $0x10] sm:$0xff]  ;;  %v43_v19 = vld [vmem:[%s3052_s5 + $0x18] sm:$0xff] }
   0x5   :  { %2447 = vmatprep.subr.bf16.mxu0 %v2671_v0  ;;  %2452 = vmatpush3.bf16.msra.mxu1 %v2742_v9  ;;  %v2765_v17 = vpack.c.bf16 %v41_v15, %v40_v14  ;;  %v2779_v20 = vpack.c.bf16 %v43_v19, %v42_v18  ;;  %v266_v21 = vld [vmem:[%s3053_s0] sm:$0x3]  ;;  %v2000_v49 = vld [vmem:[%s3053_s0 + $0x2] sm:$0x3]  ;;  %v2009_v19 = vld [vmem:[%s3053_s0 + $0x4] sm:$0x3] }
   0x6   :  { %2453 = vmatprep.subr.bf16.mxu1 %v2671_v0  ;;  %v274_v22 = vld [vmem:[%s3054_s1] sm:$0x3]  ;;  %v2002_v53 = vld [vmem:[%s3054_s1 + $0x2] sm:$0x3] }
   0x7   :  { %v2808_v36 = vld [vmem:[%s3055_s6] ss:$0 sm:$0xff]  ;;  %v2004_v6 = vld [vmem:[%s3056_s2 + $0x2] sm:$0x3] }
   0x8   :  { %2449 = vmatpush3.bf16.msra.mxu0 %v2751_v12  ;;  %v45_v16 = vld [vmem:[#allocation2] sm:$0x3] }
   0x9   :  { %2455 = vmatpush3.bf16.msra.mxu1 %v2755_v13  ;;  %2456 = vmatprep.subr.bf16.mxu0 %v2671_v0  ;;  %v282_v40 = vld [vmem:[%s3056_s2] sm:$0x3] }
   0xa   :  { %2462 = vmatprep.subr.bf16.mxu1 %v2671_v0 }
   0xb   :  { %2189 = vmatmul.mubr.msk.f32.vlgmr.msra.gmra.mrb[0].mxu0 %vm46_vm2, %v45_v16 }
   0xc   :  { %2200 = vmatmul.mubr.msk.f32.vlgmr.msra.gmra.mrb[0].mxu1 %vm46_vm2, %v45_v16  ;;  %2458 = vmatpush3.bf16.msra.mxu0 %v2765_v17 }
   0xd   :  { %2459 = vmatprep.subr.bf16.mxu0 %v2671_v0  ;;  %2210 = vmatprep.mubr.msk.f32.mxu0 %vm2672_vm1, %v2673_v4 }
   0xe   :  { %2464 = vmatpush3.bf16.msra.mxu1 %v2728_v5  ;;  %2221 = vmatprep.mubr.msk.f32.mxu1 %vm2672_vm1, %v2673_v4 }
   0xf   :  { %2465 = vmatprep.subr.bf16.mxu1 %v2671_v0 }
  0x10   :  { %2461 = vmatpush3.bf16.msra.mxu0 %v2779_v20 }
  0x11   :  { %2468 = vmatprep.subr.bf16.mxu0 %v2671_v0 }
  0x12   :  { %2467 = vmatpush3.bf16.msra.mxu1 %v2751_v12 }
  0x13   :  { %2211 = vmatmul.mubr.msk.f32.vlgmr.msra.gmra.mrb[2].mxu0 %vm46_vm2, %v45_v16  ;;  %2474 = vmatprep.subr.bf16.mxu1 %v2671_v0 }
  0x14   :  { %2470 = vmatpush3.bf16.msra.mxu0 %v2742_v9  ;;  %2232 = vmatprep.mubr.msk.f32.mxu0 %vm2672_vm1, %v2673_v4 }
  0x15   :  { %2471 = vmatprep.subr.bf16.mxu0 %v2671_v0 }
  0x18   :  { %2473 = vmatpush3.bf16.msra.mxu0 %v2755_v13 }
  0x19   :  { %2480 = vmatprep.subr.bf16.mxu0 %v2671_v0 }
  0xde   :  { %v116_v23 = vpop.f32.mrb[0].mxu0 }
  0xdf   :  { %v267_v24 = vadd.f32 %v266_v21, %v116_v23  ;;  %v2190_v25 = vpop.f32.mrb[1].mxu0  ;;  %v186_v26 = vpop.f32.mrb[0].mxu1 }
  0xe0   :  { %v275_v27 = vadd.f32 %v274_v22, %v186_v26  ;;  %v2201_v28 = vpop.f32.mrb[1].mxu1 }
  0xe1   :  { %v1995_v29 = vmul.f32 -1.442695, %v267_v24  ;;  %v2011_v24 = vld [vmem:[%s3054_s1 + $0x4] sm:$0x3] }
  0xe2   :  { %v1996_v30 = vmul.f32 -1.442695, %v275_v27 }
  0xe3   :  { %2591 = vpow2.f32 %v1995_v29 }
  0xe4   :  { %2593 = vpow2.f32 %v1996_v30 }
  0xe6   :  { %v262_v31 = vpop.f32.mrb[2].mxu0 }
  0xe7   :  { %v2212_v32 = vpop.f32.mrb[3].mxu0  ;;  %v263_v38 = vadd.f32 %v2808_v36, %v262_v31 }
  0xed   :  { %v2592_v33 = vpop.eup %2591 }
  0xee   :  { %v271_v34 = vadd.f32 1.0, %v2592_v33  ;;  %v2594_v35 = vpop.eup %2593 }
  0xef   :  { %v279_v37 = vadd.f32 1.0, %v2594_v35 }
  0xf0   :  { %2595 = vrcp.f32 %v271_v34 }
  0xf1   :  { %2597 = vrcp.f32 %v279_v37 }
  0xfa   :  { %v2596_v39 = vpop.eup %2595 }
  0xfb   :  { %v283_v41 = vmul.f32 %v2596_v39, %v263_v38  ;;  %v2598_v43 = vpop.eup %2597  ;;  %v2013_v39 = vld [vmem:[%s3056_s2 + $0x4] sm:$0x3] }
  0xfc   :  { %v286_v44 = vsub.f32 1.0, %v2598_v43  ;;  %v288_v47 = vmul.f32 %v2598_v43, %v45_v16 }
  0xfd   :  { %v284_v42 = vadd.f32 %v283_v41, %v282_v40 }
  0xff   :  { %2599 = vtanh.f32 %v284_v42 }
 0x109   :  { %v2600_v45 = vpop.eup %2599 }
 0x10a   :  { %v287_v46 = vmul.f32 %v2600_v45, %v286_v44 }
 0x10c   :  { %v289_v48 = vadd.f32 %v288_v47, %v287_v46 }
 0x10e   :  { %291 = vst.msk [vmem:[%s3057_s7] sm:$0x3] %vm30_vm0, %v289_v48  ;;  %2222 = vmatmul.mubr.msk.f32.vlgmr.msra.gmra.mrb[2].mxu1 %vm46_vm2, %v289_v48  ;;  %2233 = vmatmul.mubr.msk.f32.vlgmr.msra.gmra.mrb[4].mxu0 %vm46_vm2, %v289_v48 }
 0x10f   :  { %2476 = vmatpush3.bf16.msra.mxu1 %v2765_v17  ;;  %2243 = vmatprep.mubr.msk.f32.mxu1 %vm2672_vm1, %v2673_v4 }
 0x110   :  { %2477 = vmatprep.subr.bf16.mxu1 %v2671_v0  ;;  %2482 = vmatpush3.bf16.msra.mxu0 %v2728_v5 }
 0x111   :  { %2483 = vmatprep.subr.bf16.mxu0 %v2671_v0  ;;  %2254 = vmatprep.mubr.msk.f32.mxu0 %vm2672_vm1, %v2673_v4 }
 0x113   :  { %2479 = vmatpush3.bf16.msra.mxu1 %v2779_v20 }
 0x114   :  { %2486 = vmatprep.subr.bf16.mxu1 %v2671_v0  ;;  %2485 = vmatpush3.bf16.msra.mxu0 %v2751_v12 }
 0x115   :  { %2492 = vmatprep.subr.bf16.mxu0 %v2671_v0 }
 0x116   :  { %2244 = vmatmul.mubr.msk.f32.vlgmr.msra.gmra.mrb[4].mxu1 %vm46_vm2, %v289_v48 }
 0x117   :  { %2488 = vmatpush3.bf16.msra.mxu1 %v2742_v9  ;;  %2265 = vmatprep.mubr.msk.f32.mxu1 %vm2672_vm1, %v2673_v4 }
 0x118   :  { %2489 = vmatprep.subr.bf16.mxu1 %v2671_v0 }
 0x11b   :  { %2491 = vmatpush3.bf16.msra.mxu1 %v2755_v13 }
 0x11c   :  { %2498 = vmatprep.subr.bf16.mxu1 %v2671_v0 }
 0x1e1   :  { %v361_v50 = vpop.f32.mrb[2].mxu1  ;;  %v431_v51 = vpop.f32.mrb[4].mxu0 }
 0x1e2   :  { %v507_v52 = vadd.f32 %v2000_v49, %v361_v50  ;;  %v2223_v54 = vpop.f32.mrb[3].mxu1  ;;  %v2234_v55 = vpop.f32.mrb[5].mxu0  ;;  %v516_v57 = vadd.f32 %v2002_v53, %v431_v51 }
 0x1e4   :  { %v2001_v56 = vmul.f32 -1.442695, %v507_v52  ;;  %v2003_v58 = vmul.f32 -1.442695, %v516_v57  ;;  %v2020_v52 = vld [vmem:[%s3054_s1 + $0x6] sm:$0x3] }
 0x1e6   :  { %2601 = vpow2.f32 %v2001_v56 }
 0x1e7   :  { %2603 = vpow2.f32 %v2003_v58 }
 0x1e9   :  { %v501_v59 = vpop.f32.mrb[4].mxu1 }
 0x1ea   :  { %v2245_v60 = vpop.f32.mrb[5].mxu1  ;;  %v502_v2 = vadd.f32 %v2808_v36, %v501_v59 }
 0x1f0   :  { %v2602_v61 = vpop.eup %2601 }
 0x1f1   :  { %v511_v62 = vadd.f32 1.0, %v2602_v61  ;;  %v2604_v63 = vpop.eup %2603 }
 0x1f2   :  { %v520_v1 = vadd.f32 1.0, %v2604_v63 }
 0x1f3   :  { %2605 = vrcp.f32 %v511_v62 }
 0x1f4   :  { %2607 = vrcp.f32 %v520_v1 }
 0x1fd   :  { %v2606_v3 = vpop.eup %2605 }
 0x1fe   :  { %v525_v7 = vmul.f32 %v2606_v3, %v502_v2  ;;  %v2608_v10 = vpop.eup %2607  ;;  %v2022_v3 = vld [vmem:[%s3056_s2 + $0x6] sm:$0x3] }
 0x1ff   :  { %v528_v11 = vsub.f32 1.0, %v2608_v10  ;;  %v530_v16 = vmul.f32 %v2608_v10, %v289_v48  ;;  %v2018_v48 = vld [vmem:[%s3053_s0 + $0x6] sm:$0x3] }
 0x200   :  { %v526_v8 = vadd.f32 %v2004_v6, %v525_v7 }
 0x202   :  { %2609 = vtanh.f32 %v526_v8 }
 0x20c   :  { %v2610_v14 = vpop.eup %2609 }
 0x20d   :  { %v529_v15 = vmul.f32 %v2610_v14, %v528_v11 }
 0x20f   :  { %v531_v18 = vadd.f32 %v530_v16, %v529_v15 }
 0x211   :  { %2005 = vst.msk [vmem:[%s3057_s7 + $0x2] sm:$0x3] %vm30_vm0, %v531_v18  ;;  %2255 = vmatmul.mubr.msk.f32.vlgmr.msra.gmra.mrb[6].mxu0 %vm46_vm2, %v531_v18  ;;  %2266 = vmatmul.mubr.msk.f32.vlgmr.msra.gmra.mrb[6].mxu1 %vm46_vm2, %v531_v18 }
 0x212   :  { %2494 = vmatpush3.bf16.msra.mxu0 %v2765_v17  ;;  %2276 = vmatprep.mubr.msk.f32.mxu0 %vm2672_vm1, %v2673_v4 }
 0x213   :  { %2495 = vmatprep.subr.bf16.mxu0 %v2671_v0  ;;  %2500 = vmatpush3.bf16.msra.mxu1 %v2728_v5 }
 0x214   :  { %2501 = vmatprep.subr.bf16.mxu1 %v2671_v0  ;;  %2287 = vmatprep.mubr.msk.f32.mxu1 %vm2672_vm1, %v2673_v4 }
 0x216   :  { %2497 = vmatpush3.bf16.msra.mxu0 %v2779_v20 }
 0x217   :  { %2504 = vmatprep.subr.bf16.mxu0 %v2671_v0  ;;  %2503 = vmatpush3.bf16.msra.mxu1 %v2751_v12 }
 0x218   :  { %2510 = vmatprep.subr.bf16.mxu1 %v2671_v0 }
 0x219   :  { %2277 = vmatmul.mubr.msk.f32.vlgmr.msra.gmra.mrb[8].mxu0 %vm46_vm2, %v531_v18 }
 0x21a   :  { %2506 = vmatpush3.bf16.msra.mxu0 %v2742_v9  ;;  %2298 = vmatprep.mubr.msk.f32.mxu0 %vm2672_vm1, %v2673_v4 }
 0x21b   :  { %2507 = vmatprep.subr.bf16.mxu0 %v2671_v0 }
 0x21e   :  { %2509 = vmatpush3.bf16.msra.mxu0 %v2755_v13 }
 0x21f   :  { %2516 = vmatprep.subr.bf16.mxu0 %v2671_v0 }
 0x2e4   :  { %v603_v21 = vpop.f32.mrb[6].mxu0  ;;  %v673_v22 = vpop.f32.mrb[6].mxu1 }
 0x2e5   :  { %v749_v23 = vadd.f32 %v2009_v19, %v603_v21  ;;  %v2256_v25 = vpop.f32.mrb[7].mxu0  ;;  %v2267_v26 = vpop.f32.mrb[7].mxu1  ;;  %v758_v28 = vadd.f32 %v2011_v24, %v673_v22 }
 0x2e7   :  { %v2010_v27 = vmul.f32 -1.442695, %v749_v23  ;;  %v2012_v29 = vmul.f32 -1.442695, %v758_v28  ;;  %v2029_v23 = vld [vmem:[%s3054_s1 + $0x8] sm:$0x3] }
 0x2e9   :  { %2611 = vpow2.f32 %v2010_v27 }
 0x2ea   :  { %2613 = vpow2.f32 %v2012_v29 }
 0x2ec   :  { %v743_v30 = vpop.f32.mrb[8].mxu0 }
 0x2ed   :  { %v2278_v31 = vpop.f32.mrb[9].mxu0  ;;  %v744_v37 = vadd.f32 %v2808_v36, %v743_v30 }
 0x2f3   :  { %v2612_v32 = vpop.eup %2611 }
 0x2f4   :  { %v753_v33 = vadd.f32 1.0, %v2612_v32  ;;  %v2614_v34 = vpop.eup %2613 }
 0x2f5   :  { %v762_v35 = vadd.f32 1.0, %v2614_v34 }
 0x2f6   :  { %2615 = vrcp.f32 %v753_v33 }
 0x2f7   :  { %2617 = vrcp.f32 %v762_v35 }
 0x300   :  { %v2616_v38 = vpop.eup %2615 }
 0x301   :  { %v767_v40 = vmul.f32 %v2616_v38, %v744_v37  ;;  %v2618_v42 = vpop.eup %2617  ;;  %v2031_v38 = vld [vmem:[%s3056_s2 + $0x8] sm:$0x3] }
 0x302   :  { %v770_v43 = vsub.f32 1.0, %v2618_v42  ;;  %v772_v46 = vmul.f32 %v2618_v42, %v531_v18  ;;  %v2027_v18 = vld [vmem:[%s3053_s0 + $0x8] sm:$0x3] }
 0x303   :  { %v768_v41 = vadd.f32 %v2013_v39, %v767_v40 }
 0x305   :  { %2619 = vtanh.f32 %v768_v41 }
 0x30f   :  { %v2620_v44 = vpop.eup %2619 }
 0x310   :  { %v771_v45 = vmul.f32 %v2620_v44, %v770_v43 }
 0x312   :  { %v773_v47 = vadd.f32 %v772_v46, %v771_v45 }
 0x314   :  { %2014 = vst.msk [vmem:[%s3057_s7 + $0x4] sm:$0x3] %vm30_vm0, %v773_v47  ;;  %2288 = vmatmul.mubr.msk.f32.vlgmr.msra.gmra.mrb[8].mxu1 %vm46_vm2, %v773_v47  ;;  %2299 = vmatmul.mubr.msk.f32.vlgmr.msra.gmra.mrb[10].mxu0 %vm46_vm2, %v773_v47 }
 0x315   :  { %2512 = vmatpush3.bf16.msra.mxu1 %v2765_v17  ;;  %2309 = vmatprep.mubr.msk.f32.mxu1 %vm2672_vm1, %v2673_v4 }
 0x316   :  { %2513 = vmatprep.subr.bf16.mxu1 %v2671_v0  ;;  %2518 = vmatpush3.bf16.msra.mxu0 %v2728_v5 }
 0x317   :  { %2519 = vmatprep.subr.bf16.mxu0 %v2671_v0  ;;  %2320 = vmatprep.mubr.msk.f32.mxu0 %vm2672_vm1, %v2673_v4 }
 0x319   :  { %2515 = vmatpush3.bf16.msra.mxu1 %v2779_v20 }
 0x31a   :  { %2522 = vmatprep.subr.bf16.mxu1 %v2671_v0  ;;  %2521 = vmatpush3.bf16.msra.mxu0 %v2751_v12 }
 0x31b   :  { %2528 = vmatprep.subr.bf16.mxu0 %v2671_v0 }
 0x31c   :  { %2310 = vmatmul.mubr.msk.f32.vlgmr.msra.gmra.mrb[10].mxu1 %vm46_vm2, %v773_v47 }
 0x31d   :  { %2524 = vmatpush3.bf16.msra.mxu1 %v2742_v9  ;;  %2331 = vmatprep.mubr.msk.f32.mxu1 %vm2672_vm1, %v2673_v4 }
 0x31e   :  { %2525 = vmatprep.subr.bf16.mxu1 %v2671_v0 }
 0x321   :  { %2527 = vmatpush3.bf16.msra.mxu1 %v2755_v13 }
 0x322   :  { %2534 = vmatprep.subr.bf16.mxu1 %v2671_v0 }
 0x3e7   :  { %v845_v49 = vpop.f32.mrb[8].mxu1  ;;  %v915_v50 = vpop.f32.mrb[10].mxu0 }
 0x3e8   :  { %v991_v51 = vadd.f32 %v2018_v48, %v845_v49  ;;  %v2289_v53 = vpop.f32.mrb[9].mxu1  ;;  %v2300_v54 = vpop.f32.mrb[11].mxu0  ;;  %v1000_v56 = vadd.f32 %v2020_v52, %v915_v50 }
 0x3ea   :  { %v2019_v55 = vmul.f32 -1.442695, %v991_v51  ;;  %v2021_v57 = vmul.f32 -1.442695, %v1000_v56  ;;  %v2038_v51 = vld [vmem:[%s3054_s1 + $0xa] sm:$0x3] }
 0x3ec   :  { %2621 = vpow2.f32 %v2019_v55 }
 0x3ed   :  { %2623 = vpow2.f32 %v2021_v57 }
 0x3ef   :  { %v985_v58 = vpop.f32.mrb[10].mxu1 }
 0x3f0   :  { %v2311_v59 = vpop.f32.mrb[11].mxu1  ;;  %v986_v1 = vadd.f32 %v2808_v36, %v985_v58 }
 0x3f6   :  { %v2622_v60 = vpop.eup %2621 }
 0x3f7   :  { %v995_v61 = vadd.f32 1.0, %v2622_v60  ;;  %v2624_v62 = vpop.eup %2623 }
 0x3f8   :  { %v1004_v63 = vadd.f32 1.0, %v2624_v62 }
 0x3f9   :  { %2625 = vrcp.f32 %v995_v61 }
 0x3fa   :  { %2627 = vrcp.f32 %v1004_v63 }
 0x403   :  { %v2626_v2 = vpop.eup %2625 }
 0x404   :  { %v1009_v6 = vmul.f32 %v2626_v2, %v986_v1  ;;  %v2628_v8 = vpop.eup %2627  ;;  %v2040_v2 = vld [vmem:[%s3056_s2 + $0xa] sm:$0x3] }
 0x405   :  { %v1012_v10 = vsub.f32 1.0, %v2628_v8  ;;  %v1014_v15 = vmul.f32 %v2628_v8, %v773_v47  ;;  %v2036_v47 = vld [vmem:[%s3053_s0 + $0xa] sm:$0x3] }
 0x406   :  { %v1010_v7 = vadd.f32 %v2022_v3, %v1009_v6 }
 0x408   :  { %2629 = vtanh.f32 %v1010_v7 }
 0x412   :  { %v2630_v11 = vpop.eup %2629 }
 0x413   :  { %v1013_v14 = vmul.f32 %v2630_v11, %v1012_v10 }
 0x415   :  { %v1015_v16 = vadd.f32 %v1014_v15, %v1013_v14 }
 0x417   :  { %2023 = vst.msk [vmem:[%s3057_s7 + $0x6] sm:$0x3] %vm30_vm0, %v1015_v16  ;;  %2321 = vmatmul.mubr.msk.f32.vlgmr.msra.gmra.mrb[12].mxu0 %vm46_vm2, %v1015_v16  ;;  %2332 = vmatmul.mubr.msk.f32.vlgmr.msra.gmra.mrb[12].mxu1 %vm46_vm2, %v1015_v16 }
 0x418   :  { %2530 = vmatpush3.bf16.msra.mxu0 %v2765_v17  ;;  %2342 = vmatprep.mubr.msk.f32.mxu0 %vm2672_vm1, %v2673_v4 }
 0x419   :  { %2531 = vmatprep.subr.bf16.mxu0 %v2671_v0  ;;  %2536 = vmatpush3.bf16.msra.mxu1 %v2728_v5 }
 0x41a   :  { %2537 = vmatprep.subr.bf16.mxu1 %v2671_v0  ;;  %2353 = vmatprep.mubr.msk.f32.mxu1 %vm2672_vm1, %v2673_v4 }
 0x41c   :  { %2533 = vmatpush3.bf16.msra.mxu0 %v2779_v20 }
 0x41d   :  { %2540 = vmatprep.subr.bf16.mxu0 %v2671_v0  ;;  %2539 = vmatpush3.bf16.msra.mxu1 %v2751_v12 }
 0x41e   :  { %2546 = vmatprep.subr.bf16.mxu1 %v2671_v0 }
 0x41f   :  { %2343 = vmatmul.mubr.msk.f32.vlgmr.msra.gmra.mrb[14].mxu0 %vm46_vm2, %v1015_v16 }
 0x420   :  { %2542 = vmatpush3.bf16.msra.mxu0 %v2742_v9  ;;  %2364 = vmatprep.mubr.msk.f32.mxu0 %vm2672_vm1, %v2673_v4 }
 0x421   :  { %2543 = vmatprep.subr.bf16.mxu0 %v2671_v0 }
 0x424   :  { %2545 = vmatpush3.bf16.msra.mxu0 %v2755_v13 }
 0x425   :  { %2552 = vmatprep.subr.bf16.mxu0 %v2671_v0 }
 0x4ea   :  { %v1087_v19 = vpop.f32.mrb[12].mxu0  ;;  %v1157_v21 = vpop.f32.mrb[12].mxu1 }
 0x4eb   :  { %v1233_v22 = vadd.f32 %v2027_v18, %v1087_v19  ;;  %v2322_v24 = vpop.f32.mrb[13].mxu0  ;;  %v2333_v25 = vpop.f32.mrb[13].mxu1  ;;  %v1242_v27 = vadd.f32 %v2029_v23, %v1157_v21  ;;  %v2047_v19 = vld [vmem:[%s3054_s1 + $0xc] sm:$0x3] }
 0x4ed   :  { %v2028_v26 = vmul.f32 -1.442695, %v1233_v22  ;;  %v2030_v28 = vmul.f32 -1.442695, %v1242_v27 }
 0x4ef   :  { %2631 = vpow2.f32 %v2028_v26 }
 0x4f0   :  { %2633 = vpow2.f32 %v2030_v28 }
 0x4f2   :  { %v1227_v29 = vpop.f32.mrb[14].mxu0 }
 0x4f3   :  { %v2344_v30 = vpop.f32.mrb[15].mxu0  ;;  %v1228_v35 = vadd.f32 %v2808_v36, %v1227_v29 }
 0x4f9   :  { %v2632_v31 = vpop.eup %2631 }
 0x4fa   :  { %v1237_v32 = vadd.f32 1.0, %v2632_v31  ;;  %v2634_v33 = vpop.eup %2633 }
 0x4fb   :  { %v1246_v34 = vadd.f32 1.0, %v2634_v33 }
 0x4fc   :  { %2635 = vrcp.f32 %v1237_v32  ;;  %v2049_v32 = vld [vmem:[%s3056_s2 + $0xc] sm:$0x3] }
 0x4fd   :  { %2637 = vrcp.f32 %v1246_v34 }
 0x506   :  { %v2636_v37 = vpop.eup %2635 }
 0x507   :  { %v1251_v39 = vmul.f32 %v2636_v37, %v1228_v35  ;;  %v2638_v41 = vpop.eup %2637 }
 0x508   :  { %v1254_v42 = vsub.f32 1.0, %v2638_v41  ;;  %v1256_v45 = vmul.f32 %v2638_v41, %v1015_v16 }
 0x509   :  { %v1252_v40 = vadd.f32 %v2031_v38, %v1251_v39 }
 0x50b   :  { %2639 = vtanh.f32 %v1252_v40 }
 0x515   :  { %v2640_v43 = vpop.eup %2639 }
 0x516   :  { %v1255_v44 = vmul.f32 %v2640_v43, %v1254_v42  ;;  %v2054_v42 = vld [vmem:[%s3053_s0 + $0xe] sm:$0x3] }
 0x518   :  { %v1257_v46 = vadd.f32 %v1256_v45, %v1255_v44 }
 0x51a   :  { %2032 = vst.msk [vmem:[%s3057_s7 + $0x8] sm:$0x3] %vm30_vm0, %v1257_v46  ;;  %2354 = vmatmul.mubr.msk.f32.vlgmr.msra.gmra.mrb[14].mxu1 %vm46_vm2, %v1257_v46  ;;  %2365 = vmatmul.mubr.msk.f32.vlgmr.msra.gmra.mrb[16].mxu0 %vm46_vm2, %v1257_v46 }
 0x51b   :  { %2548 = vmatpush3.bf16.msra.mxu1 %v2765_v17  ;;  %2375 = vmatprep.mubr.msk.f32.mxu1 %vm2672_vm1, %v2673_v4 }
 0x51c   :  { %2549 = vmatprep.subr.bf16.mxu1 %v2671_v0  ;;  %2554 = vmatpush3.bf16.msra.mxu0 %v2728_v5 }
 0x51d   :  { %2555 = vmatprep.subr.bf16.mxu0 %v2671_v0  ;;  %2386 = vmatprep.mubr.msk.f32.mxu0 %vm2672_vm1, %v2673_v4 }
 0x51f   :  { %2551 = vmatpush3.bf16.msra.mxu1 %v2779_v20 }
 0x520   :  { %2558 = vmatprep.subr.bf16.mxu1 %v2671_v0  ;;  %2557 = vmatpush3.bf16.msra.mxu0 %v2751_v12 }
 0x521   :  { %2564 = vmatprep.subr.bf16.mxu0 %v2671_v0 }
 0x522   :  { %2376 = vmatmul.mubr.msk.f32.vlgmr.msra.gmra.mrb[16].mxu1 %vm46_vm2, %v1257_v46 }
 0x523   :  { %2560 = vmatpush3.bf16.msra.mxu1 %v2742_v9  ;;  %2397 = vmatprep.mubr.msk.f32.mxu1 %vm2672_vm1, %v2673_v4 }
 0x524   :  { %2561 = vmatprep.subr.bf16.mxu1 %v2671_v0 }
 0x527   :  { %2563 = vmatpush3.bf16.msra.mxu1 %v2755_v13 }
 0x528   :  { %2570 = vmatprep.subr.bf16.mxu1 %v2671_v0 }
 0x5ed   :  { %v1329_v48 = vpop.f32.mrb[14].mxu1  ;;  %v1399_v49 = vpop.f32.mrb[16].mxu0 }
 0x5ee   :  { %v1475_v50 = vadd.f32 %v2036_v47, %v1329_v48  ;;  %v2355_v52 = vpop.f32.mrb[15].mxu1  ;;  %v2366_v53 = vpop.f32.mrb[17].mxu0  ;;  %v1484_v55 = vadd.f32 %v2038_v51, %v1399_v49 }
 0x5f0   :  { %v2037_v54 = vmul.f32 -1.442695, %v1475_v50  ;;  %v2039_v56 = vmul.f32 -1.442695, %v1484_v55 }
 0x5f2   :  { %2641 = vpow2.f32 %v2037_v54 }
 0x5f3   :  { %2643 = vpow2.f32 %v2039_v56  ;;  %v2058_v56 = vld [vmem:[%s3056_s2 + $0xe] sm:$0x3] }
 0x5f5   :  { %v1469_v57 = vpop.f32.mrb[16].mxu1 }
 0x5f6   :  { %v2377_v58 = vpop.f32.mrb[17].mxu1  ;;  %v1470_v63 = vadd.f32 %v2808_v36, %v1469_v57 }
 0x5fc   :  { %v2642_v59 = vpop.eup %2641 }
 0x5fd   :  { %v1479_v60 = vadd.f32 1.0, %v2642_v59  ;;  %v2644_v61 = vpop.eup %2643 }
 0x5fe   :  { %v1488_v62 = vadd.f32 1.0, %v2644_v61 }
 0x5ff   :  { %2645 = vrcp.f32 %v1479_v60 }
 0x600   :  { %2647 = vrcp.f32 %v1488_v62 }
 0x609   :  { %v2646_v1 = vpop.eup %2645 }
 0x60a   :  { %v1493_v3 = vmul.f32 %v2646_v1, %v1470_v63  ;;  %v2648_v7 = vpop.eup %2647 }
 0x60b   :  { %v1496_v8 = vsub.f32 1.0, %v2648_v7  ;;  %v1498_v14 = vmul.f32 %v2648_v7, %v1257_v46 }
 0x60c   :  { %v1494_v6 = vadd.f32 %v2040_v2, %v1493_v3 }
 0x60e   :  { %2649 = vtanh.f32 %v1494_v6 }
 0x618   :  { %v2650_v10 = vpop.eup %2649 }
 0x619   :  { %v1497_v11 = vmul.f32 %v2650_v10, %v1496_v8 }
 0x61b   :  { %v1499_v15 = vadd.f32 %v1498_v14, %v1497_v11 }
 0x61d   :  { %2041 = vst.msk [vmem:[%s3057_s7 + $0xa] sm:$0x3] %vm30_vm0, %v1499_v15  ;;  %2387 = vmatmul.mubr.msk.f32.vlgmr.msra.gmra.mrb[18].mxu0 %vm46_vm2, %v1499_v15  ;;  %2398 = vmatmul.mubr.msk.f32.vlgmr.msra.gmra.mrb[18].mxu1 %vm46_vm2, %v1499_v15 }
 0x61e   :  { %2566 = vmatpush3.bf16.msra.mxu0 %v2765_v17  ;;  %2408 = vmatprep.mubr.msk.f32.mxu0 %vm2672_vm1, %v2673_v4 }
 0x61f   :  { %2567 = vmatprep.subr.bf16.mxu0 %v2671_v0  ;;  %2572 = vmatpush3.bf16.msra.mxu1 %v2728_v5  ;;  %v2045_v5 = vld [vmem:[%s3053_s0 + $0xc] sm:$0x3] }
 0x620   :  { %2573 = vmatprep.subr.bf16.mxu1 %v2671_v0  ;;  %2419 = vmatprep.mubr.msk.f32.mxu1 %vm2672_vm1, %v2673_v4 }
 0x622   :  { %2569 = vmatpush3.bf16.msra.mxu0 %v2779_v20 }
 0x623   :  { %2576 = vmatprep.subr.bf16.mxu0 %v2671_v0  ;;  %2575 = vmatpush3.bf16.msra.mxu1 %v2751_v12 }
 0x624   :  { %2582 = vmatprep.subr.bf16.mxu1 %v2671_v0 }
 0x625   :  { %2409 = vmatmul.mubr.msk.f32.vlgmr.msra.gmra.mrb[20].mxu0 %vm46_vm2, %v1499_v15 }
 0x626   :  { %2578 = vmatpush3.bf16.msra.mxu0 %v2742_v9  ;;  %2430 = vmatprep.mubr.msk.f32.mxu0 %vm2672_vm1, %v2673_v4 }
 0x627   :  { %2579 = vmatprep.subr.bf16.mxu0 %v2671_v0 }
 0x62a   :  { %2581 = vmatpush3.bf16.msra.mxu0 %v2755_v13 }
 0x6f0   :  { %v1571_v16 = vpop.f32.mrb[18].mxu0  ;;  %v1641_v18 = vpop.f32.mrb[18].mxu1 }
 0x6f1   :  { %v1717_v12 = vadd.f32 %v2045_v5, %v1571_v16  ;;  %v2388_v21 = vpop.f32.mrb[19].mxu0  ;;  %v2399_v9 = vpop.f32.mrb[19].mxu1  ;;  %v1726_v23 = vadd.f32 %v2047_v19, %v1641_v18 }
 0x6f3   :  { %v2046_v22 = vmul.f32 -1.442695, %v1717_v12  ;;  %v2048_v24 = vmul.f32 -1.442695, %v1726_v23 }
 0x6f5   :  { %2651 = vpow2.f32 %v2046_v22 }
 0x6f6   :  { %2653 = vpow2.f32 %v2048_v24 }
 0x6f8   :  { %v1711_v25 = vpop.f32.mrb[20].mxu0 }
 0x6f9   :  { %v2410_v26 = vpop.f32.mrb[21].mxu0  ;;  %v1712_v30 = vadd.f32 %v2808_v36, %v1711_v25 }
 0x6ff   :  { %v2652_v13 = vpop.eup %2651 }
 0x700   :  { %v1721_v27 = vadd.f32 1.0, %v2652_v13  ;;  %v2654_v28 = vpop.eup %2653 }
 0x701   :  { %v1730_v29 = vadd.f32 1.0, %v2654_v28 }
 0x702   :  { %2655 = vrcp.f32 %v1721_v27 }
 0x703   :  { %2657 = vrcp.f32 %v1730_v29 }
 0x70c   :  { %v2656_v31 = vpop.eup %2655 }
 0x70d   :  { %v1735_v33 = vmul.f32 %v2656_v31, %v1712_v30  ;;  %v2658_v35 = vpop.eup %2657 }
 0x70e   :  { %v1738_v37 = vsub.f32 1.0, %v2658_v35  ;;  %v1740_v40 = vmul.f32 %v2658_v35, %v1499_v15 }
 0x70f   :  { %v1736_v34 = vadd.f32 %v2049_v32, %v1735_v33 }
 0x711   :  { %2659 = vtanh.f32 %v1736_v34 }
 0x71b   :  { %v2660_v38 = vpop.eup %2659 }
 0x71c   :  { %v1739_v39 = vmul.f32 %v2660_v38, %v1738_v37 }
 0x71e   :  { %v1741_v41 = vadd.f32 %v1740_v40, %v1739_v39 }
 0x720   :  { %2050 = vst.msk [vmem:[%s3057_s7 + $0xc] sm:$0x3] %vm30_vm0, %v1741_v41  ;;  %2420 = vmatmul.mubr.msk.f32.vlgmr.msra.gmra.mrb[20].mxu1 %vm46_vm2, %v1741_v41  ;;  %2431 = vmatmul.mubr.msk.f32.vlgmr.msra.gmra.mrb[22].mxu0 %vm46_vm2, %v1741_v41 }
 0x721   :  { %2584 = vmatpush3.bf16.msra.mxu1 %v2765_v17  ;;  %2441 = vmatprep.mubr.msk.f32.mxu1 %vm2672_vm1, %v2673_v4  ;;  %v2056_v17 = vld [vmem:[%s3054_s1 + $0xe] sm:$0x3] }
 0x722   :  { %2585 = vmatprep.subr.bf16.mxu1 %v2671_v0 }
 0x725   :  { %2587 = vmatpush3.bf16.msra.mxu1 %v2779_v20 }
 0x728   :  { %2442 = vmatmul.mubr.msk.f32.vlgmr.msra.gmra.mrb[22].mxu1 %vm46_vm2, %v1741_v41 }
 0x7f3   :  { %v1813_v43 = vpop.f32.mrb[20].mxu1  ;;  %v1883_v44 = vpop.f32.mrb[22].mxu0 }
 0x7f4   :  { %v1959_v45 = vadd.f32 %v2054_v42, %v1813_v43  ;;  %v2421_v46 = vpop.f32.mrb[21].mxu1  ;;  %v2432_v47 = vpop.f32.mrb[23].mxu0  ;;  %v1968_v48 = vadd.f32 %v2056_v17, %v1883_v44 }
 0x7f6   :  { %v2055_v4 = vmul.f32 -1.442695, %v1959_v45  ;;  %v2057_v0 = vmul.f32 -1.442695, %v1968_v48 }
 0x7f8   :  { %2661 = vpow2.f32 %v2055_v4 }
 0x7f9   :  { %2663 = vpow2.f32 %v2057_v0 }
 0x7fb   :  { %v1953_v20 = vpop.f32.mrb[22].mxu1 }
 0x7fc   :  { %v2443_v49 = vpop.f32.mrb[23].mxu1  ;;  %v1954_v54 = vadd.f32 %v2808_v36, %v1953_v20 }
 0x802   :  { %v2662_v50 = vpop.eup %2661 }
 0x803   :  { %v1963_v51 = vadd.f32 1.0, %v2662_v50  ;;  %v2664_v52 = vpop.eup %2663 }
 0x804   :  { %v1972_v53 = vadd.f32 1.0, %v2664_v52 }
 0x805   :  { %2665 = vrcp.f32 %v1963_v51 }
 0x806   :  { %2667 = vrcp.f32 %v1972_v53 }
 0x80f   :  { %v2666_v55 = vpop.eup %2665 }
 0x810   :  { %v1977_v57 = vmul.f32 %v2666_v55, %v1954_v54  ;;  %v2668_v59 = vpop.eup %2667 }
 0x811   :  { %v1980_v60 = vsub.f32 1.0, %v2668_v59  ;;  %v1982_v62 = vmul.f32 %v2668_v59, %v1741_v41 }
 0x812   :  { %v1978_v58 = vadd.f32 %v2058_v56, %v1977_v57 }
 0x814   :  { %2669 = vtanh.f32 %v1978_v58 }
 0x81e   :  { %v2670_v61 = vpop.eup %2669 }
 0x81f   :  { %v1981_v63 = vmul.f32 %v2670_v61, %v1980_v60 }
 0x821   :  { %v1983_v1 = vadd.f32 %v1982_v62, %v1981_v63 }
 0x823   :  { %2059 = vst.msk [vmem:[%s3057_s7 + $0xe] sm:$0x3] %vm30_vm0, %v1983_v1  ;;  %1986 = vst.msk [vmem:[#allocation2] sm:$0x3] %vm30_vm0, %v1983_v1 }

// kernel: recurrent_seq2seq_forward.3
= control target key start
LH: loop header
LB: loop body
LE: loop exit
PB: predicated region body
PF: predicated region fallthrough
CT: control target
= control target key end

     0   :  { %vm46_vm0 = vcmask 254976   ;;  %v5394_v0 = vmov 0.0|0.0   ;;  %vm5395_vm1 = vmmov 0   ;;  %v5396_v4 = vmov 0.0   ;;  %s6319_s5 = inlined_call_operand.vmem [shape: f32[32,32], index: 5, kind: input, shape index: {}]   ;;  %s6320_s4 = inlined_call_operand.vmem [shape: f32[2,32], index: 4, kind: input, shape index: {}]   ;;  %s6321_s6 = inlined_call_operand.vmem [shape: f32[32,32], index: 6, kind: input, shape index: {}]   ;;  %s6322_s7 = inlined_call_operand.vmem [shape: f32[32,32], index: 7, kind: input, shape index: {}]   ;;  %s6323_s10 = inlined_call_operand.vmem [shape: f32[32,32], index: 10, kind: input, shape index: {}]   ;;  %s6324_s0 = inlined_call_operand.vmem [shape: f32[8,2,32], index: 0, kind: input, shape index: {}]   ;;  %s6325_s1 = inlined_call_operand.vmem [shape: f32[8,2,32], index: 1, kind: input, shape index: {}]   ;;  %s6326_s8 = inlined_call_operand.vmem [shape: f32[1,32], index: 8, kind: input, shape index: {}]   ;;  %s6327_s2 = inlined_call_operand.vmem [shape: f32[8,2,32], index: 2, kind: input, shape index: {}]   ;;  %s6328_s3 = inlined_call_operand.vmem [shape: f32[2,8,32], index: 3, kind: input, shape index: {}]   ;;  %s6329_s9 = inlined_call_operand.vmem [shape: f32[32,32], index: 9, kind: input, shape index: {}]   ;;  %s6330_s11 = inlined_call_operand.vmem [shape: f32[1,32], index: 11, kind: input, shape index: {}]   ;;  %s6331_s12 = inlined_call_operand.vmem [shape: f32[8,2,32], index: 12, kind: output, shape index: {}]  }
   0x1   :  { %4997 = vmatprep.subr.bf16.mxu0 %v5394_v0  ;;  %v50_v1 = vld [vmem:[%s6319_s5] sm:$0xff]  ;;  %v51_v2 = vld [vmem:[%s6319_s5 + $0x8] sm:$0xff]  ;;  %v52_v3 = vld [vmem:[%s6319_s5 + $0x10] sm:$0xff]  ;;  %4565 = vmatprep.mubr.msk.f32.mxu0 %vm5395_vm1, %v5396_v4  ;;  %vm73_vm2 = vcmask 261120   ;;  %v5397_v50 = vmov 1966171168   ;;  %v321_v52 = vlaneseq }
   0x2   :  { %v5476_v5 = vpack.c.bf16 %v51_v2, %v50_v1  ;;  %v53_v6 = vld [vmem:[%s6319_s5 + $0x18] sm:$0xff]  ;;  %v45_v7 = vld [vmem:[%s6320_s4] sm:$0x3]  ;;  %5003 = vmatprep.subr.bf16.mxu1 %v5394_v0  ;;  %4576 = vmatprep.mubr.msk.f32.mxu1 %vm5395_vm1, %v5396_v4  ;;  %v55_v9 = vld [vmem:[%s6321_s6 + $0x8] sm:$0xff]  ;;  %v319_v51 = vunpack.c.l.s4 %v5397_v50  ;;  %vm370_vm3 = vcmask 1041409   ;;  %vm373_vm4 = vcmask 58368  }
   0x3   :  { %v54_v8 = vld [vmem:[%s6321_s6] sm:$0xff]  ;;  %47 = vst.msk [vmem:[#allocation2] sm:$0x3] %vm46_vm0, %v45_v7  ;;  %v56_v10 = vld [vmem:[%s6321_s6 + $0x10] sm:$0xff]  ;;  %v57_v11 = vld [vmem:[%s6321_s6 + $0x18] sm:$0xff]  ;;  %v5501_v12 = vpack.c.bf16 %v53_v6, %v52_v3  ;;  %v5583_v56 = vshrl.u32 %v321_v52, 7 }
   0x4   :  { %4999 = vmatpush3.bf16.msra.mxu0 %v5476_v5  ;;  %v5503_v13 = vpack.c.bf16 %v55_v9, %v54_v8  ;;  %v58_v14 = vld [vmem:[%s6322_s7] sm:$0xff]  ;;  %v59_v15 = vld [vmem:[%s6322_s7 + $0x8] sm:$0xff]  ;;  %v5513_v16 = vpack.c.bf16 %v57_v11, %v56_v10  ;;  %v60_v18 = vld [vmem:[%s6322_s7 + $0x10] sm:$0xff]  ;;  %v320_v55 = vunpack.c.0.s8 %v319_v51 }
   0x5   :  { %5000 = vmatprep.subr.bf16.mxu0 %v5394_v0  ;;  %v5517_v17 = vpack.c.bf16 %v59_v15, %v58_v14  ;;  %v61_v19 = vld [vmem:[%s6322_s7 + $0x18] sm:$0xff]  ;;  %v67_v22 = vld [vmem:[%s6323_s10] sm:$0xff]  ;;  %v68_v23 = vld [vmem:[%s6323_s10 + $0x8] sm:$0xff]  ;;  %v5596_v63 = vsub.s32 0, %v5583_v56 }
   0x6   :  { %5005 = vmatpush3.bf16.msra.mxu1 %v5503_v13  ;;  %v5533_v21 = vpack.c.bf16 %v61_v19, %v60_v18  ;;  %v5554_v24 = vpack.c.bf16 %v68_v23, %v67_v22  ;;  %v69_v25 = vld [vmem:[%s6323_s10 + $0x10] sm:$0xff]  ;;  %v70_v26 = vld [vmem:[%s6323_s10 + $0x18] sm:$0xff]  ;;  %v293_v28 = vld [vmem:[%s6324_s0] sm:$0x3]  ;;  %v5587_v60 = vsub.s32 %v320_v55, %v5583_v56  ;;  %v361_v18 = vand.u32 127, %v321_v52 }
   0x7   :  { %5006 = vmatprep.subr.bf16.mxu1 %v5394_v0  ;;  %v5564_v27 = vpack.c.bf16 %v70_v26, %v69_v25  ;;  %v301_v30 = vld [vmem:[%s6325_s1] sm:$0x3]  ;;  %v5614_v8 = vld [vmem:[%s6328_s3 + $0x8] sm:$0xff] }
   0x8   :  { %5002 = vmatpush3.bf16.msra.mxu0 %v5501_v12  ;;  %v5577_v43 = vld [vmem:[%s6326_s8] ss:$0 sm:$0xff] }
   0x9   :  { %5009 = vmatprep.subr.bf16.mxu0 %v5394_v0  ;;  %v309_v47 = vld [vmem:[%s6327_s2] sm:$0x3] }
   0xa   :  { %v5526_v20 = vld [vmem:[#allocation2] sm:$0x3]  ;;  %5008 = vmatpush3.bf16.msra.mxu1 %v5513_v16 }
   0xb   :  { %4566 = vmatmul.mubr.msk.f32.vlgmr.msra.gmra.mrb[0].mxu0 %vm73_vm2, %v5526_v20  ;;  %5015 = vmatprep.subr.bf16.mxu1 %v5394_v0  ;;  %v5606_v3 = vld [vmem:[%s6328_s3] sm:$0xff] }
   0xc   :  { %5011 = vmatpush3.bf16.msra.mxu0 %v5517_v17  ;;  %4587 = vmatprep.mubr.msk.f32.mxu0 %vm5395_vm1, %v5396_v4 }
   0xd   :  { %4577 = vmatmul.mubr.msk.f32.vlgmr.msra.gmra.mrb[0].mxu1 %vm73_vm2, %v5526_v20  ;;  %5012 = vmatprep.subr.bf16.mxu0 %v5394_v0 }
   0xe   :  { %4598 = vmatprep.mubr.msk.f32.mxu1 %vm5395_vm1, %v5396_v4  ;;  %5017 = vmatpush3.bf16.msra.mxu1 %v5554_v24 }
   0xf   :  { %5018 = vmatprep.subr.bf16.mxu1 %v5394_v0 }
  0x10   :  { %5014 = vmatpush3.bf16.msra.mxu0 %v5533_v21 }
  0x11   :  { %5021 = vmatprep.subr.bf16.mxu0 %v5394_v0 }
  0x12   :  { %5020 = vmatpush3.bf16.msra.mxu1 %v5564_v27 }
  0x13   :  { %4588 = vmatmul.mubr.msk.f32.vlgmr.msra.gmra.mrb[2].mxu0 %vm73_vm2, %v5526_v20  ;;  %5027 = vmatprep.subr.bf16.mxu1 %v5394_v0 }
  0x14   :  { %4609 = vmatprep.mubr.msk.f32.mxu0 %vm5395_vm1, %v5396_v4 }
  0xde   :  { %v143_v29 = vpop.f32.mrb[0].mxu0 }
  0xdf   :  { %v294_v31 = vadd.f32 %v293_v28, %v143_v29  ;;  %v4567_v32 = vpop.f32.mrb[1].mxu0  ;;  %v5398_v29 = vmov 0  }
  0xe0   :  { %v213_v33 = vpop.f32.mrb[0].mxu1  ;;  %5243 = vset.pattern.permute.xlu0 %v5398_v29  ;;  %5242 = vset.pattern.permute.xlu1 %v5398_v29  ;;  %v4283_v32 = vld [vmem:[%s6324_s0 + $0x2] sm:$0x3] }
  0xe1   :  { %v4275_v34 = vmul.f32 -1.442695, %v294_v31  ;;  %v302_v35 = vadd.f32 %v301_v30, %v213_v33  ;;  %v4578_v36 = vpop.f32.mrb[1].mxu1 }
  0xe3   :  { %5244 = vpow2.f32 %v4275_v34  ;;  %v4276_v37 = vmul.f32 -1.442695, %v302_v35 }
  0xe5   :  { %5246 = vpow2.f32 %v4276_v37 }
  0xe6   :  { %v289_v38 = vpop.f32.mrb[2].mxu0 }
  0xe7   :  { %v4589_v39 = vpop.f32.mrb[3].mxu0  ;;  %v290_v45 = vadd.f32 %v5577_v43, %v289_v38 }
  0xed   :  { %v5245_v40 = vpop.eup %5244 }
  0xee   :  { %v298_v41 = vadd.f32 1.0, %v5245_v40 }
  0xef   :  { %v5247_v42 = vpop.eup %5246 }
  0xf0   :  { %5248 = vrcp.f32 %v298_v41  ;;  %v306_v44 = vadd.f32 1.0, %v5247_v42 }
  0xf2   :  { %5250 = vrcp.f32 %v306_v44 }
  0xfa   :  { %v5249_v46 = vpop.eup %5248 }
  0xfb   :  { %v310_v48 = vmul.f32 %v5249_v46, %v290_v45  ;;  %v5650_v45 = vsub.s32 1, %v5583_v56 }
  0xfc   :  { %v5251_v53 = vpop.eup %5250 }
  0xfd   :  { %v311_v49 = vadd.f32 %v310_v48, %v309_v47  ;;  %v313_v54 = vsub.f32 1.0, %v5251_v53  ;;  %v315_v58 = vmul.f32 %v5251_v53, %v5526_v20  ;;  %v5635_v20 = vsub.s32 %v361_v18, %v5583_v56  ;;  %v65_v18 = vld [vmem:[%s6329_s9 + $0x10] sm:$0xff] }
  0xff   :  { %5252 = vtanh.f32 %v311_v49 }
 0x109   :  { %v5253_v57 = vpop.eup %5252 }
 0x10a   :  { %v314_v59 = vmul.f32 %v5253_v57, %v313_v54 }
 0x10c   :  { %v5589_v61 = vadd.f32 %v315_v58, %v314_v59 }
 0x10e   :  { %4599 = vmatmul.mubr.msk.f32.vlgmr.msra.gmra.mrb[2].mxu1 %vm73_vm2, %v5589_v61  ;;  %v324_v62 = vrot.slane %v5589_v61, %v5587_v60 }
 0x10f   :  { %5029 = vmatpush3.bf16.msra.mxu1 %v5476_v5  ;;  %4620 = vmatprep.mubr.msk.f32.mxu1 %vm5395_vm1, %v5396_v4 }
 0x110   :  { %5030 = vmatprep.subr.bf16.mxu1 %v5394_v0  ;;  %v332_v1 = vrot.slane %v324_v62, %v5587_v60  ;;  %v325_v2 = vcombine.high %v324_v62, %v324_v62 }
 0x112   :  { %v343_v6 = vrot.slane %v332_v1, %v5596_v63  ;;  %v339_v7 = vrot.slane %v325_v2, %v5587_v60 }
 0x113   :  { %5032 = vmatpush3.bf16.msra.mxu1 %v5501_v12 }
 0x114   :  { %5039 = vmatprep.subr.bf16.mxu1 %v5394_v0  ;;  %v350_v9 = vmul.f32 %v343_v6, %v5606_v3  ;;  %v347_v10 = vrot.slane %v339_v7, %v5596_v63 }
 0x116   :  { %4621 = vmatmul.mubr.msk.f32.vlgmr.msra.gmra.mrb[4].mxu1 %vm73_vm2, %v5589_v61  ;;  %v352_v11 = vsel %vm73_vm2, %v350_v9, 0.0  ;;  %v351_v14 = vmul.f32 %v347_v10, %v5614_v8 }
 0x117   :  { %5041 = vmatpush3.bf16.msra.mxu1 %v5517_v17  ;;  %353 = vadd.xlane.f32.xlu0 %v352_v11  ;;  %v63_v11 = vld [vmem:[%s6329_s9] sm:$0xff] }
 0x118   :  { %5042 = vmatprep.subr.bf16.mxu1 %v5394_v0  ;;  %4642 = vmatprep.mubr.msk.f32.mxu1 %vm5395_vm1, %v5396_v4  ;;  %v355_v15 = vsel %vm73_vm2, %v351_v14, 0.0  ;;  %v64_v14 = vld [vmem:[%s6329_s9 + $0x8] sm:$0xff] }
 0x11b   :  { %5044 = vmatpush3.bf16.msra.mxu1 %v5533_v21  ;;  %356 = vadd.xlane.f32.xlu0 %v355_v15  ;;  %v5666_v15 = vpack.c.bf16 %v64_v14, %v63_v11 }
 0x11c   :  { %5051 = vmatprep.subr.bf16.mxu1 %v5394_v0 }
 0x11d   :  { %5023 = vmatpush3.bf16.msra.mxu0 %v5666_v15 }
 0x11e   :  { %4643 = vmatmul.mubr.msk.f32.vlgmr.msra.gmra.mrb[6].mxu1 %vm73_vm2, %v5589_v61  ;;  %5024 = vmatprep.subr.bf16.mxu0 %v5394_v0 }
 0x11f   :  { %4664 = vmatprep.mubr.msk.f32.mxu1 %vm5395_vm1, %v5396_v4  ;;  %5053 = vmatpush3.bf16.msra.mxu1 %v5666_v15 }
 0x120   :  { %5054 = vmatprep.subr.bf16.mxu1 %v5394_v0 }
 0x1a4   :  { %v354_v19 = vpop.xlane.xlu0 %353 }
 0x1a5   :  { %v365_v23 = vrot.slane %v354_v19, %v5635_v20 }
 0x1a8   :  { %v357_v22 = vpop.xlane.xlu0 %356 }
 0x1a9   :  { %v369_v25 = vrot.slane %v357_v22, %v5635_v20 }
 0x1ab   :  { %v371_v26 = vsel %vm370_vm3, %v369_v25, %v365_v23 }
 0x1ac   :  { %v374_v28 = vsel %vm373_vm4, %v371_v26, -inf }
 0x1ad   :  { %375 = vmax.xlane.f32.xlu1 %v374_v28 }
 0x1e1   :  { %v5641_v30 = vpop.f32.mrb[2].mxu1 }
 0x1e2   :  { %v4600_v31 = vpop.f32.mrb[3].mxu1 }
 0x1e9   :  { %v678_v33 = vpop.f32.mrb[4].mxu1 }
 0x1ea   :  { %v824_v34 = vadd.f32 %v4283_v32, %v678_v33  ;;  %v4622_v35 = vpop.f32.mrb[5].mxu1 }
 0x1ec   :  { %v4284_v36 = vmul.f32 -1.442695, %v824_v34 }
 0x1ee   :  { %5254 = vpow2.f32 %v4284_v36 }
 0x1f1   :  { %v818_v37 = vpop.f32.mrb[6].mxu1 }
 0x1f2   :  { %v4644_v38 = vpop.f32.mrb[7].mxu1  ;;  %v819_v41 = vadd.f32 %v5577_v43, %v818_v37 }
 0x1f8   :  { %v5255_v39 = vpop.eup %5254 }
 0x1f9   :  { %v828_v40 = vadd.f32 1.0, %v5255_v39 }
 0x1fb   :  { %5256 = vrcp.f32 %v828_v40 }
 0x205   :  { %v5257_v42 = vpop.eup %5256 }
 0x206   :  { %v5647_v44 = vmul.f32 %v5257_v42, %v819_v41 }
 0x23a   :  { %v376_v46 = vpop.xlane.xlu1 %375 }
 0x23b   :  { %v381_v47 = vrot.slane %v376_v46, %v5596_v63  ;;  %v385_v48 = vrot.slane %v376_v46, %v5650_v45 }
 0x23d   :  { %v388_v49 = vsub.f32 %v354_v19, %v381_v47  ;;  %v389_v50 = vsub.f32 %v357_v22, %v385_v48  ;;  %v66_v19 = vld [vmem:[%s6329_s9 + $0x18] sm:$0xff]  ;;  %v5707_v48 = vld [vmem:[%s6330_s11] ss:$0 sm:$0xff] }
 0x23e   :  { %v5678_v22 = vpack.c.bf16 %v66_v19, %v65_v18 }
 0x23f   :  { %v390_v51 = vmul.f32 1.442695, %v388_v49  ;;  %v392_v52 = vmul.f32 1.442695, %v389_v50 }
 0x240   :  { %5026 = vmatpush3.bf16.msra.mxu0 %v5678_v22  ;;  %5056 = vmatpush3.bf16.msra.mxu1 %v5678_v22 }
 0x241   :  { %5258 = vpow2.f32 %v390_v51  ;;  %5033 = vmatprep.subr.bf16.mxu0 %v5394_v0  ;;  %5063 = vmatprep.subr.bf16.mxu1 %v5394_v0 }
 0x242   :  { %5260 = vpow2.f32 %v392_v52 }
 0x24b   :  { %v5259_v53 = vpop.eup %5258 }
 0x24c   :  { %v5261_v54 = vpop.eup %5260  ;;  %397 = vperm.xlu1 %5242, %v5259_v53  }
 0x24d   :  { %400 = vperm.xlu0 %5243, %v5261_v54  }
 0x2cb   :  { %v398_v55 = vpop.permute.xlu1 %397 }
 0x2cc   :  { %v401_v57 = vpop.permute.xlu0 %400  ;;  %v405_v56 = vrot.slane %v398_v55, %v5635_v20 }
 0x2cd   :  { %v409_v58 = vrot.slane %v401_v57, %v5635_v20 }
 0x2cf   :  { %v410_v59 = vsel %vm370_vm3, %v409_v58, %v405_v56 }
 0x2d0   :  { %v412_v62 = vsel %vm373_vm4, %v410_v59, 0.0 }
 0x2d1   :  { %413 = vadd.xlane.f32.xlu1 %v412_v62 }
 0x35e   :  { %v414_v1 = vpop.xlane.xlu1 %413 }
 0x35f   :  { %5262 = vrcp.f32 %v414_v1 }
 0x369   :  { %v5263_v2 = vpop.eup %5262 }
 0x36a   :  { %v420_v6 = vrot.slane %v5263_v2, %v5596_v63  ;;  %v424_v9 = vrot.slane %v5263_v2, %v5650_v45 }
 0x36c   :  { %v427_v7 = vmul.f32 %v5259_v53, %v420_v6  ;;  %v428_v10 = vmul.f32 %v5261_v54, %v424_v9  ;;  %v4285_v53 = vld [vmem:[%s6325_s1 + $0x2] sm:$0x3] }
 0x36e   :  { %431 = vperm.xlu0 %5243, %v427_v7  }
 0x372   :  { %436 = vperm.xlu0 %5243, %v428_v10  }
 0x3ed   :  { %v432_v23 = vpop.permute.xlu0 %431 }
 0x3ee   :  { %v439_v25 = vmul.f32 %v432_v23, %v5606_v3 }
 0x3f0   :  { %v441_v26 = vsel %vm73_vm2, %v439_v25, 0.0 }
 0x3f1   :  { %v442_v28 = vrot.slane %v441_v26, 4  ;;  %v437_v29 = vpop.permute.xlu0 %436 }
 0x3f2   :  { %v440_v31 = vmul.f32 %v437_v29, %v5614_v8 }
 0x3f3   :  { %v443_v32 = vadd.f32 %v442_v28, %v441_v26 }
 0x3f4   :  { %v448_v33 = vsel %vm73_vm2, %v440_v31, 0.0 }
 0x3f5   :  { %v444_v34 = vrot.slane %v443_v32, 2  ;;  %v449_v35 = vrot.slane %v448_v33, 4 }
 0x3f7   :  { %v445_v36 = vadd.f32 %v444_v34, %v443_v32  ;;  %v450_v37 = vadd.f32 %v449_v35, %v448_v33 }
 0x3f9   :  { %v451_v38 = vrot.slane %v450_v37, 2  ;;  %v446_v39 = vrot.slane %v445_v36, 1 }
 0x3fb   :  { %v452_v40 = vadd.f32 %v451_v38, %v450_v37  ;;  %v447_v42 = vadd.f32 %v446_v39, %v445_v36  ;;  %v4294_v39 = vld [vmem:[%s6324_s0 + $0x4] sm:$0x3] }
 0x3fd   :  { %v453_v41 = vrot.slane %v452_v40, 1 }
 0x3ff   :  { %v454_v46 = vadd.f32 %v453_v41, %v452_v40 }
 0x401   :  { %v529_v47 = vsel %vm370_vm3, %v454_v46, %v447_v42 }
 0x402   :  { %4610 = vmatmul.mubr.msk.f32.vlgmr.msra.gmra.mrb[4].mxu0 %vm73_vm2, %v529_v47 }
 0x403   :  { %5035 = vmatpush3.bf16.msra.mxu0 %v5503_v13  ;;  %4631 = vmatprep.mubr.msk.f32.mxu0 %vm5395_vm1, %v5396_v4 }
 0x404   :  { %5036 = vmatprep.subr.bf16.mxu0 %v5394_v0 }
 0x407   :  { %5038 = vmatpush3.bf16.msra.mxu0 %v5513_v16 }
 0x408   :  { %5045 = vmatprep.subr.bf16.mxu0 %v5394_v0 }
 0x40a   :  { %4632 = vmatmul.mubr.msk.f32.vlgmr.msra.gmra.mrb[6].mxu0 %vm73_vm2, %v5589_v61 }
 0x40b   :  { %5047 = vmatpush3.bf16.msra.mxu0 %v5554_v24  ;;  %4653 = vmatprep.mubr.msk.f32.mxu0 %vm5395_vm1, %v5396_v4 }
 0x40c   :  { %5048 = vmatprep.subr.bf16.mxu0 %v5394_v0 }
 0x40f   :  { %5050 = vmatpush3.bf16.msra.mxu0 %v5564_v27 }
 0x410   :  { %5057 = vmatprep.subr.bf16.mxu0 %v5394_v0 }
 0x4d5   :  { %v598_v49 = vpop.f32.mrb[4].mxu0 }
 0x4d6   :  { %v599_v50 = vadd.f32 %v598_v49, %v5641_v30  ;;  %v4611_v51 = vpop.f32.mrb[5].mxu0  ;;  %v4287_v30 = vld [vmem:[%s6327_s2 + $0x2] sm:$0x3] }
 0x4d7   :  { %v843_v62 = vadd.f32 %v4287_v30, %v5647_v44 }
 0x4d8   :  { %v608_v52 = vadd.f32 %v5707_v48, %v599_v50 }
 0x4da   :  { %5264 = vtanh.f32 %v608_v52 }
 0x4dd   :  { %v748_v54 = vpop.f32.mrb[6].mxu0 }
 0x4de   :  { %v833_v55 = vadd.f32 %v4285_v53, %v748_v54  ;;  %v4633_v57 = vpop.f32.mrb[7].mxu0 }
 0x4e0   :  { %v4286_v56 = vmul.f32 -1.442695, %v833_v55 }
 0x4e2   :  { %5266 = vpow2.f32 %v4286_v56 }
 0x4e4   :  { %v5265_v58 = vpop.eup %5264 }
 0x4e5   :  { %611 = vst.msk [vmem:[%s6331_s12] sm:$0x3] %vm46_vm0, %v5265_v58 }
 0x4ec   :  { %v5267_v59 = vpop.eup %5266 }
 0x4ed   :  { %v837_v1 = vadd.f32 1.0, %v5267_v59 }
 0x4ef   :  { %5268 = vrcp.f32 %v837_v1 }
 0x4f0   :  { %5270 = vtanh.f32 %v843_v62 }
 0x4f9   :  { %v5269_v2 = vpop.eup %5268 }
 0x4fa   :  { %v845_v6 = vsub.f32 1.0, %v5269_v2  ;;  %v5271_v7 = vpop.eup %5270  ;;  %v847_v10 = vmul.f32 %v5269_v2, %v5589_v61 }
 0x4fc   :  { %v846_v9 = vmul.f32 %v5271_v7, %v845_v6 }
 0x4fe   :  { %v5723_v11 = vadd.f32 %v847_v10, %v846_v9 }
 0x500   :  { %4654 = vmatmul.mubr.msk.f32.vlgmr.msra.gmra.mrb[8].mxu0 %vm73_vm2, %v5723_v11  ;;  %v856_v14 = vrot.slane %v5723_v11, %v5587_v60 }
 0x501   :  { %5059 = vmatpush3.bf16.msra.mxu0 %v5476_v5  ;;  %4675 = vmatprep.mubr.msk.f32.mxu0 %vm5395_vm1, %v5396_v4 }
 0x502   :  { %5060 = vmatprep.subr.bf16.mxu0 %v5394_v0  ;;  %v864_v44 = vrot.slane %v856_v14, %v5587_v60  ;;  %v857_v18 = vcombine.high %v856_v14, %v856_v14 }
 0x504   :  { %v875_v61 = vrot.slane %v864_v44, %v5596_v63  ;;  %v871_v19 = vrot.slane %v857_v18, %v5587_v60 }
 0x505   :  { %5062 = vmatpush3.bf16.msra.mxu0 %v5501_v12 }
 0x506   :  { %5069 = vmatprep.subr.bf16.mxu0 %v5394_v0  ;;  %v882_v23 = vmul.f32 %v875_v61, %v5606_v3  ;;  %v879_v25 = vrot.slane %v871_v19, %v5596_v63 }
 0x508   :  { %4676 = vmatmul.mubr.msk.f32.vlgmr.msra.gmra.mrb[10].mxu0 %vm73_vm2, %v5723_v11  ;;  %v884_v26 = vsel %vm73_vm2, %v882_v23, 0.0  ;;  %v883_v28 = vmul.f32 %v879_v25, %v5614_v8 }
 0x509   :  { %5071 = vmatpush3.bf16.msra.mxu0 %v5517_v17  ;;  %885 = vadd.xlane.f32.xlu1 %v884_v26 }
 0x50a   :  { %5072 = vmatprep.subr.bf16.mxu0 %v5394_v0  ;;  %v887_v29 = vsel %vm73_vm2, %v883_v28, 0.0  ;;  %4697 = vmatprep.mubr.msk.f32.mxu0 %vm5395_vm1, %v5396_v4 }
 0x50b   :  { %888 = vadd.xlane.f32.xlu0 %v887_v29 }
 0x50d   :  { %5074 = vmatpush3.bf16.msra.mxu0 %v5533_v21 }
 0x50e   :  { %5081 = vmatprep.subr.bf16.mxu0 %v5394_v0 }
 0x510   :  { %4698 = vmatmul.mubr.msk.f32.vlgmr.msra.gmra.mrb[12].mxu0 %vm73_vm2, %v5723_v11 }
 0x511   :  { %5083 = vmatpush3.bf16.msra.mxu0 %v5666_v15  ;;  %4719 = vmatprep.mubr.msk.f32.mxu0 %vm5395_vm1, %v5396_v4 }
 0x512   :  { %5084 = vmatprep.subr.bf16.mxu0 %v5394_v0 }
 0x515   :  { %5086 = vmatpush3.bf16.msra.mxu0 %v5678_v22 }
 0x516   :  { %5093 = vmatprep.subr.bf16.mxu0 %v5394_v0 }
 0x596   :  { %v886_v31 = vpop.xlane.xlu1 %885 }
 0x597   :  { %v895_v33 = vrot.slane %v886_v31, %v5635_v20 }
 0x598   :  { %v889_v32 = vpop.xlane.xlu0 %888 }
 0x599   :  { %v899_v34 = vrot.slane %v889_v32, %v5635_v20 }
 0x59b   :  { %v900_v35 = vsel %vm370_vm3, %v899_v34, %v895_v33 }
 0x59c   :  { %v902_v36 = vsel %vm373_vm4, %v900_v35, -inf }
 0x59d   :  { %903 = vmax.xlane.f32.xlu1 %v902_v36 }
 0x5d3   :  { %v5763_v37 = vpop.f32.mrb[8].mxu0 }
 0x5d4   :  { %v4655_v38 = vpop.f32.mrb[9].mxu0 }
 0x5db   :  { %v1200_v40 = vpop.f32.mrb[10].mxu0 }
 0x5dc   :  { %v1346_v41 = vadd.f32 %v4294_v39, %v1200_v40  ;;  %v4677_v42 = vpop.f32.mrb[11].mxu0 }
 0x5de   :  { %v4295_v46 = vmul.f32 -1.442695, %v1346_v41 }
 0x5e0   :  { %5272 = vpow2.f32 %v4295_v46 }
 0x5e3   :  { %v1340_v47 = vpop.f32.mrb[12].mxu0 }
 0x5e4   :  { %v4699_v49 = vpop.f32.mrb[13].mxu0  ;;  %v1341_v52 = vadd.f32 %v5577_v43, %v1340_v47 }
 0x5ea   :  { %v5273_v50 = vpop.eup %5272 }
 0x5eb   :  { %v1350_v51 = vadd.f32 1.0, %v5273_v50 }
 0x5ed   :  { %5274 = vrcp.f32 %v1350_v51 }
 0x5f7   :  { %v5275_v53 = vpop.eup %5274 }
 0x5f8   :  { %v5769_v54 = vmul.f32 %v5275_v53, %v1341_v52 }
 0x62a   :  { %v904_v55 = vpop.xlane.xlu1 %903 }
 0x62b   :  { %v909_v57 = vrot.slane %v904_v55, %v5596_v63  ;;  %v913_v56 = vrot.slane %v904_v55, %v5650_v45 }
 0x62d   :  { %v916_v58 = vsub.f32 %v886_v31, %v909_v57  ;;  %v917_v30 = vsub.f32 %v889_v32, %v913_v56 }
 0x62f   :  { %v918_v59 = vmul.f32 1.442695, %v916_v58  ;;  %v920_v62 = vmul.f32 1.442695, %v917_v30  ;;  %v4296_v58 = vld [vmem:[%s6325_s1 + $0x4] sm:$0x3] }
 0x631   :  { %5276 = vpow2.f32 %v918_v59 }
 0x632   :  { %5278 = vpow2.f32 %v920_v62 }
 0x63b   :  { %v5277_v1 = vpop.eup %5276 }
 0x63c   :  { %925 = vperm.xlu1 %5242, %v5277_v1   ;;  %v5279_v2 = vpop.eup %5278 }
 0x640   :  { %928 = vperm.xlu1 %5242, %v5279_v2  }
 0x6bb   :  { %v926_v6 = vpop.permute.xlu1 %925 }
 0x6bc   :  { %v933_v9 = vrot.slane %v926_v6, %v5635_v20 }
 0x6bf   :  { %v929_v7 = vpop.permute.xlu1 %928 }
 0x6c0   :  { %v937_v10 = vrot.slane %v929_v7, %v5635_v20 }
 0x6c2   :  { %v938_v14 = vsel %vm370_vm3, %v937_v10, %v933_v9 }
 0x6c3   :  { %v940_v44 = vsel %vm373_vm4, %v938_v14, 0.0 }
 0x6c4   :  { %941 = vadd.xlane.f32.xlu1 %v940_v44 }
 0x751   :  { %v942_v18 = vpop.xlane.xlu1 %941 }
 0x752   :  { %5280 = vrcp.f32 %v942_v18 }
 0x75c   :  { %v5281_v61 = vpop.eup %5280 }
 0x75d   :  { %v948_v19 = vrot.slane %v5281_v61, %v5596_v63  ;;  %v952_v25 = vrot.slane %v5281_v61, %v5650_v45 }
 0x75f   :  { %v955_v23 = vmul.f32 %v5277_v1, %v948_v19  ;;  %v956_v26 = vmul.f32 %v5279_v2, %v952_v25 }
 0x761   :  { %959 = vperm.xlu0 %5243, %v955_v23  }
 0x765   :  { %964 = vperm.xlu0 %5243, %v956_v26  }
 0x7e0   :  { %v960_v28 = vpop.permute.xlu0 %959 }
 0x7e1   :  { %v967_v29 = vmul.f32 %v960_v28, %v5606_v3 }
 0x7e3   :  { %v969_v31 = vsel %vm73_vm2, %v967_v29, 0.0 }
 0x7e4   :  { %v970_v32 = vrot.slane %v969_v31, 4  ;;  %v965_v33 = vpop.permute.xlu0 %964 }
 0x7e5   :  { %v968_v34 = vmul.f32 %v965_v33, %v5614_v8 }
 0x7e6   :  { %v971_v35 = vadd.f32 %v970_v32, %v969_v31 }
 0x7e7   :  { %v976_v36 = vsel %vm73_vm2, %v968_v34, 0.0 }
 0x7e8   :  { %v972_v38 = vrot.slane %v971_v35, 2  ;;  %v977_v39 = vrot.slane %v976_v36, 4 }
 0x7ea   :  { %v973_v40 = vadd.f32 %v972_v38, %v971_v35  ;;  %v978_v41 = vadd.f32 %v977_v39, %v976_v36 }
 0x7ec   :  { %v979_v42 = vrot.slane %v978_v41, 2  ;;  %v974_v46 = vrot.slane %v973_v40, 1 }
 0x7ee   :  { %v980_v47 = vadd.f32 %v979_v42, %v978_v41  ;;  %v975_v50 = vadd.f32 %v974_v46, %v973_v40  ;;  %v4305_v46 = vld [vmem:[%s6324_s0 + $0x6] sm:$0x3] }
 0x7f0   :  { %v981_v49 = vrot.slane %v980_v47, 1 }
 0x7f2   :  { %v982_v51 = vadd.f32 %v981_v49, %v980_v47 }
 0x7f4   :  { %v1057_v52 = vsel %vm370_vm3, %v982_v51, %v975_v50 }
 0x7f5   :  { %4665 = vmatmul.mubr.msk.f32.vlgmr.msra.gmra.mrb[8].mxu1 %vm73_vm2, %v1057_v52 }
 0x7f6   :  { %5065 = vmatpush3.bf16.msra.mxu1 %v5503_v13  ;;  %4686 = vmatprep.mubr.msk.f32.mxu1 %vm5395_vm1, %v5396_v4 }
 0x7f7   :  { %5066 = vmatprep.subr.bf16.mxu1 %v5394_v0 }
 0x7fa   :  { %5068 = vmatpush3.bf16.msra.mxu1 %v5513_v16 }
 0x7fb   :  { %5075 = vmatprep.subr.bf16.mxu1 %v5394_v0 }
 0x7fd   :  { %4687 = vmatmul.mubr.msk.f32.vlgmr.msra.gmra.mrb[10].mxu1 %vm73_vm2, %v5723_v11 }
 0x7fe   :  { %5077 = vmatpush3.bf16.msra.mxu1 %v5554_v24  ;;  %4708 = vmatprep.mubr.msk.f32.mxu1 %vm5395_vm1, %v5396_v4 }
 0x7ff   :  { %5078 = vmatprep.subr.bf16.mxu1 %v5394_v0 }
 0x802   :  { %5080 = vmatpush3.bf16.msra.mxu1 %v5564_v27 }
 0x803   :  { %5087 = vmatprep.subr.bf16.mxu1 %v5394_v0 }
 0x8c8   :  { %v1126_v53 = vpop.f32.mrb[8].mxu1 }
 0x8c9   :  { %v1127_v55 = vadd.f32 %v1126_v53, %v5763_v37  ;;  %v4666_v57 = vpop.f32.mrb[9].mxu1  ;;  %v4298_v37 = vld [vmem:[%s6327_s2 + $0x4] sm:$0x3] }
 0x8ca   :  { %v1365_v7 = vadd.f32 %v4298_v37, %v5769_v54 }
 0x8cb   :  { %v1130_v56 = vadd.f32 %v5707_v48, %v1127_v55 }
 0x8cd   :  { %5282 = vtanh.f32 %v1130_v56 }
 0x8d0   :  { %v1270_v30 = vpop.f32.mrb[10].mxu1 }
 0x8d1   :  { %v1355_v59 = vadd.f32 %v4296_v58, %v1270_v30  ;;  %v4688_v62 = vpop.f32.mrb[11].mxu1 }
 0x8d3   :  { %v4297_v1 = vmul.f32 -1.442695, %v1355_v59 }
 0x8d5   :  { %5284 = vpow2.f32 %v4297_v1 }
 0x8d7   :  { %v5283_v2 = vpop.eup %5282 }
 0x8d8   :  { %4290 = vst.msk [vmem:[%s6331_s12 + $0x2] sm:$0x3] %vm46_vm0, %v5283_v2 }
 0x8df   :  { %v5285_v6 = vpop.eup %5284 }
 0x8e0   :  { %v1359_v9 = vadd.f32 1.0, %v5285_v6 }
 0x8e2   :  { %5286 = vrcp.f32 %v1359_v9 }
 0x8e3   :  { %5288 = vtanh.f32 %v1365_v7 }
 0x8ec   :  { %v5287_v10 = vpop.eup %5286 }
 0x8ed   :  { %v1367_v14 = vsub.f32 1.0, %v5287_v10  ;;  %v5289_v44 = vpop.eup %5288  ;;  %v1369_v61 = vmul.f32 %v5287_v10, %v5723_v11 }
 0x8ef   :  { %v1368_v18 = vmul.f32 %v5289_v44, %v1367_v14 }
 0x8f1   :  { %v5813_v19 = vadd.f32 %v1369_v61, %v1368_v18 }
 0x8f3   :  { %4709 = vmatmul.mubr.msk.f32.vlgmr.msra.gmra.mrb[12].mxu1 %vm73_vm2, %v5813_v19  ;;  %v1378_v23 = vrot.slane %v5813_v19, %v5587_v60 }
 0x8f4   :  { %5089 = vmatpush3.bf16.msra.mxu1 %v5476_v5  ;;  %4730 = vmatprep.mubr.msk.f32.mxu1 %vm5395_vm1, %v5396_v4 }
 0x8f5   :  { %5090 = vmatprep.subr.bf16.mxu1 %v5394_v0  ;;  %v1386_v54 = vrot.slane %v1378_v23, %v5587_v60  ;;  %v1379_v25 = vcombine.high %v1378_v23, %v1378_v23 }
 0x8f7   :  { %v1397_v11 = vrot.slane %v1386_v54, %v5596_v63  ;;  %v1393_v26 = vrot.slane %v1379_v25, %v5587_v60 }
 0x8f8   :  { %5092 = vmatpush3.bf16.msra.mxu1 %v5501_v12 }
 0x8f9   :  { %5099 = vmatprep.subr.bf16.mxu1 %v5394_v0  ;;  %v1404_v28 = vmul.f32 %v1397_v11, %v5606_v3  ;;  %v1401_v29 = vrot.slane %v1393_v26, %v5596_v63 }
 0x8fb   :  { %4731 = vmatmul.mubr.msk.f32.vlgmr.msra.gmra.mrb[14].mxu1 %vm73_vm2, %v5813_v19  ;;  %v1406_v31 = vsel %vm73_vm2, %v1404_v28, 0.0  ;;  %v1405_v32 = vmul.f32 %v1401_v29, %v5614_v8 }
 0x8fc   :  { %5101 = vmatpush3.bf16.msra.mxu1 %v5517_v17  ;;  %1407 = vadd.xlane.f32.xlu0 %v1406_v31 }
 0x8fd   :  { %5102 = vmatprep.subr.bf16.mxu1 %v5394_v0  ;;  %v1409_v33 = vsel %vm73_vm2, %v1405_v32, 0.0  ;;  %4752 = vmatprep.mubr.msk.f32.mxu1 %vm5395_vm1, %v5396_v4 }
 0x8fe   :  { %1410 = vadd.xlane.f32.xlu1 %v1409_v33 }
 0x900   :  { %5104 = vmatpush3.bf16.msra.mxu1 %v5533_v21 }
 0x901   :  { %5111 = vmatprep.subr.bf16.mxu1 %v5394_v0 }
 0x903   :  { %4753 = vmatmul.mubr.msk.f32.vlgmr.msra.gmra.mrb[16].mxu1 %vm73_vm2, %v5813_v19 }
 0x904   :  { %5113 = vmatpush3.bf16.msra.mxu1 %v5666_v15  ;;  %4774 = vmatprep.mubr.msk.f32.mxu1 %vm5395_vm1, %v5396_v4 }
 0x905   :  { %5114 = vmatprep.subr.bf16.mxu1 %v5394_v0 }
 0x908   :  { %5116 = vmatpush3.bf16.msra.mxu1 %v5678_v22 }
 0x909   :  { %5123 = vmatprep.subr.bf16.mxu1 %v5394_v0 }
 0x989   :  { %v1408_v34 = vpop.xlane.xlu0 %1407 }
 0x98a   :  { %v1417_v36 = vrot.slane %v1408_v34, %v5635_v20 }
 0x98b   :  { %v1411_v35 = vpop.xlane.xlu1 %1410 }
 0x98c   :  { %v1421_v38 = vrot.slane %v1411_v35, %v5635_v20 }
 0x98e   :  { %v1422_v39 = vsel %vm370_vm3, %v1421_v38, %v1417_v36 }
 0x98f   :  { %v1424_v40 = vsel %vm373_vm4, %v1422_v39, -inf }
 0x990   :  { %1425 = vmax.xlane.f32.xlu1 %v1424_v40 }
 0x9c6   :  { %v5853_v41 = vpop.f32.mrb[12].mxu1 }
 0x9c7   :  { %v4710_v42 = vpop.f32.mrb[13].mxu1 }
 0x9ce   :  { %v1722_v47 = vpop.f32.mrb[14].mxu1 }
 0x9cf   :  { %v1868_v49 = vadd.f32 %v4305_v46, %v1722_v47  ;;  %v4732_v50 = vpop.f32.mrb[15].mxu1 }
 0x9d1   :  { %v4306_v51 = vmul.f32 -1.442695, %v1868_v49 }
 0x9d3   :  { %5290 = vpow2.f32 %v4306_v51 }
 0x9d6   :  { %v1862_v52 = vpop.f32.mrb[16].mxu1 }
 0x9d7   :  { %v4754_v53 = vpop.f32.mrb[17].mxu1  ;;  %v1863_v56 = vadd.f32 %v5577_v43, %v1862_v52 }
 0x9dd   :  { %v5291_v55 = vpop.eup %5290 }
 0x9de   :  { %v1872_v57 = vadd.f32 1.0, %v5291_v55 }
 0x9e0   :  { %5292 = vrcp.f32 %v1872_v57 }
 0x9ea   :  { %v5293_v58 = vpop.eup %5292 }
 0x9eb   :  { %v5859_v30 = vmul.f32 %v5293_v58, %v1863_v56 }
 0xa1d   :  { %v1426_v59 = vpop.xlane.xlu1 %1425 }
 0xa1e   :  { %v1431_v62 = vrot.slane %v1426_v59, %v5596_v63  ;;  %v1435_v1 = vrot.slane %v1426_v59, %v5650_v45 }
 0xa20   :  { %v1438_v2 = vsub.f32 %v1408_v34, %v1431_v62  ;;  %v1439_v37 = vsub.f32 %v1411_v35, %v1435_v1  ;;  %v4307_v1 = vld [vmem:[%s6325_s1 + $0x6] sm:$0x3] }
 0xa22   :  { %v1440_v6 = vmul.f32 1.442695, %v1438_v2  ;;  %v1442_v7 = vmul.f32 1.442695, %v1439_v37 }
 0xa24   :  { %5294 = vpow2.f32 %v1440_v6 }
 0xa25   :  { %5296 = vpow2.f32 %v1442_v7 }
 0xa2e   :  { %v5295_v9 = vpop.eup %5294 }
 0xa2f   :  { %1447 = vperm.xlu1 %5242, %v5295_v9   ;;  %v5297_v10 = vpop.eup %5296 }
 0xa33   :  { %1450 = vperm.xlu1 %5242, %v5297_v10  }
 0xaae   :  { %v1448_v14 = vpop.permute.xlu1 %1447 }
 0xaaf   :  { %v1455_v44 = vrot.slane %v1448_v14, %v5635_v20 }
 0xab2   :  { %v1451_v43 = vpop.permute.xlu1 %1450 }
 0xab3   :  { %v1459_v18 = vrot.slane %v1451_v43, %v5635_v20 }
 0xab5   :  { %v1460_v61 = vsel %vm370_vm3, %v1459_v18, %v1455_v44 }
 0xab6   :  { %v1462_v23 = vsel %vm373_vm4, %v1460_v61, 0.0 }
 0xab7   :  { %1463 = vadd.xlane.f32.xlu0 %v1462_v23 }
 0xb44   :  { %v1464_v54 = vpop.xlane.xlu0 %1463 }
 0xb45   :  { %5298 = vrcp.f32 %v1464_v54 }
 0xb4f   :  { %v5299_v25 = vpop.eup %5298 }
 0xb50   :  { %v1474_v11 = vrot.slane %v5299_v25, %v5650_v45  ;;  %v1470_v26 = vrot.slane %v5299_v25, %v5596_v63 }
 0xb52   :  { %v1478_v28 = vmul.f32 %v5297_v10, %v1474_v11  ;;  %v1477_v29 = vmul.f32 %v5295_v9, %v1470_v26 }
 0xb54   :  { %1486 = vperm.xlu0 %5243, %v1478_v28   ;;  %1481 = vperm.xlu1 %5242, %v1477_v29  }
 0xbd3   :  { %v1487_v31 = vpop.permute.xlu0 %1486  ;;  %v1482_v32 = vpop.permute.xlu1 %1481 }
 0xbd4   :  { %v1490_v33 = vmul.f32 %v1487_v31, %v5614_v8  ;;  %v1489_v34 = vmul.f32 %v1482_v32, %v5606_v3 }
 0xbd6   :  { %v1498_v35 = vsel %vm73_vm2, %v1490_v33, 0.0  ;;  %v1491_v36 = vsel %vm73_vm2, %v1489_v34, 0.0 }
 0xbd7   :  { %v1499_v38 = vrot.slane %v1498_v35, 4  ;;  %v1492_v39 = vrot.slane %v1491_v36, 4 }
 0xbd9   :  { %v1500_v40 = vadd.f32 %v1499_v38, %v1498_v35  ;;  %v1493_v42 = vadd.f32 %v1492_v39, %v1491_v36 }
 0xbdb   :  { %v1501_v46 = vrot.slane %v1500_v40, 2  ;;  %v1494_v47 = vrot.slane %v1493_v42, 2 }
 0xbdd   :  { %v1502_v49 = vadd.f32 %v1501_v46, %v1500_v40  ;;  %v1495_v50 = vadd.f32 %v1494_v47, %v1493_v42  ;;  %v4316_v46 = vld [vmem:[%s6324_s0 + $0x8] sm:$0x3] }
 0xbdf   :  { %v1503_v51 = vrot.slane %v1502_v49, 1  ;;  %v1496_v52 = vrot.slane %v1495_v50, 1 }
 0xbe1   :  { %v1504_v53 = vadd.f32 %v1503_v51, %v1502_v49  ;;  %v1497_v55 = vadd.f32 %v1496_v52, %v1495_v50 }
 0xbe3   :  { %v1579_v57 = vsel %vm370_vm3, %v1504_v53, %v1497_v55 }
 0xbe4   :  { %4720 = vmatmul.mubr.msk.f32.vlgmr.msra.gmra.mrb[14].mxu0 %vm73_vm2, %v1579_v57 }
 0xbe5   :  { %5095 = vmatpush3.bf16.msra.mxu0 %v5503_v13  ;;  %4741 = vmatprep.mubr.msk.f32.mxu0 %vm5395_vm1, %v5396_v4 }
 0xbe6   :  { %5096 = vmatprep.subr.bf16.mxu0 %v5394_v0 }
 0xbe9   :  { %5098 = vmatpush3.bf16.msra.mxu0 %v5513_v16 }
 0xbea   :  { %5105 = vmatprep.subr.bf16.mxu0 %v5394_v0 }
 0xbec   :  { %4742 = vmatmul.mubr.msk.f32.vlgmr.msra.gmra.mrb[16].mxu0 %vm73_vm2, %v5813_v19 }
 0xbed   :  { %5107 = vmatpush3.bf16.msra.mxu0 %v5554_v24  ;;  %4763 = vmatprep.mubr.msk.f32.mxu0 %vm5395_vm1, %v5396_v4 }
 0xbee   :  { %5108 = vmatprep.subr.bf16.mxu0 %v5394_v0 }
 0xbf1   :  { %5110 = vmatpush3.bf16.msra.mxu0 %v5564_v27 }
 0xbf2   :  { %5117 = vmatprep.subr.bf16.mxu0 %v5394_v0 }
 0xcb7   :  { %v1648_v56 = vpop.f32.mrb[14].mxu0 }
 0xcb8   :  { %v1649_v58 = vadd.f32 %v1648_v56, %v5853_v41  ;;  %v4721_v59 = vpop.f32.mrb[15].mxu0  ;;  %v4309_v41 = vld [vmem:[%s6327_s2 + $0x6] sm:$0x3]  ;;  %v5951_v56 = vld [vmem:[%s6326_s8] ss:$0 sm:$0xff] }
 0xcb9   :  { %v1887_v14 = vadd.f32 %v4309_v41, %v5859_v30 }
 0xcba   :  { %v1652_v62 = vadd.f32 %v5707_v48, %v1649_v58 }
 0xcbc   :  { %5300 = vtanh.f32 %v1652_v62 }
 0xcbf   :  { %v1792_v2 = vpop.f32.mrb[16].mxu0 }
 0xcc0   :  { %v1877_v37 = vadd.f32 %v4307_v1, %v1792_v2  ;;  %v4743_v6 = vpop.f32.mrb[17].mxu0 }
 0xcc2   :  { %v4308_v7 = vmul.f32 -1.442695, %v1877_v37 }
 0xcc4   :  { %5302 = vpow2.f32 %v4308_v7 }
 0xcc6   :  { %v5301_v9 = vpop.eup %5300 }
 0xcc7   :  { %4301 = vst.msk [vmem:[%s6331_s12 + $0x4] sm:$0x3] %vm46_vm0, %v5301_v9 }
 0xcce   :  { %v5303_v10 = vpop.eup %5302 }
 0xccf   :  { %v1881_v43 = vadd.f32 1.0, %v5303_v10 }
 0xcd1   :  { %5304 = vrcp.f32 %v1881_v43 }
 0xcd2   :  { %5306 = vtanh.f32 %v1887_v14 }
 0xcdb   :  { %v5305_v44 = vpop.eup %5304 }
 0xcdc   :  { %v1889_v18 = vsub.f32 1.0, %v5305_v44  ;;  %v5307_v61 = vpop.eup %5306  ;;  %v1891_v54 = vmul.f32 %v5305_v44, %v5813_v19 }
 0xcde   :  { %v1890_v23 = vmul.f32 %v5307_v61, %v1889_v18 }
 0xce0   :  { %v5903_v25 = vadd.f32 %v1891_v54, %v1890_v23 }
 0xce2   :  { %4764 = vmatmul.mubr.msk.f32.vlgmr.msra.gmra.mrb[18].mxu0 %vm73_vm2, %v5903_v25  ;;  %v1900_v11 = vrot.slane %v5903_v25, %v5587_v60 }
 0xce3   :  { %5119 = vmatpush3.bf16.msra.mxu0 %v5476_v5  ;;  %4785 = vmatprep.mubr.msk.f32.mxu0 %vm5395_vm1, %v5396_v4 }
 0xce4   :  { %5120 = vmatprep.subr.bf16.mxu0 %v5394_v0  ;;  %v1908_v30 = vrot.slane %v1900_v11, %v5587_v60  ;;  %v1901_v26 = vcombine.high %v1900_v11, %v1900_v11 }
 0xce6   :  { %v1919_v19 = vrot.slane %v1908_v30, %v5596_v63  ;;  %v1915_v28 = vrot.slane %v1901_v26, %v5587_v60 }
 0xce7   :  { %5122 = vmatpush3.bf16.msra.mxu0 %v5501_v12 }
 0xce8   :  { %5129 = vmatprep.subr.bf16.mxu0 %v5394_v0  ;;  %v1926_v29 = vmul.f32 %v1919_v19, %v5606_v3  ;;  %v1923_v31 = vrot.slane %v1915_v28, %v5596_v63 }
 0xcea   :  { %4786 = vmatmul.mubr.msk.f32.vlgmr.msra.gmra.mrb[20].mxu0 %vm73_vm2, %v5903_v25  ;;  %v1928_v32 = vsel %vm73_vm2, %v1926_v29, 0.0  ;;  %v1927_v33 = vmul.f32 %v1923_v31, %v5614_v8 }
 0xceb   :  { %5131 = vmatpush3.bf16.msra.mxu0 %v5517_v17  ;;  %1929 = vadd.xlane.f32.xlu1 %v1928_v32  ;;  %v5967_v32 = vld [vmem:[%s6328_s3] sm:$0xff] }
 0xcec   :  { %5132 = vmatprep.subr.bf16.mxu0 %v5394_v0  ;;  %v1931_v34 = vsel %vm73_vm2, %v1927_v33, 0.0  ;;  %4807 = vmatprep.mubr.msk.f32.mxu0 %vm5395_vm1, %v5396_v4 }
 0xced   :  { %1932 = vadd.xlane.f32.xlu0 %v1931_v34 }
 0xcef   :  { %5134 = vmatpush3.bf16.msra.mxu0 %v5533_v21 }
 0xcf0   :  { %5141 = vmatprep.subr.bf16.mxu0 %v5394_v0 }
 0xcf2   :  { %4808 = vmatmul.mubr.msk.f32.vlgmr.msra.gmra.mrb[22].mxu0 %vm73_vm2, %v5903_v25 }
 0xcf3   :  { %5143 = vmatpush3.bf16.msra.mxu0 %v5666_v15  ;;  %4829 = vmatprep.mubr.msk.f32.mxu0 %vm5395_vm1, %v5396_v4 }
 0xcf4   :  { %5144 = vmatprep.subr.bf16.mxu0 %v5394_v0 }
 0xcf7   :  { %5146 = vmatpush3.bf16.msra.mxu0 %v5678_v22 }
 0xcf8   :  { %5153 = vmatprep.subr.bf16.mxu0 %v5394_v0 }
 0xd78   :  { %v1930_v3 = vpop.xlane.xlu1 %1929 }
 0xd79   :  { %v1939_v35 = vrot.slane %v1930_v3, %v5635_v20 }
 0xd7a   :  { %v1933_v8 = vpop.xlane.xlu0 %1932 }
 0xd7b   :  { %v1943_v36 = vrot.slane %v1933_v8, %v5635_v20 }
 0xd7d   :  { %v1944_v38 = vsel %vm370_vm3, %v1943_v36, %v1939_v35  ;;  %v5974_v35 = vld [vmem:[%s6328_s3 + $0x8] sm:$0xff] }
 0xd7e   :  { %v1946_v39 = vsel %vm373_vm4, %v1944_v38, -inf }
 0xd7f   :  { %1947 = vmax.xlane.f32.xlu1 %v1946_v39 }
 0xdb5   :  { %v5943_v40 = vpop.f32.mrb[18].mxu0 }
 0xdb6   :  { %v4765_v42 = vpop.f32.mrb[19].mxu0 }
 0xdbd   :  { %v2244_v47 = vpop.f32.mrb[20].mxu0 }
 0xdbe   :  { %v2390_v49 = vadd.f32 %v4316_v46, %v2244_v47  ;;  %v4787_v50 = vpop.f32.mrb[21].mxu0 }
 0xdc0   :  { %v4317_v51 = vmul.f32 -1.442695, %v2390_v49 }
 0xdc2   :  { %5308 = vpow2.f32 %v4317_v51 }
 0xdc5   :  { %v2384_v52 = vpop.f32.mrb[22].mxu0 }
 0xdc6   :  { %v4809_v53 = vpop.f32.mrb[23].mxu0  ;;  %v2385_v58 = vadd.f32 %v5951_v56, %v2384_v52 }
 0xdcc   :  { %v5309_v55 = vpop.eup %5308 }
 0xdcd   :  { %v2394_v57 = vadd.f32 1.0, %v5309_v55 }
 0xdcf   :  { %5310 = vrcp.f32 %v2394_v57 }
 0xdd9   :  { %v5311_v59 = vpop.eup %5310 }
 0xdda   :  { %v5954_v62 = vmul.f32 %v5311_v59, %v2385_v58 }
 0xe0c   :  { %v1948_v1 = vpop.xlane.xlu1 %1947 }
 0xe0d   :  { %v1953_v2 = vrot.slane %v1948_v1, %v5596_v63  ;;  %v1957_v37 = vrot.slane %v1948_v1, %v5650_v45 }
 0xe0f   :  { %v1960_v6 = vsub.f32 %v1930_v3, %v1953_v2  ;;  %v1961_v7 = vsub.f32 %v1933_v8, %v1957_v37 }
 0xe11   :  { %v1962_v9 = vmul.f32 1.442695, %v1960_v6  ;;  %v1964_v41 = vmul.f32 1.442695, %v1961_v7  ;;  %v4318_v6 = vld [vmem:[%s6325_s1 + $0x8] sm:$0x3] }
 0xe13   :  { %5312 = vpow2.f32 %v1962_v9 }
 0xe14   :  { %5314 = vpow2.f32 %v1964_v41 }
 0xe1d   :  { %v5313_v10 = vpop.eup %5312 }
 0xe1e   :  { %v5315_v14 = vpop.eup %5314  ;;  %1969 = vperm.xlu1 %5242, %v5313_v10  }
 0xe1f   :  { %1972 = vperm.xlu0 %5243, %v5315_v14  }
 0xe9d   :  { %v1970_v43 = vpop.permute.xlu1 %1969 }
 0xe9e   :  { %v1973_v44 = vpop.permute.xlu0 %1972  ;;  %v1977_v18 = vrot.slane %v1970_v43, %v5635_v20 }
 0xe9f   :  { %v1981_v61 = vrot.slane %v1973_v44, %v5635_v20 }
 0xea1   :  { %v1982_v23 = vsel %vm370_vm3, %v1981_v61, %v1977_v18 }
 0xea2   :  { %v1984_v54 = vsel %vm373_vm4, %v1982_v23, 0.0 }
 0xea3   :  { %1985 = vadd.xlane.f32.xlu1 %v1984_v54 }
 0xf30   :  { %v1986_v11 = vpop.xlane.xlu1 %1985 }
 0xf31   :  { %5316 = vrcp.f32 %v1986_v11 }
 0xf3b   :  { %v5317_v30 = vpop.eup %5316 }
 0xf3c   :  { %v1992_v26 = vrot.slane %v5317_v30, %v5596_v63  ;;  %v1996_v28 = vrot.slane %v5317_v30, %v5650_v45 }
 0xf3e   :  { %v1999_v19 = vmul.f32 %v5313_v10, %v1992_v26  ;;  %v2000_v29 = vmul.f32 %v5315_v14, %v1996_v28 }
 0xf40   :  { %2003 = vperm.xlu0 %5243, %v1999_v19  }
 0xf44   :  { %2008 = vperm.xlu0 %5243, %v2000_v29  }
 0xfbf   :  { %v2004_v31 = vpop.permute.xlu0 %2003 }
 0xfc0   :  { %v2011_v33 = vmul.f32 %v5967_v32, %v2004_v31 }
 0xfc2   :  { %v2013_v34 = vsel %vm73_vm2, %v2011_v33, 0.0 }
 0xfc3   :  { %v2014_v3 = vrot.slane %v2013_v34, 4  ;;  %v2009_v8 = vpop.permute.xlu0 %2008 }
 0xfc4   :  { %v2012_v36 = vmul.f32 %v5974_v35, %v2009_v8 }
 0xfc5   :  { %v2015_v38 = vadd.f32 %v2014_v3, %v2013_v34 }
 0xfc6   :  { %v2020_v39 = vsel %vm73_vm2, %v2012_v36, 0.0 }
 0xfc7   :  { %v2016_v42 = vrot.slane %v2015_v38, 2  ;;  %v2021_v46 = vrot.slane %v2020_v39, 4 }
 0xfc9   :  { %v2017_v47 = vadd.f32 %v2016_v42, %v2015_v38  ;;  %v2022_v49 = vadd.f32 %v2021_v46, %v2020_v39 }
 0xfcb   :  { %v2023_v50 = vrot.slane %v2022_v49, 2  ;;  %v2018_v51 = vrot.slane %v2017_v47, 1 }
 0xfcd   :  { %v2024_v52 = vadd.f32 %v2023_v50, %v2022_v49  ;;  %v2019_v55 = vadd.f32 %v2018_v51, %v2017_v47  ;;  %v4327_v50 = vld [vmem:[%s6324_s0 + $0xa] sm:$0x3] }
 0xfcf   :  { %v2025_v53 = vrot.slane %v2024_v52, 1 }
 0xfd1   :  { %v2026_v57 = vadd.f32 %v2025_v53, %v2024_v52 }
 0xfd3   :  { %v2101_v58 = vsel %vm370_vm3, %v2026_v57, %v2019_v55 }
 0xfd4   :  { %4775 = vmatmul.mubr.msk.f32.vlgmr.msra.gmra.mrb[18].mxu1 %vm73_vm2, %v2101_v58 }
 0xfd5   :  { %5125 = vmatpush3.bf16.msra.mxu1 %v5503_v13  ;;  %4796 = vmatprep.mubr.msk.f32.mxu1 %vm5395_vm1, %v5396_v4 }
 0xfd6   :  { %5126 = vmatprep.subr.bf16.mxu1 %v5394_v0 }
 0xfd9   :  { %5128 = vmatpush3.bf16.msra.mxu1 %v5513_v16 }
 0xfda   :  { %5135 = vmatprep.subr.bf16.mxu1 %v5394_v0 }
 0xfdc   :  { %4797 = vmatmul.mubr.msk.f32.vlgmr.msra.gmra.mrb[20].mxu1 %vm73_vm2, %v5903_v25 }
 0xfdd   :  { %5137 = vmatpush3.bf16.msra.mxu1 %v5554_v24  ;;  %4818 = vmatprep.mubr.msk.f32.mxu1 %vm5395_vm1, %v5396_v4 }
 0xfde   :  { %5138 = vmatprep.subr.bf16.mxu1 %v5394_v0 }
 0xfe1   :  { %5140 = vmatpush3.bf16.msra.mxu1 %v5564_v27 }
 0xfe2   :  { %5147 = vmatprep.subr.bf16.mxu1 %v5394_v0 }
0x10a7   :  { %v2170_v59 = vpop.f32.mrb[18].mxu1 }
0x10a8   :  { %v2171_v1 = vadd.f32 %v2170_v59, %v5943_v40  ;;  %v4776_v2 = vpop.f32.mrb[19].mxu1 }
0x10aa   :  { %v2174_v37 = vadd.f32 %v5707_v48, %v2171_v1  ;;  %v4320_v48 = vld [vmem:[%s6327_s2 + $0x8] sm:$0x3] }
0x10ab   :  { %v2409_v43 = vadd.f32 %v4320_v48, %v5954_v62 }
0x10ac   :  { %5318 = vtanh.f32 %v2174_v37 }
0x10af   :  { %v2314_v7 = vpop.f32.mrb[20].mxu1 }
0x10b0   :  { %v2399_v9 = vadd.f32 %v4318_v6, %v2314_v7  ;;  %v4798_v41 = vpop.f32.mrb[21].mxu1 }
0x10b2   :  { %v4319_v10 = vmul.f32 -1.442695, %v2399_v9 }
0x10b4   :  { %5320 = vpow2.f32 %v4319_v10 }
0x10b6   :  { %v5319_v14 = vpop.eup %5318 }
0x10b7   :  { %4312 = vst.msk [vmem:[%s6331_s12 + $0x6] sm:$0x3] %vm46_vm0, %v5319_v14 }
0x10be   :  { %v5321_v40 = vpop.eup %5320 }
0x10bf   :  { %v2403_v44 = vadd.f32 1.0, %v5321_v40 }
0x10c1   :  { %5322 = vrcp.f32 %v2403_v44 }
0x10c2   :  { %5324 = vtanh.f32 %v2409_v43 }
0x10cb   :  { %v5323_v18 = vpop.eup %5322 }
0x10cc   :  { %v2411_v61 = vsub.f32 1.0, %v5323_v18  ;;  %v5325_v23 = vpop.eup %5324  ;;  %v2413_v11 = vmul.f32 %v5323_v18, %v5903_v25 }
0x10ce   :  { %v2412_v54 = vmul.f32 %v5325_v23, %v2411_v61 }
0x10d0   :  { %v6008_v30 = vadd.f32 %v2413_v11, %v2412_v54 }
0x10d2   :  { %4819 = vmatmul.mubr.msk.f32.vlgmr.msra.gmra.mrb[22].mxu1 %vm73_vm2, %v6008_v30  ;;  %v2422_v26 = vrot.slane %v6008_v30, %v5587_v60 }
0x10d3   :  { %5149 = vmatpush3.bf16.msra.mxu1 %v5476_v5  ;;  %4840 = vmatprep.mubr.msk.f32.mxu1 %vm5395_vm1, %v5396_v4 }
0x10d4   :  { %5150 = vmatprep.subr.bf16.mxu1 %v5394_v0  ;;  %v2430_v62 = vrot.slane %v2422_v26, %v5587_v60  ;;  %v2423_v19 = vcombine.high %v2422_v26, %v2422_v26 }
0x10d6   :  { %v2441_v25 = vrot.slane %v2430_v62, %v5596_v63  ;;  %v2437_v28 = vrot.slane %v2423_v19, %v5587_v60 }
0x10d7   :  { %5152 = vmatpush3.bf16.msra.mxu1 %v5501_v12 }
0x10d8   :  { %5159 = vmatprep.subr.bf16.mxu1 %v5394_v0  ;;  %v2448_v29 = vmul.f32 %v5967_v32, %v2441_v25  ;;  %v2445_v31 = vrot.slane %v2437_v28, %v5596_v63 }
0x10da   :  { %4841 = vmatmul.mubr.msk.f32.vlgmr.msra.gmra.mrb[24].mxu1 %vm73_vm2, %v6008_v30  ;;  %v2450_v33 = vsel %vm73_vm2, %v2448_v29, 0.0  ;;  %v2449_v34 = vmul.f32 %v5974_v35, %v2445_v31 }
0x10db   :  { %5161 = vmatpush3.bf16.msra.mxu1 %v5517_v17  ;;  %2451 = vadd.xlane.f32.xlu0 %v2450_v33 }
0x10dc   :  { %5162 = vmatprep.subr.bf16.mxu1 %v5394_v0  ;;  %v2453_v3 = vsel %vm73_vm2, %v2449_v34, 0.0  ;;  %4862 = vmatprep.mubr.msk.f32.mxu1 %vm5395_vm1, %v5396_v4 }
0x10dd   :  { %2454 = vadd.xlane.f32.xlu1 %v2453_v3 }
0x10df   :  { %5164 = vmatpush3.bf16.msra.mxu1 %v5533_v21 }
0x10e0   :  { %5171 = vmatprep.subr.bf16.mxu1 %v5394_v0 }
0x10e2   :  { %4863 = vmatmul.mubr.msk.f32.vlgmr.msra.gmra.mrb[26].mxu1 %vm73_vm2, %v6008_v30 }
0x10e3   :  { %5173 = vmatpush3.bf16.msra.mxu1 %v5666_v15  ;;  %4884 = vmatprep.mubr.msk.f32.mxu1 %vm5395_vm1, %v5396_v4 }
0x10e4   :  { %5174 = vmatprep.subr.bf16.mxu1 %v5394_v0 }
0x10e7   :  { %5176 = vmatpush3.bf16.msra.mxu1 %v5678_v22 }
0x10e8   :  { %5183 = vmatprep.subr.bf16.mxu1 %v5394_v0 }
0x1168   :  { %v2452_v8 = vpop.xlane.xlu0 %2451 }
0x1169   :  { %v2461_v38 = vrot.slane %v2452_v8, %v5635_v20 }
0x116a   :  { %v2455_v36 = vpop.xlane.xlu1 %2454 }
0x116b   :  { %v2465_v39 = vrot.slane %v2455_v36, %v5635_v20 }
0x116d   :  { %v2466_v42 = vsel %vm370_vm3, %v2465_v39, %v2461_v38 }
0x116e   :  { %v2468_v46 = vsel %vm373_vm4, %v2466_v42, -inf }
0x116f   :  { %2469 = vmax.xlane.f32.xlu1 %v2468_v46 }
0x11a5   :  { %v6048_v47 = vpop.f32.mrb[22].mxu1 }
0x11a6   :  { %v4820_v49 = vpop.f32.mrb[23].mxu1 }
0x11ad   :  { %v2766_v51 = vpop.f32.mrb[24].mxu1 }
0x11ae   :  { %v2912_v52 = vadd.f32 %v4327_v50, %v2766_v51  ;;  %v4842_v53 = vpop.f32.mrb[25].mxu1 }
0x11b0   :  { %v4328_v55 = vmul.f32 -1.442695, %v2912_v52 }
0x11b2   :  { %5326 = vpow2.f32 %v4328_v55 }
0x11b5   :  { %v2906_v57 = vpop.f32.mrb[26].mxu1 }
0x11b6   :  { %v4864_v58 = vpop.f32.mrb[27].mxu1  ;;  %v2907_v2 = vadd.f32 %v5951_v56, %v2906_v57 }
0x11bc   :  { %v5327_v59 = vpop.eup %5326 }
0x11bd   :  { %v2916_v1 = vadd.f32 1.0, %v5327_v59 }
0x11bf   :  { %5328 = vrcp.f32 %v2916_v1 }
0x11c9   :  { %v5329_v37 = vpop.eup %5328 }
0x11ca   :  { %v6054_v6 = vmul.f32 %v5329_v37, %v2907_v2 }
0x11fc   :  { %v2470_v7 = vpop.xlane.xlu1 %2469 }
0x11fd   :  { %v2475_v9 = vrot.slane %v2470_v7, %v5596_v63  ;;  %v2479_v41 = vrot.slane %v2470_v7, %v5650_v45 }
0x11ff   :  { %v2482_v10 = vsub.f32 %v2452_v8, %v2475_v9  ;;  %v2483_v14 = vsub.f32 %v2455_v36, %v2479_v41  ;;  %v6088_v9 = vld [vmem:[%s6330_s11] ss:$0 sm:$0xff] }
0x1201   :  { %v2484_v48 = vmul.f32 1.442695, %v2482_v10  ;;  %v2486_v40 = vmul.f32 1.442695, %v2483_v14  ;;  %v4329_v10 = vld [vmem:[%s6325_s1 + $0xa] sm:$0x3] }
0x1203   :  { %5330 = vpow2.f32 %v2484_v48 }
0x1204   :  { %5332 = vpow2.f32 %v2486_v40 }
0x120d   :  { %v5331_v43 = vpop.eup %5330 }
0x120e   :  { %v5333_v44 = vpop.eup %5332  ;;  %2491 = vperm.xlu1 %5242, %v5331_v43  }
0x120f   :  { %2494 = vperm.xlu0 %5243, %v5333_v44  }
0x128d   :  { %v2492_v18 = vpop.permute.xlu1 %2491 }
0x128e   :  { %v2495_v61 = vpop.permute.xlu0 %2494  ;;  %v2499_v23 = vrot.slane %v2492_v18, %v5635_v20 }
0x128f   :  { %v2503_v54 = vrot.slane %v2495_v61, %v5635_v20 }
0x1291   :  { %v2504_v11 = vsel %vm370_vm3, %v2503_v54, %v2499_v23 }
0x1292   :  { %v2506_v26 = vsel %vm373_vm4, %v2504_v11, 0.0 }
0x1293   :  { %2507 = vadd.xlane.f32.xlu1 %v2506_v26 }
0x1320   :  { %v2508_v62 = vpop.xlane.xlu1 %2507 }
0x1321   :  { %5334 = vrcp.f32 %v2508_v62 }
0x132b   :  { %v5335_v19 = vpop.eup %5334 }
0x132c   :  { %v2514_v25 = vrot.slane %v5335_v19, %v5596_v63  ;;  %v2518_v29 = vrot.slane %v5335_v19, %v5650_v45 }
0x132e   :  { %v2521_v28 = vmul.f32 %v5331_v43, %v2514_v25  ;;  %v2522_v31 = vmul.f32 %v5333_v44, %v2518_v29 }
0x1330   :  { %2525 = vperm.xlu0 %5243, %v2521_v28  }
0x1334   :  { %2530 = vperm.xlu0 %5243, %v2522_v31  }
0x13af   :  { %v2526_v33 = vpop.permute.xlu0 %2525 }
0x13b0   :  { %v2533_v34 = vmul.f32 %v5967_v32, %v2526_v33 }
0x13b2   :  { %v2535_v3 = vsel %vm73_vm2, %v2533_v34, 0.0 }
0x13b3   :  { %v2536_v8 = vrot.slane %v2535_v3, 4  ;;  %v2531_v36 = vpop.permute.xlu0 %2530 }
0x13b4   :  { %v2534_v38 = vmul.f32 %v5974_v35, %v2531_v36 }
0x13b5   :  { %v2537_v39 = vadd.f32 %v2536_v8, %v2535_v3 }
0x13b6   :  { %v2542_v42 = vsel %vm73_vm2, %v2534_v38, 0.0 }
0x13b7   :  { %v2538_v46 = vrot.slane %v2537_v39, 2  ;;  %v2543_v49 = vrot.slane %v2542_v42, 4 }
0x13b9   :  { %v2539_v50 = vadd.f32 %v2538_v46, %v2537_v39  ;;  %v2544_v51 = vadd.f32 %v2543_v49, %v2542_v42 }
0x13bb   :  { %v2545_v52 = vrot.slane %v2544_v51, 2  ;;  %v2540_v53 = vrot.slane %v2539_v50, 1 }
0x13bd   :  { %v2546_v55 = vadd.f32 %v2545_v52, %v2544_v51  ;;  %v2541_v58 = vadd.f32 %v2540_v53, %v2539_v50  ;;  %v4338_v53 = vld [vmem:[%s6324_s0 + $0xc] sm:$0x3] }
0x13bf   :  { %v2547_v57 = vrot.slane %v2546_v55, 1 }
0x13c1   :  { %v2548_v59 = vadd.f32 %v2547_v57, %v2546_v55 }
0x13c3   :  { %v2623_v1 = vsel %vm370_vm3, %v2548_v59, %v2541_v58 }
0x13c4   :  { %4830 = vmatmul.mubr.msk.f32.vlgmr.msra.gmra.mrb[24].mxu0 %vm73_vm2, %v2623_v1 }
0x13c5   :  { %5155 = vmatpush3.bf16.msra.mxu0 %v5503_v13  ;;  %4851 = vmatprep.mubr.msk.f32.mxu0 %vm5395_vm1, %v5396_v4 }
0x13c6   :  { %5156 = vmatprep.subr.bf16.mxu0 %v5394_v0 }
0x13c9   :  { %5158 = vmatpush3.bf16.msra.mxu0 %v5513_v16 }
0x13ca   :  { %5165 = vmatprep.subr.bf16.mxu0 %v5394_v0 }
0x13cc   :  { %4852 = vmatmul.mubr.msk.f32.vlgmr.msra.gmra.mrb[26].mxu0 %vm73_vm2, %v6008_v30 }
0x13cd   :  { %5167 = vmatpush3.bf16.msra.mxu0 %v5554_v24  ;;  %4873 = vmatprep.mubr.msk.f32.mxu0 %vm5395_vm1, %v5396_v4 }
0x13ce   :  { %5168 = vmatprep.subr.bf16.mxu0 %v5394_v0 }
0x13d1   :  { %5170 = vmatpush3.bf16.msra.mxu0 %v5564_v27 }
0x13d2   :  { %5177 = vmatprep.subr.bf16.mxu0 %v5394_v0 }
0x1497   :  { %v2692_v2 = vpop.f32.mrb[24].mxu0 }
0x1498   :  { %v2693_v37 = vadd.f32 %v2692_v2, %v6048_v47  ;;  %v4831_v7 = vpop.f32.mrb[25].mxu0  ;;  %v4331_v47 = vld [vmem:[%s6327_s2 + $0xa] sm:$0x3] }
0x1499   :  { %v2931_v61 = vadd.f32 %v4331_v47, %v6054_v6 }
0x149a   :  { %v2696_v41 = vadd.f32 %v6088_v9, %v2693_v37 }
0x149c   :  { %5336 = vtanh.f32 %v2696_v41 }
0x149f   :  { %v2836_v14 = vpop.f32.mrb[26].mxu0 }
0x14a0   :  { %v2921_v48 = vadd.f32 %v4329_v10, %v2836_v14  ;;  %v4853_v40 = vpop.f32.mrb[27].mxu0 }
0x14a2   :  { %v4330_v43 = vmul.f32 -1.442695, %v2921_v48 }
0x14a4   :  { %5338 = vpow2.f32 %v4330_v43 }
0x14a6   :  { %v5337_v44 = vpop.eup %5336 }
0x14a7   :  { %4323 = vst.msk [vmem:[%s6331_s12 + $0x8] sm:$0x3] %vm46_vm0, %v5337_v44 }
0x14ae   :  { %v5339_v18 = vpop.eup %5338 }
0x14af   :  { %v2925_v23 = vadd.f32 1.0, %v5339_v18 }
0x14b1   :  { %5340 = vrcp.f32 %v2925_v23 }
0x14b2   :  { %5342 = vtanh.f32 %v2931_v61 }
0x14bb   :  { %v5341_v54 = vpop.eup %5340 }
0x14bc   :  { %v2933_v11 = vsub.f32 1.0, %v5341_v54  ;;  %v5343_v26 = vpop.eup %5342  ;;  %v2935_v19 = vmul.f32 %v5341_v54, %v6008_v30 }
0x14be   :  { %v2934_v62 = vmul.f32 %v5343_v26, %v2933_v11 }
0x14c0   :  { %v6103_v25 = vadd.f32 %v2935_v19, %v2934_v62 }
0x14c2   :  { %4874 = vmatmul.mubr.msk.f32.vlgmr.msra.gmra.mrb[28].mxu0 %vm73_vm2, %v6103_v25  ;;  %v2944_v28 = vrot.slane %v6103_v25, %v5587_v60 }
0x14c3   :  { %5179 = vmatpush3.bf16.msra.mxu0 %v5476_v5  ;;  %4895 = vmatprep.mubr.msk.f32.mxu0 %vm5395_vm1, %v5396_v4 }
0x14c4   :  { %5180 = vmatprep.subr.bf16.mxu0 %v5394_v0  ;;  %v2952_v6 = vrot.slane %v2944_v28, %v5587_v60  ;;  %v2945_v29 = vcombine.high %v2944_v28, %v2944_v28 }
0x14c6   :  { %v2963_v30 = vrot.slane %v2952_v6, %v5596_v63  ;;  %v2959_v31 = vrot.slane %v2945_v29, %v5587_v60 }
0x14c7   :  { %5182 = vmatpush3.bf16.msra.mxu0 %v5501_v12 }
0x14c8   :  { %5189 = vmatprep.subr.bf16.mxu0 %v5394_v0  ;;  %v2970_v33 = vmul.f32 %v5967_v32, %v2963_v30  ;;  %v2967_v34 = vrot.slane %v2959_v31, %v5596_v63 }
0x14ca   :  { %4896 = vmatmul.mubr.msk.f32.vlgmr.msra.gmra.mrb[30].mxu0 %vm73_vm2, %v6103_v25  ;;  %v2972_v3 = vsel %vm73_vm2, %v2970_v33, 0.0  ;;  %v2971_v8 = vmul.f32 %v5974_v35, %v2967_v34 }
0x14cb   :  { %5191 = vmatpush3.bf16.msra.mxu0 %v5517_v17  ;;  %2973 = vadd.xlane.f32.xlu0 %v2972_v3 }
0x14cc   :  { %5192 = vmatprep.subr.bf16.mxu0 %v5394_v0  ;;  %v2975_v36 = vsel %vm73_vm2, %v2971_v8, 0.0  ;;  %4917 = vmatprep.mubr.msk.f32.mxu0 %vm5395_vm1, %v5396_v4 }
0x14cd   :  { %2976 = vadd.xlane.f32.xlu1 %v2975_v36 }
0x14cf   :  { %5194 = vmatpush3.bf16.msra.mxu0 %v5533_v21 }
0x14d0   :  { %5201 = vmatprep.subr.bf16.mxu0 %v5394_v0 }
0x14d2   :  { %4918 = vmatmul.mubr.msk.f32.vlgmr.msra.gmra.mrb[32].mxu0 %vm73_vm2, %v6103_v25 }
0x14d3   :  { %5203 = vmatpush3.bf16.msra.mxu0 %v5666_v15  ;;  %4939 = vmatprep.mubr.msk.f32.mxu0 %vm5395_vm1, %v5396_v4 }
0x14d4   :  { %5204 = vmatprep.subr.bf16.mxu0 %v5394_v0 }
0x14d7   :  { %5206 = vmatpush3.bf16.msra.mxu0 %v5678_v22 }
0x14d8   :  { %5213 = vmatprep.subr.bf16.mxu0 %v5394_v0 }
0x1558   :  { %v2974_v38 = vpop.xlane.xlu0 %2973 }
0x1559   :  { %v2983_v42 = vrot.slane %v2974_v38, %v5635_v20 }
0x155a   :  { %v2977_v39 = vpop.xlane.xlu1 %2976 }
0x155b   :  { %v2987_v46 = vrot.slane %v2977_v39, %v5635_v20 }
0x155d   :  { %v2988_v49 = vsel %vm370_vm3, %v2987_v46, %v2983_v42 }
0x155e   :  { %v2990_v50 = vsel %vm373_vm4, %v2988_v49, -inf }
0x155f   :  { %2991 = vmax.xlane.f32.xlu1 %v2990_v50 }
0x1595   :  { %v6143_v51 = vpop.f32.mrb[28].mxu0 }
0x1596   :  { %v4875_v52 = vpop.f32.mrb[29].mxu0 }
0x159d   :  { %v3288_v55 = vpop.f32.mrb[30].mxu0 }
0x159e   :  { %v3434_v57 = vadd.f32 %v4338_v53, %v3288_v55  ;;  %v4897_v58 = vpop.f32.mrb[31].mxu0 }
0x15a0   :  { %v4339_v59 = vmul.f32 -1.442695, %v3434_v57 }
0x15a2   :  { %5344 = vpow2.f32 %v4339_v59 }
0x15a5   :  { %v3428_v1 = vpop.f32.mrb[32].mxu0 }
0x15a6   :  { %v4919_v2 = vpop.f32.mrb[33].mxu0  ;;  %v3429_v41 = vadd.f32 %v5951_v56, %v3428_v1 }
0x15ac   :  { %v5345_v37 = vpop.eup %5344 }
0x15ad   :  { %v3438_v7 = vadd.f32 1.0, %v5345_v37 }
0x15af   :  { %5346 = vrcp.f32 %v3438_v7 }
0x15b9   :  { %v5347_v10 = vpop.eup %5346 }
0x15ba   :  { %v6149_v14 = vmul.f32 %v5347_v10, %v3429_v41 }
0x15ec   :  { %v2992_v48 = vpop.xlane.xlu1 %2991 }
0x15ed   :  { %v2997_v40 = vrot.slane %v2992_v48, %v5596_v63  ;;  %v3001_v43 = vrot.slane %v2992_v48, %v5650_v45 }
0x15ef   :  { %v3004_v44 = vsub.f32 %v2974_v38, %v2997_v40  ;;  %v3005_v47 = vsub.f32 %v2977_v39, %v3001_v43 }
0x15f1   :  { %v3006_v18 = vmul.f32 1.442695, %v3004_v44  ;;  %v3008_v61 = vmul.f32 1.442695, %v3005_v47  ;;  %v4340_v44 = vld [vmem:[%s6325_s1 + $0xc] sm:$0x3] }
0x15f3   :  { %5348 = vpow2.f32 %v3006_v18 }
0x15f4   :  { %5350 = vpow2.f32 %v3008_v61 }
0x15fd   :  { %v5349_v23 = vpop.eup %5348 }
0x15fe   :  { %v5351_v54 = vpop.eup %5350  ;;  %3013 = vperm.xlu1 %5242, %v5349_v23  }
0x15ff   :  { %3016 = vperm.xlu0 %5243, %v5351_v54  }
0x167d   :  { %v3014_v11 = vpop.permute.xlu1 %3013 }
0x167e   :  { %v3017_v26 = vpop.permute.xlu0 %3016  ;;  %v3021_v62 = vrot.slane %v3014_v11, %v5635_v20 }
0x167f   :  { %v3025_v19 = vrot.slane %v3017_v26, %v5635_v20 }
0x1681   :  { %v3026_v28 = vsel %vm370_vm3, %v3025_v19, %v3021_v62 }
0x1682   :  { %v3028_v6 = vsel %vm373_vm4, %v3026_v28, 0.0 }
0x1683   :  { %3029 = vadd.xlane.f32.xlu1 %v3028_v6 }
0x1710   :  { %v3030_v29 = vpop.xlane.xlu1 %3029 }
0x1711   :  { %5352 = vrcp.f32 %v3030_v29 }
0x171b   :  { %v5353_v30 = vpop.eup %5352 }
0x171c   :  { %v3036_v31 = vrot.slane %v5353_v30, %v5596_v63  ;;  %v3040_v34 = vrot.slane %v5353_v30, %v5650_v45 }
0x171e   :  { %v3043_v33 = vmul.f32 %v5349_v23, %v3036_v31  ;;  %v3044_v3 = vmul.f32 %v5351_v54, %v3040_v34 }
0x1720   :  { %3047 = vperm.xlu0 %5243, %v3043_v33  }
0x1724   :  { %3052 = vperm.xlu0 %5243, %v3044_v3  }
0x179f   :  { %v3048_v8 = vpop.permute.xlu0 %3047 }
0x17a0   :  { %v3055_v36 = vmul.f32 %v5967_v32, %v3048_v8 }
0x17a2   :  { %v3057_v38 = vsel %vm73_vm2, %v3055_v36, 0.0 }
0x17a3   :  { %v3058_v39 = vrot.slane %v3057_v38, 4  ;;  %v3053_v42 = vpop.permute.xlu0 %3052 }
0x17a4   :  { %v3056_v46 = vmul.f32 %v5974_v35, %v3053_v42 }
0x17a5   :  { %v3059_v49 = vadd.f32 %v3058_v39, %v3057_v38 }
0x17a6   :  { %v3064_v50 = vsel %vm73_vm2, %v3056_v46, 0.0 }
0x17a7   :  { %v3060_v52 = vrot.slane %v3059_v49, 2  ;;  %v3065_v53 = vrot.slane %v3064_v50, 4 }
0x17a9   :  { %v3061_v55 = vadd.f32 %v3060_v52, %v3059_v49  ;;  %v3066_v57 = vadd.f32 %v3065_v53, %v3064_v50  ;;  %v4349_v52 = vld [vmem:[%s6324_s0 + $0xe] sm:$0x3] }
0x17ab   :  { %v3067_v58 = vrot.slane %v3066_v57, 2  ;;  %v3062_v59 = vrot.slane %v3061_v55, 1 }
0x17ad   :  { %v3068_v1 = vadd.f32 %v3067_v58, %v3066_v57  ;;  %v3063_v37 = vadd.f32 %v3062_v59, %v3061_v55 }
0x17af   :  { %v3069_v2 = vrot.slane %v3068_v1, 1 }
0x17b1   :  { %v3070_v7 = vadd.f32 %v3069_v2, %v3068_v1 }
0x17b3   :  { %v3145_v41 = vsel %vm370_vm3, %v3070_v7, %v3063_v37 }
0x17b4   :  { %4885 = vmatmul.mubr.msk.f32.vlgmr.msra.gmra.mrb[28].mxu1 %vm73_vm2, %v3145_v41 }
0x17b5   :  { %5185 = vmatpush3.bf16.msra.mxu1 %v5503_v13  ;;  %4906 = vmatprep.mubr.msk.f32.mxu1 %vm5395_vm1, %v5396_v4 }
0x17b6   :  { %5186 = vmatprep.subr.bf16.mxu1 %v5394_v0 }
0x17b9   :  { %5188 = vmatpush3.bf16.msra.mxu1 %v5513_v16 }
0x17ba   :  { %5195 = vmatprep.subr.bf16.mxu1 %v5394_v0 }
0x17bc   :  { %4907 = vmatmul.mubr.msk.f32.vlgmr.msra.gmra.mrb[30].mxu1 %vm73_vm2, %v6103_v25 }
0x17bd   :  { %5197 = vmatpush3.bf16.msra.mxu1 %v5554_v24  ;;  %4928 = vmatprep.mubr.msk.f32.mxu1 %vm5395_vm1, %v5396_v4 }
0x17be   :  { %5198 = vmatprep.subr.bf16.mxu1 %v5394_v0 }
0x17c1   :  { %5200 = vmatpush3.bf16.msra.mxu1 %v5564_v27 }
0x17c2   :  { %5207 = vmatprep.subr.bf16.mxu1 %v5394_v0 }
0x1887   :  { %v3214_v10 = vpop.f32.mrb[28].mxu1 }
0x1888   :  { %v3215_v48 = vadd.f32 %v3214_v10, %v6143_v51  ;;  %v4886_v40 = vpop.f32.mrb[29].mxu1  ;;  %v4342_v51 = vld [vmem:[%s6327_s2 + $0xc] sm:$0x3] }
0x1889   :  { %v3453_v26 = vadd.f32 %v4342_v51, %v6149_v14 }
0x188a   :  { %v3218_v43 = vadd.f32 %v6088_v9, %v3215_v48 }
0x188c   :  { %5354 = vtanh.f32 %v3218_v43 }
0x188f   :  { %v3358_v47 = vpop.f32.mrb[30].mxu1 }
0x1890   :  { %v3443_v18 = vadd.f32 %v4340_v44, %v3358_v47  ;;  %v4908_v61 = vpop.f32.mrb[31].mxu1 }
0x1892   :  { %v4341_v23 = vmul.f32 -1.442695, %v3443_v18 }
0x1894   :  { %5356 = vpow2.f32 %v4341_v23 }
0x1896   :  { %v5355_v54 = vpop.eup %5354 }
0x1897   :  { %4334 = vst.msk [vmem:[%s6331_s12 + $0xa] sm:$0x3] %vm46_vm0, %v5355_v54 }
0x189e   :  { %v5357_v11 = vpop.eup %5356 }
0x189f   :  { %v3447_v62 = vadd.f32 1.0, %v5357_v11 }
0x18a1   :  { %5358 = vrcp.f32 %v3447_v62 }
0x18a2   :  { %5360 = vtanh.f32 %v3453_v26 }
0x18ab   :  { %v5359_v19 = vpop.eup %5358 }
0x18ac   :  { %v3455_v28 = vsub.f32 1.0, %v5359_v19  ;;  %v5361_v6 = vpop.eup %5360  ;;  %v3457_v30 = vmul.f32 %v5359_v19, %v6103_v25 }
0x18ae   :  { %v3456_v29 = vmul.f32 %v5361_v6, %v3455_v28 }
0x18b0   :  { %v6193_v31 = vadd.f32 %v3457_v30, %v3456_v29 }
0x18b2   :  { %4929 = vmatmul.mubr.msk.f32.vlgmr.msra.gmra.mrb[32].mxu1 %vm73_vm2, %v6193_v31  ;;  %v3466_v33 = vrot.slane %v6193_v31, %v5587_v60 }
0x18b3   :  { %5209 = vmatpush3.bf16.msra.mxu1 %v5476_v5  ;;  %4950 = vmatprep.mubr.msk.f32.mxu1 %vm5395_vm1, %v5396_v4 }
0x18b4   :  { %5210 = vmatprep.subr.bf16.mxu1 %v5394_v0  ;;  %v3474_v14 = vrot.slane %v3466_v33, %v5587_v60  ;;  %v3467_v34 = vcombine.high %v3466_v33, %v3466_v33 }
0x18b6   :  { %v3485_v25 = vrot.slane %v3474_v14, %v5596_v63  ;;  %v3481_v3 = vrot.slane %v3467_v34, %v5587_v60 }
0x18b7   :  { %5212 = vmatpush3.bf16.msra.mxu1 %v5501_v12 }
0x18b8   :  { %5219 = vmatprep.subr.bf16.mxu1 %v5394_v0  ;;  %v3492_v8 = vmul.f32 %v5967_v32, %v3485_v25  ;;  %v3489_v5 = vrot.slane %v3481_v3, %v5596_v63 }
0x18ba   :  { %4951 = vmatmul.mubr.msk.f32.vlgmr.msra.gmra.mrb[34].mxu1 %vm73_vm2, %v6193_v31  ;;  %v3494_v36 = vsel %vm73_vm2, %v3492_v8, 0.0  ;;  %v3493_v38 = vmul.f32 %v5974_v35, %v3489_v5 }
0x18bb   :  { %5221 = vmatpush3.bf16.msra.mxu1 %v5517_v17  ;;  %3495 = vadd.xlane.f32.xlu0 %v3494_v36 }
0x18bc   :  { %5222 = vmatprep.subr.bf16.mxu1 %v5394_v0  ;;  %v3497_v12 = vsel %vm73_vm2, %v3493_v38, 0.0  ;;  %4972 = vmatprep.mubr.msk.f32.mxu1 %vm5395_vm1, %v5396_v4 }
0x18bd   :  { %3498 = vadd.xlane.f32.xlu1 %v3497_v12 }
0x18bf   :  { %5224 = vmatpush3.bf16.msra.mxu1 %v5533_v21 }
0x18c0   :  { %5231 = vmatprep.subr.bf16.mxu1 %v5394_v0 }
0x18c2   :  { %4973 = vmatmul.mubr.msk.f32.vlgmr.msra.gmra.mrb[36].mxu1 %vm73_vm2, %v6193_v31 }
0x18c3   :  { %5233 = vmatpush3.bf16.msra.mxu1 %v5666_v15  ;;  %4994 = vmatprep.mubr.msk.f32.mxu1 %vm5395_vm1, %v5396_v4 }
0x18c4   :  { %5234 = vmatprep.subr.bf16.mxu1 %v5394_v0 }
0x18c7   :  { %5236 = vmatpush3.bf16.msra.mxu1 %v5678_v22 }
0x1948   :  { %v3496_v17 = vpop.xlane.xlu0 %3495 }
0x1949   :  { %v3505_v42 = vrot.slane %v3496_v17, %v5635_v20 }
0x194a   :  { %v3499_v39 = vpop.xlane.xlu1 %3498 }
0x194b   :  { %v3509_v21 = vrot.slane %v3499_v39, %v5635_v20 }
0x194d   :  { %v3510_v46 = vsel %vm370_vm3, %v3509_v21, %v3505_v42 }
0x194e   :  { %v3512_v49 = vsel %vm373_vm4, %v3510_v46, -inf }
0x194f   :  { %3513 = vmax.xlane.f32.xlu1 %v3512_v49 }
0x1985   :  { %v6232_v50 = vpop.f32.mrb[32].mxu1 }
0x1986   :  { %v4930_v15 = vpop.f32.mrb[33].mxu1 }
0x198d   :  { %v3810_v53 = vpop.f32.mrb[34].mxu1 }
0x198e   :  { %v3956_v22 = vadd.f32 %v4349_v52, %v3810_v53  ;;  %v4952_v55 = vpop.f32.mrb[35].mxu1 }
0x1990   :  { %v4350_v57 = vmul.f32 -1.442695, %v3956_v22 }
0x1992   :  { %5362 = vpow2.f32 %v4350_v57 }
0x1995   :  { %v3950_v58 = vpop.f32.mrb[36].mxu1 }
0x1996   :  { %v4974_v59 = vpop.f32.mrb[37].mxu1  ;;  %v3951_v37 = vadd.f32 %v5951_v56, %v3950_v58  ;;  %v4351_v58 = vld [vmem:[%s6325_s1 + $0xe] sm:$0x3] }
0x199c   :  { %v5363_v1 = vpop.eup %5362 }
0x199d   :  { %v3960_v2 = vadd.f32 1.0, %v5363_v1 }
0x199f   :  { %5364 = vrcp.f32 %v3960_v2 }
0x19a9   :  { %v5365_v7 = vpop.eup %5364 }
0x19aa   :  { %v6238_v41 = vmul.f32 %v5365_v7, %v3951_v37 }
0x19dc   :  { %v3514_v10 = vpop.xlane.xlu1 %3513 }
0x19dd   :  { %v3519_v48 = vrot.slane %v3514_v10, %v5596_v63  ;;  %v3523_v40 = vrot.slane %v3514_v10, %v5650_v45 }
0x19df   :  { %v3526_v43 = vsub.f32 %v3496_v17, %v3519_v48  ;;  %v3527_v44 = vsub.f32 %v3499_v39, %v3523_v40 }
0x19e1   :  { %v3528_v47 = vmul.f32 1.442695, %v3526_v43  ;;  %v3530_v18 = vmul.f32 1.442695, %v3527_v44 }
0x19e3   :  { %5366 = vpow2.f32 %v3528_v47 }
0x19e4   :  { %5368 = vpow2.f32 %v3530_v18 }
0x19ed   :  { %v5367_v61 = vpop.eup %5366 }
0x19ee   :  { %v5369_v23 = vpop.eup %5368  ;;  %3535 = vperm.xlu1 %5242, %v5367_v61  }
0x19ef   :  { %3538 = vperm.xlu0 %5243, %v5369_v23  }
0x1a6d   :  { %v3536_v54 = vpop.permute.xlu1 %3535 }
0x1a6e   :  { %v3539_v56 = vpop.permute.xlu0 %3538  ;;  %v3543_v51 = vrot.slane %v3536_v54, %v5635_v20 }
0x1a6f   :  { %v3547_v11 = vrot.slane %v3539_v56, %v5635_v20 }
0x1a71   :  { %v3548_v26 = vsel %vm370_vm3, %v3547_v11, %v3543_v51 }
0x1a72   :  { %v3550_v62 = vsel %vm373_vm4, %v3548_v26, 0.0 }
0x1a73   :  { %3551 = vadd.xlane.f32.xlu1 %v3550_v62 }
0x1b00   :  { %v3552_v19 = vpop.xlane.xlu1 %3551 }
0x1b01   :  { %5370 = vrcp.f32 %v3552_v19 }
0x1b0b   :  { %v5371_v28 = vpop.eup %5370 }
0x1b0c   :  { %v3558_v6 = vrot.slane %v5371_v28, %v5596_v63  ;;  %v3562_v30 = vrot.slane %v5371_v28, %v5650_v45 }
0x1b0e   :  { %v3565_v29 = vmul.f32 %v5367_v61, %v3558_v6  ;;  %v3566_v33 = vmul.f32 %v5369_v23, %v3562_v30 }
0x1b10   :  { %3569 = vperm.xlu0 %5243, %v3565_v29  }
0x1b14   :  { %3574 = vperm.xlu0 %5243, %v3566_v33  }
0x1b8f   :  { %v3570_v14 = vpop.permute.xlu0 %3569 }
0x1b90   :  { %v3577_v34 = vmul.f32 %v5967_v32, %v3570_v14 }
0x1b92   :  { %v3579_v25 = vsel %vm73_vm2, %v3577_v34, 0.0 }
0x1b93   :  { %v3580_v3 = vrot.slane %v3579_v25, 4  ;;  %v3575_v8 = vpop.permute.xlu0 %3574 }
0x1b94   :  { %v3578_v5 = vmul.f32 %v5974_v35, %v3575_v8 }
0x1b95   :  { %v3581_v36 = vadd.f32 %v3580_v3, %v3579_v25 }
0x1b96   :  { %v3586_v38 = vsel %vm73_vm2, %v3578_v5, 0.0 }
0x1b97   :  { %v3582_v12 = vrot.slane %v3581_v36, 2  ;;  %v3587_v17 = vrot.slane %v3586_v38, 4 }
0x1b99   :  { %v3583_v39 = vadd.f32 %v3582_v12, %v3581_v36  ;;  %v3588_v42 = vadd.f32 %v3587_v17, %v3586_v38 }
0x1b9b   :  { %v3589_v21 = vrot.slane %v3588_v42, 2  ;;  %v3584_v46 = vrot.slane %v3583_v39, 1 }
0x1b9d   :  { %v3590_v49 = vadd.f32 %v3589_v21, %v3588_v42  ;;  %v3585_v52 = vadd.f32 %v3584_v46, %v3583_v39 }
0x1b9f   :  { %v3591_v15 = vrot.slane %v3590_v49, 1 }
0x1ba1   :  { %v3592_v53 = vadd.f32 %v3591_v15, %v3590_v49 }
0x1ba3   :  { %v3667_v22 = vsel %vm370_vm3, %v3592_v53, %v3585_v52 }
0x1ba4   :  { %4940 = vmatmul.mubr.msk.f32.vlgmr.msra.gmra.mrb[34].mxu0 %vm73_vm2, %v3667_v22 }
0x1ba5   :  { %5215 = vmatpush3.bf16.msra.mxu0 %v5503_v13  ;;  %4961 = vmatprep.mubr.msk.f32.mxu0 %vm5395_vm1, %v5396_v4 }
0x1ba6   :  { %5216 = vmatprep.subr.bf16.mxu0 %v5394_v0 }
0x1ba9   :  { %5218 = vmatpush3.bf16.msra.mxu0 %v5513_v16 }
0x1baa   :  { %5225 = vmatprep.subr.bf16.mxu0 %v5394_v0 }
0x1bac   :  { %4962 = vmatmul.mubr.msk.f32.vlgmr.msra.gmra.mrb[36].mxu0 %vm73_vm2, %v6193_v31 }
0x1bad   :  { %5227 = vmatpush3.bf16.msra.mxu0 %v5554_v24  ;;  %4983 = vmatprep.mubr.msk.f32.mxu0 %vm5395_vm1, %v5396_v4 }
0x1bae   :  { %5228 = vmatprep.subr.bf16.mxu0 %v5394_v0  ;;  %v4353_v0 = vld [vmem:[%s6327_s2 + $0xe] sm:$0x3] }
0x1bb1   :  { %5230 = vmatpush3.bf16.msra.mxu0 %v5564_v27 }
0x1c77   :  { %v3736_v13 = vpop.f32.mrb[34].mxu0 }
0x1c78   :  { %v3737_v55 = vadd.f32 %v3736_v13, %v6232_v50  ;;  %v4941_v57 = vpop.f32.mrb[35].mxu0  ;;  %v3975_v50 = vadd.f32 %v4353_v0, %v6238_v41 }
0x1c7a   :  { %v3740_v16 = vadd.f32 %v6088_v9, %v3737_v55 }
0x1c7c   :  { %5372 = vtanh.f32 %v3740_v16 }
0x1c7f   :  { %v3880_v59 = vpop.f32.mrb[36].mxu0 }
0x1c80   :  { %v3965_v24 = vadd.f32 %v4351_v58, %v3880_v59  ;;  %v4963_v1 = vpop.f32.mrb[37].mxu0 }
0x1c82   :  { %v4352_v2 = vmul.f32 -1.442695, %v3965_v24 }
0x1c84   :  { %5374 = vpow2.f32 %v4352_v2 }
0x1c86   :  { %v5373_v4 = vpop.eup %5372 }
0x1c87   :  { %4345 = vst.msk [vmem:[%s6331_s12 + $0xc] sm:$0x3] %vm46_vm0, %v5373_v4 }
0x1c8e   :  { %v5375_v27 = vpop.eup %5374 }
0x1c8f   :  { %v3969_v37 = vadd.f32 1.0, %v5375_v27 }
0x1c91   :  { %5376 = vrcp.f32 %v3969_v37 }
0x1c92   :  { %5378 = vtanh.f32 %v3975_v50 }
0x1c9b   :  { %v5377_v7 = vpop.eup %5376 }
0x1c9c   :  { %v3977_v10 = vsub.f32 1.0, %v5377_v7  ;;  %v5379_v48 = vpop.eup %5378  ;;  %v3979_v43 = vmul.f32 %v5377_v7, %v6193_v31 }
0x1c9e   :  { %v3978_v40 = vmul.f32 %v5379_v48, %v3977_v10 }
0x1ca0   :  { %v3980_v44 = vadd.f32 %v3979_v43, %v3978_v40 }
0x1ca2   :  { %4984 = vmatmul.mubr.msk.f32.vlgmr.msra.gmra.mrb[38].mxu0 %vm73_vm2, %v3980_v44  ;;  %4266 = vst.msk [vmem:[#allocation2] sm:$0x3] %vm46_vm0, %v3980_v44  ;;  %v3988_v47 = vrot.slane %v3980_v44, %v5587_v60 }
0x1ca4   :  { %v3996_v18 = vrot.slane %v3988_v47, %v5587_v60  ;;  %v3989_v61 = vcombine.high %v3988_v47, %v3988_v47 }
0x1ca6   :  { %v4007_v41 = vrot.slane %v3996_v18, %v5596_v63  ;;  %v4003_v23 = vrot.slane %v3989_v61, %v5587_v60 }
0x1ca8   :  { %v4014_v54 = vmul.f32 %v5967_v32, %v4007_v41  ;;  %v4011_v56 = vrot.slane %v4003_v23, %v5596_v63 }
0x1caa   :  { %v4016_v31 = vsel %vm73_vm2, %v4014_v54, 0.0  ;;  %v4015_v51 = vmul.f32 %v5974_v35, %v4011_v56 }
0x1cab   :  { %4017 = vadd.xlane.f32.xlu0 %v4016_v31 }
0x1cac   :  { %v4019_v11 = vsel %vm73_vm2, %v4015_v51, 0.0 }
0x1cad   :  { %4020 = vadd.xlane.f32.xlu1 %v4019_v11 }
0x1d38   :  { %v4018_v26 = vpop.xlane.xlu0 %4017 }
0x1d39   :  { %v4027_v19 = vrot.slane %v4018_v26, %v5635_v20 }
0x1d3a   :  { %v4021_v62 = vpop.xlane.xlu1 %4020 }
0x1d3b   :  { %v4031_v28 = vrot.slane %v4021_v62, %v5635_v20 }
0x1d3d   :  { %v4032_v60 = vsel %vm370_vm3, %v4031_v28, %v4027_v19 }
0x1d3e   :  { %v4034_v32 = vsel %vm373_vm4, %v4032_v60, -inf }
0x1d3f   :  { %4035 = vmax.xlane.f32.xlu1 %v4034_v32 }
0x1d75   :  { %v4183_v6 = vpop.f32.mrb[38].mxu0 }
0x1d76   :  { %v4985_v29 = vpop.f32.mrb[39].mxu0 }
0x1dcc   :  { %v4036_v30 = vpop.xlane.xlu1 %4035 }
0x1dcd   :  { %v4041_v35 = vrot.slane %v4036_v30, %v5596_v63  ;;  %v4045_v33 = vrot.slane %v4036_v30, %v5650_v45 }
0x1dcf   :  { %v4048_v14 = vsub.f32 %v4018_v26, %v4041_v35  ;;  %v4049_v34 = vsub.f32 %v4021_v62, %v4045_v33 }
0x1dd1   :  { %v4050_v25 = vmul.f32 1.442695, %v4048_v14  ;;  %v4052_v3 = vmul.f32 1.442695, %v4049_v34 }
0x1dd3   :  { %5380 = vpow2.f32 %v4050_v25 }
0x1dd4   :  { %5382 = vpow2.f32 %v4052_v3 }
0x1ddd   :  { %v5381_v8 = vpop.eup %5380 }
0x1dde   :  { %v5383_v5 = vpop.eup %5382  ;;  %4057 = vperm.xlu1 %5242, %v5381_v8  }
0x1ddf   :  { %4060 = vperm.xlu0 %5243, %v5383_v5  }
0x1e5d   :  { %v4058_v36 = vpop.permute.xlu1 %4057 }
0x1e5e   :  { %v4061_v38 = vpop.permute.xlu0 %4060  ;;  %v4065_v12 = vrot.slane %v4058_v36, %v5635_v20 }
0x1e5f   :  { %v4069_v17 = vrot.slane %v4061_v38, %v5635_v20  ;;  %v5392_v20 = vld [vmem:[%s6328_s3] sm:$0xff] }
0x1e61   :  { %v4070_v39 = vsel %vm370_vm3, %v4069_v17, %v4065_v12 }
0x1e62   :  { %v4072_v42 = vsel %vm373_vm4, %v4070_v39, 0.0 }
0x1e63   :  { %4073 = vadd.xlane.f32.xlu1 %v4072_v42 }
0x1ef0   :  { %v4074_v21 = vpop.xlane.xlu1 %4073 }
0x1ef1   :  { %5384 = vrcp.f32 %v4074_v21 }
0x1efb   :  { %v5385_v46 = vpop.eup %5384 }
0x1efc   :  { %v4080_v49 = vrot.slane %v5385_v46, %v5596_v63  ;;  %v4084_v52 = vrot.slane %v5385_v46, %v5650_v45  ;;  %v5393_v63 = vld [vmem:[%s6328_s3 + $0x8] sm:$0xff] }
0x1efe   :  { %v4087_v15 = vmul.f32 %v5381_v8, %v4080_v49  ;;  %v4088_v53 = vmul.f32 %v5383_v5, %v4084_v52 }
0x1f00   :  { %4091 = vperm.xlu0 %5243, %v4087_v15  }
0x1f04   :  { %4096 = vperm.xlu0 %5243, %v4088_v53  }
0x1f7f   :  { %v4092_v22 = vpop.permute.xlu0 %4091 }
0x1f80   :  { %v4099_v13 = vmul.f32 %v5392_v20, %v4092_v22 }
0x1f82   :  { %v4101_v55 = vsel %vm73_vm2, %v4099_v13, 0.0 }
0x1f83   :  { %v4102_v57 = vrot.slane %v4101_v55, 4  ;;  %v4097_v16 = vpop.permute.xlu0 %4096 }
0x1f84   :  { %v4100_v58 = vmul.f32 %v5393_v63, %v4097_v16 }
0x1f85   :  { %v4103_v59 = vadd.f32 %v4102_v57, %v4101_v55 }
0x1f86   :  { %v4108_v45 = vsel %vm73_vm2, %v4100_v58, 0.0 }
0x1f87   :  { %v4104_v24 = vrot.slane %v4103_v59, 2  ;;  %v4109_v1 = vrot.slane %v4108_v45, 4 }
0x1f89   :  { %v4105_v2 = vadd.f32 %v4104_v24, %v4103_v59  ;;  %v4110_v4 = vadd.f32 %v4109_v1, %v4108_v45 }
0x1f8b   :  { %v4111_v0 = vrot.slane %v4110_v4, 2  ;;  %v4106_v27 = vrot.slane %v4105_v2, 1 }
0x1f8d   :  { %v4112_v50 = vadd.f32 %v4111_v0, %v4110_v4  ;;  %v4107_v7 = vadd.f32 %v4106_v27, %v4105_v2 }
0x1f8f   :  { %v4113_v37 = vrot.slane %v4112_v50, 1 }
0x1f91   :  { %v4114_v10 = vadd.f32 %v4113_v37, %v4112_v50 }
0x1f93   :  { %v4189_v48 = vsel %vm370_vm3, %v4114_v10, %v4107_v7 }
0x1f94   :  { %4995 = vmatmul.mubr.msk.f32.vlgmr.msra.gmra.mrb[38].mxu1 %vm73_vm2, %v4189_v48 }
0x2067   :  { %v4258_v40 = vpop.f32.mrb[38].mxu1 }
0x2068   :  { %v4259_v43 = vadd.f32 %v4258_v40, %v4183_v6  ;;  %v4996_v44 = vpop.f32.mrb[39].mxu1 }
0x206a   :  { %v4262_v47 = vadd.f32 %v6088_v9, %v4259_v43 }
0x206c   :  { %5386 = vtanh.f32 %v4262_v47 }
0x2076   :  { %v5387_v18 = vpop.eup %5386 }
0x2077   :  { %4356 = vst.msk [vmem:[%s6331_s12 + $0xe] sm:$0x3] %vm46_vm0, %v5387_v18 }

</bundles_post_ra>
